<compile_context>
chip_gen: v7x
topology: tpu7x:2x2x1
jax: 0.10.0
libtpu: 0.0.40
codegen_flags: <defaults>
</compile_context>

<pallas_src>
import jax
import jax.numpy as jnp
from jax import lax
from jax.experimental import pallas as pl
from jax.experimental.pallas import tpu as pltpu


C_PAD = 128    # channel lanes: every layer's channel count is zero-padded to this
HALO = 8       # zero rows before / between / after stacked samples (>= max pad, 8-aligned)


# ----------------------------------------------------------------------------
# Fused Pallas kernel (built per static layer configuration)
# ----------------------------------------------------------------------------
def _make_fused_cnn_kernel(kernel_sizes, seq_len, batch_block):
    n_layers = len(kernel_sizes)
    slab = seq_len + HALO                    # per-sample row stride in the stacked layout
    n_rows = batch_block * slab              # rows of every conv operand / result

    def kernel(*args):
        # args = x, (w, scale, shift) * n_layers, fc_w, fc_b, out, buf_a, buf_b
        x_ref = args[0]
        layers = [(args[1 + 3 * i], args[2 + 3 * i], args[3 + 3 * i])
                  for i in range(n_layers)]
        fcw_ref = args[1 + 3 * n_layers]
        fcb_ref = args[2 + 3 * n_layers]
        o_ref = args[3 + 3 * n_layers]
        bufs = (args[4 + 3 * n_layers], args[5 + 3 * n_layers])

        # One-time zeroing of the scratch buffers.  Halo / gap rows are never
        # written again (only per-sample interiors are stored below), so they
        # stay zero for every grid step -> conv 'same' zero padding for free.
        @pl.when(pl.program_id(0) == 0)
        def _():
            bufs[0][...] = jnp.zeros_like(bufs[0])
            bufs[1][...] = jnp.zeros_like(bufs[1])

        # ---- layer 1: host-side im2col (K*Cin taps packed in lanes) -> ONE matmul
        w0_ref, sc0_ref, sh0_ref = layers[0]
        acc = jnp.dot(x_ref[0], w0_ref[...], preferred_element_type=jnp.float32)
        y = jnp.maximum(acc * sc0_ref[...] + sh0_ref[...], 0.0)     # (n_rows, 128) f32

        # ---- layers 2..n: K accumulated shifted-slice matmuls over the zero-
        #      haloed VMEM buffer (taps reaching halo/gap rows read exact zeros).
        for li in range(1, n_layers):
            src = bufs[(li - 1) % 2]
            y_store = y.astype(src.dtype)
            for s in range(batch_block):     # interior-only stores keep gaps zero
                r0 = s * slab
                src[HALO + r0:HALO + r0 + seq_len, :] = y_store[r0:r0 + seq_len, :]
            w_ref, sc_ref, sh_ref = layers[li]
            ksize = kernel_sizes[li]
            pad = ksize // 2
            off0 = HALO - pad
            acc = jnp.dot(src[off0:off0 + n_rows, :], w_ref[0],
                          preferred_element_type=jnp.float32)
            for kk in range(1, ksize):
                acc = acc + jnp.dot(src[off0 + kk:off0 + kk + n_rows, :], w_ref[kk],
                                    preferred_element_type=jnp.float32)
            # folded BatchNorm (eval) + ReLU epilogue in f32
            y = jnp.maximum(acc * sc_ref[...] + sh_ref[...], 0.0)

        # ---- AdaptiveAvgPool1d(1) + Linear(C -> 1) directly from the f32 result
        inv_len = 1.0 / seq_len
        for s in range(batch_block):
            r0 = s * slab
            pooled = jnp.sum(y[r0:r0 + seq_len, :], axis=0, keepdims=True) * inv_len
            logit = jnp.sum(pooled * fcw_ref[...], axis=-1, keepdims=True) + fcb_ref[...]
            o_ref[s:s + 1, :] = jnp.broadcast_to(logit, (1, C_PAD))   # lane-dense row

    return kernel


# ----------------------------------------------------------------------------
# Wrapper around pallas_call
# ----------------------------------------------------------------------------
def cnn_forward_fused(x_ncl, conv_params, fc_params, eps=1e-5, samples_per_step=None):
    n, cin0, l = x_ncl.shape
    assert l % 8 == 0, "sequence length must be a multiple of 8 for this tiling"
    kernel_sizes = tuple(int(p["w"].shape[-1]) for p in conv_params)
    assert all(k % 2 == 1 for k in kernel_sizes), "'same' padding needs odd K"
    assert kernel_sizes[0] * cin0 <= C_PAD, "first layer K*Cin must fit in 128 lanes"
    assert all(k // 2 <= HALO for k in kernel_sizes[1:])
    assert all(p["w"].shape[0] <= C_PAD for p in conv_params)

    # ---- choose samples per grid step ---------------------------------------
    if samples_per_step is None:
        samples_per_step = n
        if n % 2 == 0 and n >= 4:
            samples_per_step = n // 2        # >= 2 grid steps -> both v7x TCs busy
        # keep stacked f32 intermediates modest if L or N is large
        while (samples_per_step > 1 and samples_per_step * (l + HALO) > 4096
               and n % (samples_per_step // 2) == 0):
            samples_per_step //= 2
    b = samples_per_step
    assert n % b == 0, "batch must be divisible by samples_per_step"
    g = n // b
    slab = l + HALO
    n_rows = b * slab
    t_rows = n_rows + 2 * HALO

    # ---- host-side layout plumbing ------------------------------------------
    # Layer-1 im2col: lane (kk*Cin + ci) of row t holds x[t - pad + kk, ci].
    # Each sample occupies (L + HALO) rows; the trailing HALO rows are a zero
    # gap between stacked samples.
    k1 = kernel_sizes[0]
    pad1 = k1 // 2
    x_nlc = jnp.transpose(x_ncl, (0, 2, 1))                              # (N, L, Cin)
    xq = jnp.pad(x_nlc, ((0, 0), (pad1, pad1 + HALO), (0, 0)))
    cols = [xq[:, kk:kk + slab, :] for kk in range(k1)]
    x_im2col = jnp.concatenate(cols, axis=-1)                            # (N, L+HALO, K*Cin)
    x_im2col = jnp.pad(x_im2col, ((0, 0), (0, 0), (0, C_PAD - k1 * cin0)))
    x_full = x_im2col.reshape(g, n_rows, C_PAD).astype(jnp.bfloat16)

    inputs = [x_full]
    in_specs = [pl.BlockSpec((1, n_rows, C_PAD), lambda i: (i, 0, 0))]

    for li, p in enumerate(conv_params):
        cout, cin_w, k = p["w"].shape
        w = jnp.transpose(p["w"], (2, 1, 0))                             # (K, Cin, Cout)
        if li == 0:
            # contraction-packed (K*Cin -> 128, Cout -> 128) for the single matmul
            w = w.reshape(k * cin_w, cout)
            w = jnp.pad(w, ((0, C_PAD - k * cin_w), (0, C_PAD - cout)))
            w_spec = pl.BlockSpec((C_PAD, C_PAD), lambda i: (0, 0))
        else:
            w = jnp.pad(w, ((0, 0), (0, C_PAD - cin_w), (0, C_PAD - cout)))
            w_spec = pl.BlockSpec((k, C_PAD, C_PAD), lambda i: (0, 0, 0))
        inv_std = 1.0 / jnp.sqrt(p["var"] + eps)
        scale = p["gamma"] * inv_std
        shift = p["beta"] + (p["b"] - p["mean"]) * scale
        scale = jnp.pad(scale, (0, C_PAD - cout)).reshape(1, C_PAD)
        shift = jnp.pad(shift, (0, C_PAD - cout)).reshape(1, C_PAD)
        inputs += [w.astype(jnp.bfloat16),
                   scale.astype(jnp.float32),
                   shift.astype(jnp.float32)]
        in_specs += [w_spec,
                     pl.BlockSpec((1, C_PAD), lambda i: (0, 0)),
                     pl.BlockSpec((1, C_PAD), lambda i: (0, 0))]

    c_last = conv_params[-1]["w"].shape[0]
    fcw = jnp.pad(fc_params["w"].reshape(-1), (0, C_PAD - c_last))
    inputs += [fcw.reshape(1, C_PAD).astype(jnp.float32),
               fc_params["b"].reshape(1, 1).astype(jnp.float32)]
    in_specs += [pl.BlockSpec((1, C_PAD), lambda i: (0, 0)),
                 pl.BlockSpec((1, 1), lambda i: (0, 0))]

    # NOTE(v7x): the weight/scale/shift blocks are grid-invariant; pipeline_mode=
    # pl.Buffered(1) would halve their double-buffered VMEM footprint under the
    # 64 MiB budget -- left at the default here for portability.
    out = pl.pallas_call(
        _make_fused_cnn_kernel(kernel_sizes, l, b),
        out_shape=jax.ShapeDtypeStruct((n, C_PAD), jnp.float32),
        grid_spec=pltpu.PrefetchScalarGridSpec(
            num_scalar_prefetch=0,
            grid=(g,),
            in_specs=in_specs,
            out_specs=pl.BlockSpec((b, C_PAD), lambda i: (i, 0)),
            scratch_shapes=[pltpu.VMEM((t_rows, C_PAD), jnp.bfloat16),
                            pltpu.VMEM((t_rows, C_PAD), jnp.bfloat16)]),
        compiler_params=pltpu.CompilerParams(
            dimension_semantics=("parallel",)),
    )(*inputs)
    return out[:, :1]                                   # (N, 1)


@jax.jit
def cnn_classifier_forward(x_ncl, conv_params, fc_params):
    return cnn_forward_fused(x_ncl, conv_params, fc_params)


# ----------------------------------------------------------------------------
# Parameter construction (deterministic, synthetic)
# ----------------------------------------------------------------------------
def init_params(key, num_layers=3, base_channels=16):
    params = []
    in_channels = 1
    for i in range(num_layers):
        out_channels = base_channels * 2 ** i
        kernel_size = 7 if i == 0 else 5 if i == 1 else 3
        key, kw, kb, kg, kbe, km, kv = jax.random.split(key, 7)
        layer = dict(
            w=0.1 * jax.random.normal(kw, (out_channels, in_channels, kernel_size),
                                      jnp.float32),
            b=0.1 * jax.random.normal(kb, (out_channels,), jnp.float32),
            gamma=1.0 + 0.1 * jax.random.normal(kg, (out_channels,), jnp.float32),
            beta=0.1 * jax.random.normal(kbe, (out_channels,), jnp.float32),
            mean=0.1 * jax.random.normal(km, (out_channels,), jnp.float32),
            var=1.0 + 0.1 * jax.random.uniform(kv, (out_channels,), jnp.float32),
        )
        params.append(layer)
        in_channels = out_channels
    key, kfw, kfb = jax.random.split(key, 3)
    fc = dict(
        w=0.1 * jax.random.normal(kfw, (1, in_channels), jnp.float32),
        b=0.1 * jax.random.normal(kfb, (1,), jnp.float32),
    )
    return params, fc


# ----------------------------------------------------------------------------
# Pure-JAX f32 reference mirroring the PyTorch eval-mode forward
# ----------------------------------------------------------------------------
def cnn_classifier_reference(x_ncl, conv_params, fc_params, eps=1e-5):
    x = jnp.transpose(x_ncl, (0, 2, 1))  # (N, L, C)
    for p in conv_params:
        k = p["w"].shape[-1]
        pad = k // 2
        w_wio = jnp.transpose(p["w"], (2, 1, 0))  # (K, Cin, Cout)
        y = lax.conv_general_dilated(
            x, w_wio, window_strides=(1,), padding=[(pad, pad)],
            dimension_numbers=("NWC", "WIO", "NWC"))
        y = y + p["b"]
        inv_std = 1.0 / jnp.sqrt(p["var"] + eps)
        y = (y - p["mean"]) * (p["gamma"] * inv_std) + p["beta"]
        x = jnp.maximum(y, 0.0)
    pooled = jnp.mean(x, axis=1)                        # (N, C)
    return pooled @ fc_params["w"].T + fc_params["b"]   # (N, 1)


# ----------------------------------------------------------------------------
if __name__ == "__main__":
    key = jax.random.PRNGKey(0)
    key, kx, kp = jax.random.split(key, 3)

    # Small shapes consistent with the module: in_channels=1, length=64;
    # batch=16 -> 2 grid steps of 8 sublane-stacked samples each.
    N, C_IN, L = 16, 1, 64
    x = jax.random.normal(kx, (N, C_IN, L), jnp.float32)

    conv_params, fc_params = init_params(kp, num_layers=3, base_channels=16)

    out = jax.block_until_ready(cnn_classifier_forward(x, conv_params, fc_params))
    ref = cnn_classifier_reference(x, conv_params, fc_params)

    assert out.shape == (N, 1), out.shape
    err = float(jnp.max(jnp.abs(out - ref)))
    # bf16 MXU operands with f32 accumulation -> small quantization error vs f32 ref.
    assert err < 5e-2, f"max abs err {err}"

    print("KERNEL_OK")
</pallas_src>

<mosaic_0001>
module attributes {stable_mosaic.version = 11 : i64} {
  func.func @kernel(%arg0: i32, %arg1: memref<1x576x128xbf16, #tpu.memory_space<vmem>>, %arg2: memref<128x128xbf16, #tpu.memory_space<vmem>>, %arg3: memref<1x128xf32, #tpu.memory_space<vmem>>, %arg4: memref<1x128xf32, #tpu.memory_space<vmem>>, %arg5: memref<5x128x128xbf16, #tpu.memory_space<vmem>>, %arg6: memref<1x128xf32, #tpu.memory_space<vmem>>, %arg7: memref<1x128xf32, #tpu.memory_space<vmem>>, %arg8: memref<3x128x128xbf16, #tpu.memory_space<vmem>>, %arg9: memref<1x128xf32, #tpu.memory_space<vmem>>, %arg10: memref<1x128xf32, #tpu.memory_space<vmem>>, %arg11: memref<1x128xf32, #tpu.memory_space<vmem>>, %arg12: memref<1x1xf32, #tpu.memory_space<vmem>>, %arg13: memref<8x128xf32, #tpu.memory_space<vmem>>, %arg14: memref<592x128xbf16, #tpu.memory_space<vmem>>, %arg15: memref<592x128xbf16, #tpu.memory_space<vmem>>) attributes {dimension_semantics = [#tpu.dimension_semantics<parallel>], iteration_bounds = array<i64: 2>, scalar_prefetch = 0 : i64, scratch_operands = 2 : i64, tpu.core_type = #tpu.core_type<tc>, window_params = [{transform_indices = @transform_0, window_bounds = array<i64: 1, 576, 128>}, {pipeline_mode = #tpu.pipeline_mode<synchronous>, transform_indices = @transform_1, window_bounds = array<i64: 128, 128>}, {pipeline_mode = #tpu.pipeline_mode<synchronous>, transform_indices = @transform_2, window_bounds = array<i64: 1, 128>}, {pipeline_mode = #tpu.pipeline_mode<synchronous>, transform_indices = @transform_3, window_bounds = array<i64: 1, 128>}, {pipeline_mode = #tpu.pipeline_mode<synchronous>, transform_indices = @transform_4, window_bounds = array<i64: 5, 128, 128>}, {pipeline_mode = #tpu.pipeline_mode<synchronous>, transform_indices = @transform_5, window_bounds = array<i64: 1, 128>}, {pipeline_mode = #tpu.pipeline_mode<synchronous>, transform_indices = @transform_6, window_bounds = array<i64: 1, 128>}, {pipeline_mode = #tpu.pipeline_mode<synchronous>, transform_indices = @transform_7, window_bounds = array<i64: 3, 128, 128>}, {pipeline_mode = #tpu.pipeline_mode<synchronous>, transform_indices = @transform_8, window_bounds = array<i64: 1, 128>}, {pipeline_mode = #tpu.pipeline_mode<synchronous>, transform_indices = @transform_9, window_bounds = array<i64: 1, 128>}, {pipeline_mode = #tpu.pipeline_mode<synchronous>, transform_indices = @transform_10, window_bounds = array<i64: 1, 128>}, {pipeline_mode = #tpu.pipeline_mode<synchronous>, transform_indices = @transform_11, window_bounds = array<i64: 1, 1>}, {transform_indices = @transform_12, window_bounds = array<i64: 8, 128>}]} {
    %c0_i32 = arith.constant 0 : i32
    %0 = arith.cmpi eq, %arg0, %c0_i32 : i32
    %1 = arith.extui %0 : i1 to i32
    %c0_i32_0 = arith.constant 0 : i32
    %2 = arith.cmpi ne, %1, %c0_i32_0 : i32
    scf.if %2 {
      %cst_155 = arith.constant 0.000000e+00 : bf16
      %215 = vector.broadcast %cst_155 : bf16 to vector<592x128xbf16>
      %c0_156 = arith.constant 0 : index
      %c0_157 = arith.constant 0 : index
      %216 = vector.load %arg14[%c0_156, %c0_157] : memref<592x128xbf16, #tpu.memory_space<vmem>>, vector<592x128xbf16>
      tpu.vector_store %arg14[%c0_156, %c0_157], %215 {strides = array<i32>} : memref<592x128xbf16, #tpu.memory_space<vmem>>, vector<592x128xbf16>,
      %cst_158 = arith.constant 0.000000e+00 : bf16
      %217 = vector.broadcast %cst_158 : bf16 to vector<592x128xbf16>
      %c0_159 = arith.constant 0 : index
      %c0_160 = arith.constant 0 : index
      %218 = vector.load %arg15[%c0_159, %c0_160] : memref<592x128xbf16, #tpu.memory_space<vmem>>, vector<592x128xbf16>
      tpu.vector_store %arg15[%c0_159, %c0_160], %217 {strides = array<i32>} : memref<592x128xbf16, #tpu.memory_space<vmem>>, vector<592x128xbf16>,
    } else {
    }
    %c0 = arith.constant 0 : index
    %c0_1 = arith.constant 0 : index
    %c0_2 = arith.constant 0 : index
    %3 = vector.load %arg1[%c0, %c0_1, %c0_2] : memref<1x576x128xbf16, #tpu.memory_space<vmem>>, vector<1x576x128xbf16>
    %4 = vector.shape_cast %3 : vector<1x576x128xbf16> to vector<576x128xbf16>
    %c0_3 = arith.constant 0 : index
    %c0_4 = arith.constant 0 : index
    %5 = vector.load %arg2[%c0_3, %c0_4] : memref<128x128xbf16, #tpu.memory_space<vmem>>, vector<128x128xbf16>
    %cst = arith.constant dense<0.000000e+00> : vector<576x128xf32>
    %6 = tpu.matmul %4, %5, %cst {dimension_numbers = #tpu.dot_dimension_numbers<[1], [0], [0], [1], [0, 0, 1, 1], [], []>} : vector<576x128xbf16>, vector<128x128xbf16>, vector<576x128xf32> -> vector<576x128xf32>
    %c0_5 = arith.constant 0 : index
    %c0_6 = arith.constant 0 : index
    %7 = vector.load %arg3[%c0_5, %c0_6] : memref<1x128xf32, #tpu.memory_space<vmem>>, vector<1x128xf32>
    %8 = vector.broadcast %7 : vector<1x128xf32> to vector<576x128xf32>
    %9 = arith.mulf %6, %8 : vector<576x128xf32>
    %c0_7 = arith.constant 0 : index
    %c0_8 = arith.constant 0 : index
    %10 = vector.load %arg4[%c0_7, %c0_8] : memref<1x128xf32, #tpu.memory_space<vmem>>, vector<1x128xf32>
    %11 = vector.broadcast %10 : vector<1x128xf32> to vector<576x128xf32>
    %12 = arith.addf %9, %11 : vector<576x128xf32>
    %cst_9 = arith.constant 0.000000e+00 : f32
    %13 = vector.broadcast %cst_9 : f32 to vector<576x128xf32>
    %14 = arith.maximumf %12, %13 : vector<576x128xf32>
    %15 = arith.truncf %14 : vector<576x128xf32> to vector<576x128xbf16>
    %16 = vector.extract_strided_slice %15 {offsets = [0, 0], sizes = [64, 128], strides = [1, 1]} : vector<576x128xbf16> to vector<64x128xbf16>
    %c8 = arith.constant 8 : index
    %c0_10 = arith.constant 0 : index
    %17 = vector.load %arg14[%c8, %c0_10] : memref<592x128xbf16, #tpu.memory_space<vmem>>, vector<64x128xbf16>
    tpu.vector_store %arg14[%c8, %c0_10], %16 {strides = array<i32>} : memref<592x128xbf16, #tpu.memory_space<vmem>>, vector<64x128xbf16>,
    %18 = vector.extract_strided_slice %15 {offsets = [72, 0], sizes = [64, 128], strides = [1, 1]} : vector<576x128xbf16> to vector<64x128xbf16>
    %c80 = arith.constant 80 : index
    %c0_11 = arith.constant 0 : index
    %19 = vector.load %arg14[%c80, %c0_11] : memref<592x128xbf16, #tpu.memory_space<vmem>>, vector<64x128xbf16>
    tpu.vector_store %arg14[%c80, %c0_11], %18 {strides = array<i32>} : memref<592x128xbf16, #tpu.memory_space<vmem>>, vector<64x128xbf16>,
    %20 = vector.extract_strided_slice %15 {offsets = [144, 0], sizes = [64, 128], strides = [1, 1]} : vector<576x128xbf16> to vector<64x128xbf16>
    %c152 = arith.constant 152 : index
    %c0_12 = arith.constant 0 : index
    %21 = vector.load %arg14[%c152, %c0_12] : memref<592x128xbf16, #tpu.memory_space<vmem>>, vector<64x128xbf16>
    tpu.vector_store %arg14[%c152, %c0_12], %20 {strides = array<i32>} : memref<592x128xbf16, #tpu.memory_space<vmem>>, vector<64x128xbf16>,
    %22 = vector.extract_strided_slice %15 {offsets = [216, 0], sizes = [64, 128], strides = [1, 1]} : vector<576x128xbf16> to vector<64x128xbf16>
    %c224 = arith.constant 224 : index
    %c0_13 = arith.constant 0 : index
    %23 = vector.load %arg14[%c224, %c0_13] : memref<592x128xbf16, #tpu.memory_space<vmem>>, vector<64x128xbf16>
    tpu.vector_store %arg14[%c224, %c0_13], %22 {strides = array<i32>} : memref<592x128xbf16, #tpu.memory_space<vmem>>, vector<64x128xbf16>,
    %24 = vector.extract_strided_slice %15 {offsets = [288, 0], sizes = [64, 128], strides = [1, 1]} : vector<576x128xbf16> to vector<64x128xbf16>
    %c296 = arith.constant 296 : index
    %c0_14 = arith.constant 0 : index
    %25 = vector.load %arg14[%c296, %c0_14] : memref<592x128xbf16, #tpu.memory_space<vmem>>, vector<64x128xbf16>
    tpu.vector_store %arg14[%c296, %c0_14], %24 {strides = array<i32>} : memref<592x128xbf16, #tpu.memory_space<vmem>>, vector<64x128xbf16>,
    %26 = vector.extract_strided_slice %15 {offsets = [360, 0], sizes = [64, 128], strides = [1, 1]} : vector<576x128xbf16> to vector<64x128xbf16>
    %c368 = arith.constant 368 : index
    %c0_15 = arith.constant 0 : index
    %27 = vector.load %arg14[%c368, %c0_15] : memref<592x128xbf16, #tpu.memory_space<vmem>>, vector<64x128xbf16>
    tpu.vector_store %arg14[%c368, %c0_15], %26 {strides = array<i32>} : memref<592x128xbf16, #tpu.memory_space<vmem>>, vector<64x128xbf16>,
    %28 = vector.extract_strided_slice %15 {offsets = [432, 0], sizes = [64, 128], strides = [1, 1]} : vector<576x128xbf16> to vector<64x128xbf16>
    %c440 = arith.constant 440 : index
    %c0_16 = arith.constant 0 : index
    %29 = vector.load %arg14[%c440, %c0_16] : memref<592x128xbf16, #tpu.memory_space<vmem>>, vector<64x128xbf16>
    tpu.vector_store %arg14[%c440, %c0_16], %28 {strides = array<i32>} : memref<592x128xbf16, #tpu.memory_space<vmem>>, vector<64x128xbf16>,
    %30 = vector.extract_strided_slice %15 {offsets = [504, 0], sizes = [64, 128], strides = [1, 1]} : vector<576x128xbf16> to vector<64x128xbf16>
    %c512 = arith.constant 512 : index
    %c0_17 = arith.constant 0 : index
    %31 = vector.load %arg14[%c512, %c0_17] : memref<592x128xbf16, #tpu.memory_space<vmem>>, vector<64x128xbf16>
    tpu.vector_store %arg14[%c512, %c0_17], %30 {strides = array<i32>} : memref<592x128xbf16, #tpu.memory_space<vmem>>, vector<64x128xbf16>,
    %c6 = arith.constant 6 : index
    %c0_18 = arith.constant 0 : index
    %32 = vector.load %arg14[%c6, %c0_18] : memref<592x128xbf16, #tpu.memory_space<vmem>>, vector<576x128xbf16>
    %c0_19 = arith.constant 0 : index
    %c0_20 = arith.constant 0 : index
    %c0_21 = arith.constant 0 : index
    %33 = vector.load %arg5[%c0_19, %c0_20, %c0_21] : memref<5x128x128xbf16, #tpu.memory_space<vmem>>, vector<1x128x128xbf16>
    %34 = vector.shape_cast %33 : vector<1x128x128xbf16> to vector<128x128xbf16>
    %cst_22 = arith.constant dense<0.000000e+00> : vector<576x128xf32>
    %35 = tpu.matmul %32, %34, %cst_22 {dimension_numbers = #tpu.dot_dimension_numbers<[1], [0], [0], [1], [0, 0, 1, 1], [], []>} : vector<576x128xbf16>, vector<128x128xbf16>, vector<576x128xf32> -> vector<576x128xf32>
    %c7 = arith.constant 7 : index
    %c0_23 = arith.constant 0 : index
    %36 = vector.load %arg14[%c7, %c0_23] : memref<592x128xbf16, #tpu.memory_space<vmem>>, vector<576x128xbf16>
    %c1 = arith.constant 1 : index
    %c0_24 = arith.constant 0 : index
    %c0_25 = arith.constant 0 : index
    %37 = vector.load %arg5[%c1, %c0_24, %c0_25] : memref<5x128x128xbf16, #tpu.memory_space<vmem>>, vector<1x128x128xbf16>
    %38 = vector.shape_cast %37 : vector<1x128x128xbf16> to vector<128x128xbf16>
    %cst_26 = arith.constant dense<0.000000e+00> : vector<576x128xf32>
    %39 = tpu.matmul %36, %38, %cst_26 {dimension_numbers = #tpu.dot_dimension_numbers<[1], [0], [0], [1], [0, 0, 1, 1], [], []>} : vector<576x128xbf16>, vector<128x128xbf16>, vector<576x128xf32> -> vector<576x128xf32>
    %40 = arith.addf %35, %39 : vector<576x128xf32>
    %c8_27 = arith.constant 8 : index
    %c0_28 = arith.constant 0 : index
    %41 = vector.load %arg14[%c8_27, %c0_28] : memref<592x128xbf16, #tpu.memory_space<vmem>>, vector<576x128xbf16>
    %c2 = arith.constant 2 : index
    %c0_29 = arith.constant 0 : index
    %c0_30 = arith.constant 0 : index
    %42 = vector.load %arg5[%c2, %c0_29, %c0_30] : memref<5x128x128xbf16, #tpu.memory_space<vmem>>, vector<1x128x128xbf16>
    %43 = vector.shape_cast %42 : vector<1x128x128xbf16> to vector<128x128xbf16>
    %cst_31 = arith.constant dense<0.000000e+00> : vector<576x128xf32>
    %44 = tpu.matmul %41, %43, %cst_31 {dimension_numbers = #tpu.dot_dimension_numbers<[1], [0], [0], [1], [0, 0, 1, 1], [], []>} : vector<576x128xbf16>, vector<128x128xbf16>, vector<576x128xf32> -> vector<576x128xf32>
    %45 = arith.addf %40, %44 : vector<576x128xf32>
    %c9 = arith.constant 9 : index
    %c0_32 = arith.constant 0 : index
    %46 = vector.load %arg14[%c9, %c0_32] : memref<592x128xbf16, #tpu.memory_space<vmem>>, vector<576x128xbf16>
    %c3 = arith.constant 3 : index
    %c0_33 = arith.constant 0 : index
    %c0_34 = arith.constant 0 : index
    %47 = vector.load %arg5[%c3, %c0_33, %c0_34] : memref<5x128x128xbf16, #tpu.memory_space<vmem>>, vector<1x128x128xbf16>
    %48 = vector.shape_cast %47 : vector<1x128x128xbf16> to vector<128x128xbf16>
    %cst_35 = arith.constant dense<0.000000e+00> : vector<576x128xf32>
    %49 = tpu.matmul %46, %48, %cst_35 {dimension_numbers = #tpu.dot_dimension_numbers<[1], [0], [0], [1], [0, 0, 1, 1], [], []>} : vector<576x128xbf16>, vector<128x128xbf16>, vector<576x128xf32> -> vector<576x128xf32>
    %50 = arith.addf %45, %49 : vector<576x128xf32>
    %c10 = arith.constant 10 : index
    %c0_36 = arith.constant 0 : index
    %51 = vector.load %arg14[%c10, %c0_36] : memref<592x128xbf16, #tpu.memory_space<vmem>>, vector<576x128xbf16>
    %c4 = arith.constant 4 : index
    %c0_37 = arith.constant 0 : index
    %c0_38 = arith.constant 0 : index
    %52 = vector.load %arg5[%c4, %c0_37, %c0_38] : memref<5x128x128xbf16, #tpu.memory_space<vmem>>, vector<1x128x128xbf16>
    %53 = vector.shape_cast %52 : vector<1x128x128xbf16> to vector<128x128xbf16>
    %cst_39 = arith.constant dense<0.000000e+00> : vector<576x128xf32>
    %54 = tpu.matmul %51, %53, %cst_39 {dimension_numbers = #tpu.dot_dimension_numbers<[1], [0], [0], [1], [0, 0, 1, 1], [], []>} : vector<576x128xbf16>, vector<128x128xbf16>, vector<576x128xf32> -> vector<576x128xf32>
    %55 = arith.addf %50, %54 : vector<576x128xf32>
    %c0_40 = arith.constant 0 : index
    %c0_41 = arith.constant 0 : index
    %56 = vector.load %arg6[%c0_40, %c0_41] : memref<1x128xf32, #tpu.memory_space<vmem>>, vector<1x128xf32>
    %57 = vector.broadcast %56 : vector<1x128xf32> to vector<576x128xf32>
    %58 = arith.mulf %55, %57 : vector<576x128xf32>
    %c0_42 = arith.constant 0 : index
    %c0_43 = arith.constant 0 : index
    %59 = vector.load %arg7[%c0_42, %c0_43] : memref<1x128xf32, #tpu.memory_space<vmem>>, vector<1x128xf32>
    %60 = vector.broadcast %59 : vector<1x128xf32> to vector<576x128xf32>
    %61 = arith.addf %58, %60 : vector<576x128xf32>
    %cst_44 = arith.constant 0.000000e+00 : f32
    %62 = vector.broadcast %cst_44 : f32 to vector<576x128xf32>
    %63 = arith.maximumf %61, %62 : vector<576x128xf32>
    %64 = arith.truncf %63 : vector<576x128xf32> to vector<576x128xbf16>
    %65 = vector.extract_strided_slice %64 {offsets = [0, 0], sizes = [64, 128], strides = [1, 1]} : vector<576x128xbf16> to vector<64x128xbf16>
    %c8_45 = arith.constant 8 : index
    %c0_46 = arith.constant 0 : index
    %66 = vector.load %arg15[%c8_45, %c0_46] : memref<592x128xbf16, #tpu.memory_space<vmem>>, vector<64x128xbf16>
    tpu.vector_store %arg15[%c8_45, %c0_46], %65 {strides = array<i32>} : memref<592x128xbf16, #tpu.memory_space<vmem>>, vector<64x128xbf16>,
    %67 = vector.extract_strided_slice %64 {offsets = [72, 0], sizes = [64, 128], strides = [1, 1]} : vector<576x128xbf16> to vector<64x128xbf16>
    %c80_47 = arith.constant 80 : index
    %c0_48 = arith.constant 0 : index
    %68 = vector.load %arg15[%c80_47, %c0_48] : memref<592x128xbf16, #tpu.memory_space<vmem>>, vector<64x128xbf16>
    tpu.vector_store %arg15[%c80_47, %c0_48], %67 {strides = array<i32>} : memref<592x128xbf16, #tpu.memory_space<vmem>>, vector<64x128xbf16>,
    %69 = vector.extract_strided_slice %64 {offsets = [144, 0], sizes = [64, 128], strides = [1, 1]} : vector<576x128xbf16> to vector<64x128xbf16>
    %c152_49 = arith.constant 152 : index
    %c0_50 = arith.constant 0 : index
    %70 = vector.load %arg15[%c152_49, %c0_50] : memref<592x128xbf16, #tpu.memory_space<vmem>>, vector<64x128xbf16>
    tpu.vector_store %arg15[%c152_49, %c0_50], %69 {strides = array<i32>} : memref<592x128xbf16, #tpu.memory_space<vmem>>, vector<64x128xbf16>,
    %71 = vector.extract_strided_slice %64 {offsets = [216, 0], sizes = [64, 128], strides = [1, 1]} : vector<576x128xbf16> to vector<64x128xbf16>
    %c224_51 = arith.constant 224 : index
    %c0_52 = arith.constant 0 : index
    %72 = vector.load %arg15[%c224_51, %c0_52] : memref<592x128xbf16, #tpu.memory_space<vmem>>, vector<64x128xbf16>
    tpu.vector_store %arg15[%c224_51, %c0_52], %71 {strides = array<i32>} : memref<592x128xbf16, #tpu.memory_space<vmem>>, vector<64x128xbf16>,
    %73 = vector.extract_strided_slice %64 {offsets = [288, 0], sizes = [64, 128], strides = [1, 1]} : vector<576x128xbf16> to vector<64x128xbf16>
    %c296_53 = arith.constant 296 : index
    %c0_54 = arith.constant 0 : index
    %74 = vector.load %arg15[%c296_53, %c0_54] : memref<592x128xbf16, #tpu.memory_space<vmem>>, vector<64x128xbf16>
    tpu.vector_store %arg15[%c296_53, %c0_54], %73 {strides = array<i32>} : memref<592x128xbf16, #tpu.memory_space<vmem>>, vector<64x128xbf16>,
    %75 = vector.extract_strided_slice %64 {offsets = [360, 0], sizes = [64, 128], strides = [1, 1]} : vector<576x128xbf16> to vector<64x128xbf16>
    %c368_55 = arith.constant 368 : index
    %c0_56 = arith.constant 0 : index
    %76 = vector.load %arg15[%c368_55, %c0_56] : memref<592x128xbf16, #tpu.memory_space<vmem>>, vector<64x128xbf16>
    tpu.vector_store %arg15[%c368_55, %c0_56], %75 {strides = array<i32>} : memref<592x128xbf16, #tpu.memory_space<vmem>>, vector<64x128xbf16>,
    %77 = vector.extract_strided_slice %64 {offsets = [432, 0], sizes = [64, 128], strides = [1, 1]} : vector<576x128xbf16> to vector<64x128xbf16>
    %c440_57 = arith.constant 440 : index
    %c0_58 = arith.constant 0 : index
    %78 = vector.load %arg15[%c440_57, %c0_58] : memref<592x128xbf16, #tpu.memory_space<vmem>>, vector<64x128xbf16>
    tpu.vector_store %arg15[%c440_57, %c0_58], %77 {strides = array<i32>} : memref<592x128xbf16, #tpu.memory_space<vmem>>, vector<64x128xbf16>,
    %79 = vector.extract_strided_slice %64 {offsets = [504, 0], sizes = [64, 128], strides = [1, 1]} : vector<576x128xbf16> to vector<64x128xbf16>
    %c512_59 = arith.constant 512 : index
    %c0_60 = arith.constant 0 : index
    %80 = vector.load %arg15[%c512_59, %c0_60] : memref<592x128xbf16, #tpu.memory_space<vmem>>, vector<64x128xbf16>
    tpu.vector_store %arg15[%c512_59, %c0_60], %79 {strides = array<i32>} : memref<592x128xbf16, #tpu.memory_space<vmem>>, vector<64x128xbf16>,
    %c7_61 = arith.constant 7 : index
    %c0_62 = arith.constant 0 : index
    %81 = vector.load %arg15[%c7_61, %c0_62] : memref<592x128xbf16, #tpu.memory_space<vmem>>, vector<576x128xbf16>
    %c0_63 = arith.constant 0 : index
    %c0_64 = arith.constant 0 : index
    %c0_65 = arith.constant 0 : index
    %82 = vector.load %arg8[%c0_63, %c0_64, %c0_65] : memref<3x128x128xbf16, #tpu.memory_space<vmem>>, vector<1x128x128xbf16>
    %83 = vector.shape_cast %82 : vector<1x128x128xbf16> to vector<128x128xbf16>
    %cst_66 = arith.constant dense<0.000000e+00> : vector<576x128xf32>
    %84 = tpu.matmul %81, %83, %cst_66 {dimension_numbers = #tpu.dot_dimension_numbers<[1], [0], [0], [1], [0, 0, 1, 1], [], []>} : vector<576x128xbf16>, vector<128x128xbf16>, vector<576x128xf32> -> vector<576x128xf32>
    %c8_67 = arith.constant 8 : index
    %c0_68 = arith.constant 0 : index
    %85 = vector.load %arg15[%c8_67, %c0_68] : memref<592x128xbf16, #tpu.memory_space<vmem>>, vector<576x128xbf16>
    %c1_69 = arith.constant 1 : index
    %c0_70 = arith.constant 0 : index
    %c0_71 = arith.constant 0 : index
    %86 = vector.load %arg8[%c1_69, %c0_70, %c0_71] : memref<3x128x128xbf16, #tpu.memory_space<vmem>>, vector<1x128x128xbf16>
    %87 = vector.shape_cast %86 : vector<1x128x128xbf16> to vector<128x128xbf16>
    %cst_72 = arith.constant dense<0.000000e+00> : vector<576x128xf32>
    %88 = tpu.matmul %85, %87, %cst_72 {dimension_numbers = #tpu.dot_dimension_numbers<[1], [0], [0], [1], [0, 0, 1, 1], [], []>} : vector<576x128xbf16>, vector<128x128xbf16>, vector<576x128xf32> -> vector<576x128xf32>
    %89 = arith.addf %84, %88 : vector<576x128xf32>
    %c9_73 = arith.constant 9 : index
    %c0_74 = arith.constant 0 : index
    %90 = vector.load %arg15[%c9_73, %c0_74] : memref<592x128xbf16, #tpu.memory_space<vmem>>, vector<576x128xbf16>
    %c2_75 = arith.constant 2 : index
    %c0_76 = arith.constant 0 : index
    %c0_77 = arith.constant 0 : index
    %91 = vector.load %arg8[%c2_75, %c0_76, %c0_77] : memref<3x128x128xbf16, #tpu.memory_space<vmem>>, vector<1x128x128xbf16>
    %92 = vector.shape_cast %91 : vector<1x128x128xbf16> to vector<128x128xbf16>
    %cst_78 = arith.constant dense<0.000000e+00> : vector<576x128xf32>
    %93 = tpu.matmul %90, %92, %cst_78 {dimension_numbers = #tpu.dot_dimension_numbers<[1], [0], [0], [1], [0, 0, 1, 1], [], []>} : vector<576x128xbf16>, vector<128x128xbf16>, vector<576x128xf32> -> vector<576x128xf32>
    %94 = arith.addf %89, %93 : vector<576x128xf32>
    %c0_79 = arith.constant 0 : index
    %c0_80 = arith.constant 0 : index
    %95 = vector.load %arg9[%c0_79, %c0_80] : memref<1x128xf32, #tpu.memory_space<vmem>>, vector<1x128xf32>
    %96 = vector.broadcast %95 : vector<1x128xf32> to vector<576x128xf32>
    %97 = arith.mulf %94, %96 : vector<576x128xf32>
    %c0_81 = arith.constant 0 : index
    %c0_82 = arith.constant 0 : index
    %98 = vector.load %arg10[%c0_81, %c0_82] : memref<1x128xf32, #tpu.memory_space<vmem>>, vector<1x128xf32>
    %99 = vector.broadcast %98 : vector<1x128xf32> to vector<576x128xf32>
    %100 = arith.addf %97, %99 : vector<576x128xf32>
    %cst_83 = arith.constant 0.000000e+00 : f32
    %101 = vector.broadcast %cst_83 : f32 to vector<576x128xf32>
    %102 = arith.maximumf %100, %101 : vector<576x128xf32>
    %103 = vector.extract_strided_slice %102 {offsets = [0, 0], sizes = [64, 128], strides = [1, 1]} : vector<576x128xf32> to vector<64x128xf32>
    %cst_84 = arith.constant dense<0.000000e+00> : vector<128xf32>
    %104 = vector.multi_reduction <add>, %103, %cst_84 [0] : vector<64x128xf32> to vector<128xf32>
    %105 = vector.shape_cast %104 : vector<128xf32> to vector<1x128xf32>
    %cst_85 = arith.constant 1.562500e-02 : f32
    %106 = vector.broadcast %cst_85 : f32 to vector<1x128xf32>
    %107 = arith.mulf %105, %106 : vector<1x128xf32>
    %c0_86 = arith.constant 0 : index
    %c0_87 = arith.constant 0 : index
    %108 = vector.load %arg11[%c0_86, %c0_87] : memref<1x128xf32, #tpu.memory_space<vmem>>, vector<1x128xf32>
    %109 = arith.mulf %107, %108 : vector<1x128xf32>
    %cst_88 = arith.constant dense<0.000000e+00> : vector<1xf32>
    %110 = vector.multi_reduction <add>, %109, %cst_88 [1] : vector<1x128xf32> to vector<1xf32>
    %111 = vector.shape_cast %110 : vector<1xf32> to vector<1x1xf32>
    %c0_89 = arith.constant 0 : index
    %c0_90 = arith.constant 0 : index
    %112 = vector.load %arg12[%c0_89, %c0_90] : memref<1x1xf32, #tpu.memory_space<vmem>>, vector<1x1xf32>
    %113 = arith.addf %111, %112 : vector<1x1xf32>
    %114 = vector.shape_cast %113 : vector<1x1xf32> to vector<1x1xf32>
    %115 = vector.broadcast %114 : vector<1x1xf32> to vector<1x128xf32>
    %c0_91 = arith.constant 0 : index
    %c0_92 = arith.constant 0 : index
    %116 = vector.load %arg13[%c0_91, %c0_92] : memref<8x128xf32, #tpu.memory_space<vmem>>, vector<1x128xf32>
    tpu.vector_store %arg13[%c0_91, %c0_92], %115 {strides = array<i32>} : memref<8x128xf32, #tpu.memory_space<vmem>>, vector<1x128xf32>,
    %117 = vector.extract_strided_slice %102 {offsets = [72, 0], sizes = [64, 128], strides = [1, 1]} : vector<576x128xf32> to vector<64x128xf32>
    %cst_93 = arith.constant dense<0.000000e+00> : vector<128xf32>
    %118 = vector.multi_reduction <add>, %117, %cst_93 [0] : vector<64x128xf32> to vector<128xf32>
    %119 = vector.shape_cast %118 : vector<128xf32> to vector<1x128xf32>
    %cst_94 = arith.constant 1.562500e-02 : f32
    %120 = vector.broadcast %cst_94 : f32 to vector<1x128xf32>
    %121 = arith.mulf %119, %120 : vector<1x128xf32>
    %c0_95 = arith.constant 0 : index
    %c0_96 = arith.constant 0 : index
    %122 = vector.load %arg11[%c0_95, %c0_96] : memref<1x128xf32, #tpu.memory_space<vmem>>, vector<1x128xf32>
    %123 = arith.mulf %121, %122 : vector<1x128xf32>
    %cst_97 = arith.constant dense<0.000000e+00> : vector<1xf32>
    %124 = vector.multi_reduction <add>, %123, %cst_97 [1] : vector<1x128xf32> to vector<1xf32>
    %125 = vector.shape_cast %124 : vector<1xf32> to vector<1x1xf32>
    %c0_98 = arith.constant 0 : index
    %c0_99 = arith.constant 0 : index
    %126 = vector.load %arg12[%c0_98, %c0_99] : memref<1x1xf32, #tpu.memory_space<vmem>>, vector<1x1xf32>
    %127 = arith.addf %125, %126 : vector<1x1xf32>
    %128 = vector.shape_cast %127 : vector<1x1xf32> to vector<1x1xf32>
    %129 = vector.broadcast %128 : vector<1x1xf32> to vector<1x128xf32>
    %c1_100 = arith.constant 1 : index
    %c0_101 = arith.constant 0 : index
    %130 = vector.load %arg13[%c1_100, %c0_101] : memref<8x128xf32, #tpu.memory_space<vmem>>, vector<1x128xf32>
    tpu.vector_store %arg13[%c1_100, %c0_101], %129 {strides = array<i32>} : memref<8x128xf32, #tpu.memory_space<vmem>>, vector<1x128xf32>,
    %131 = vector.extract_strided_slice %102 {offsets = [144, 0], sizes = [64, 128], strides = [1, 1]} : vector<576x128xf32> to vector<64x128xf32>
    %cst_102 = arith.constant dense<0.000000e+00> : vector<128xf32>
    %132 = vector.multi_reduction <add>, %131, %cst_102 [0] : vector<64x128xf32> to vector<128xf32>
    %133 = vector.shape_cast %132 : vector<128xf32> to vector<1x128xf32>
    %cst_103 = arith.constant 1.562500e-02 : f32
    %134 = vector.broadcast %cst_103 : f32 to vector<1x128xf32>
    %135 = arith.mulf %133, %134 : vector<1x128xf32>
    %c0_104 = arith.constant 0 : index
    %c0_105 = arith.constant 0 : index
    %136 = vector.load %arg11[%c0_104, %c0_105] : memref<1x128xf32, #tpu.memory_space<vmem>>, vector<1x128xf32>
    %137 = arith.mulf %135, %136 : vector<1x128xf32>
    %cst_106 = arith.constant dense<0.000000e+00> : vector<1xf32>
    %138 = vector.multi_reduction <add>, %137, %cst_106 [1] : vector<1x128xf32> to vector<1xf32>
    %139 = vector.shape_cast %138 : vector<1xf32> to vector<1x1xf32>
    %c0_107 = arith.constant 0 : index
    %c0_108 = arith.constant 0 : index
    %140 = vector.load %arg12[%c0_107, %c0_108] : memref<1x1xf32, #tpu.memory_space<vmem>>, vector<1x1xf32>
    %141 = arith.addf %139, %140 : vector<1x1xf32>
    %142 = vector.shape_cast %141 : vector<1x1xf32> to vector<1x1xf32>
    %143 = vector.broadcast %142 : vector<1x1xf32> to vector<1x128xf32>
    %c2_109 = arith.constant 2 : index
    %c0_110 = arith.constant 0 : index
    %144 = vector.load %arg13[%c2_109, %c0_110] : memref<8x128xf32, #tpu.memory_space<vmem>>, vector<1x128xf32>
    tpu.vector_store %arg13[%c2_109, %c0_110], %143 {strides = array<i32>} : memref<8x128xf32, #tpu.memory_space<vmem>>, vector<1x128xf32>,
    %145 = vector.extract_strided_slice %102 {offsets = [216, 0], sizes = [64, 128], strides = [1, 1]} : vector<576x128xf32> to vector<64x128xf32>
    %cst_111 = arith.constant dense<0.000000e+00> : vector<128xf32>
    %146 = vector.multi_reduction <add>, %145, %cst_111 [0] : vector<64x128xf32> to vector<128xf32>
    %147 = vector.shape_cast %146 : vector<128xf32> to vector<1x128xf32>
    %cst_112 = arith.constant 1.562500e-02 : f32
    %148 = vector.broadcast %cst_112 : f32 to vector<1x128xf32>
    %149 = arith.mulf %147, %148 : vector<1x128xf32>
    %c0_113 = arith.constant 0 : index
    %c0_114 = arith.constant 0 : index
    %150 = vector.load %arg11[%c0_113, %c0_114] : memref<1x128xf32, #tpu.memory_space<vmem>>, vector<1x128xf32>
    %151 = arith.mulf %149, %150 : vector<1x128xf32>
    %cst_115 = arith.constant dense<0.000000e+00> : vector<1xf32>
    %152 = vector.multi_reduction <add>, %151, %cst_115 [1] : vector<1x128xf32> to vector<1xf32>
    %153 = vector.shape_cast %152 : vector<1xf32> to vector<1x1xf32>
    %c0_116 = arith.constant 0 : index
    %c0_117 = arith.constant 0 : index
    %154 = vector.load %arg12[%c0_116, %c0_117] : memref<1x1xf32, #tpu.memory_space<vmem>>, vector<1x1xf32>
    %155 = arith.addf %153, %154 : vector<1x1xf32>
    %156 = vector.shape_cast %155 : vector<1x1xf32> to vector<1x1xf32>
    %157 = vector.broadcast %156 : vector<1x1xf32> to vector<1x128xf32>
    %c3_118 = arith.constant 3 : index
    %c0_119 = arith.constant 0 : index
    %158 = vector.load %arg13[%c3_118, %c0_119] : memref<8x128xf32, #tpu.memory_space<vmem>>, vector<1x128xf32>
    tpu.vector_store %arg13[%c3_118, %c0_119], %157 {strides = array<i32>} : memref<8x128xf32, #tpu.memory_space<vmem>>, vector<1x128xf32>,
    %159 = vector.extract_strided_slice %102 {offsets = [288, 0], sizes = [64, 128], strides = [1, 1]} : vector<576x128xf32> to vector<64x128xf32>
    %cst_120 = arith.constant dense<0.000000e+00> : vector<128xf32>
    %160 = vector.multi_reduction <add>, %159, %cst_120 [0] : vector<64x128xf32> to vector<128xf32>
    %161 = vector.shape_cast %160 : vector<128xf32> to vector<1x128xf32>
    %cst_121 = arith.constant 1.562500e-02 : f32
    %162 = vector.broadcast %cst_121 : f32 to vector<1x128xf32>
    %163 = arith.mulf %161, %162 : vector<1x128xf32>
    %c0_122 = arith.constant 0 : index
    %c0_123 = arith.constant 0 : index
    %164 = vector.load %arg11[%c0_122, %c0_123] : memref<1x128xf32, #tpu.memory_space<vmem>>, vector<1x128xf32>
    %165 = arith.mulf %163, %164 : vector<1x128xf32>
    %cst_124 = arith.constant dense<0.000000e+00> : vector<1xf32>
    %166 = vector.multi_reduction <add>, %165, %cst_124 [1] : vector<1x128xf32> to vector<1xf32>
    %167 = vector.shape_cast %166 : vector<1xf32> to vector<1x1xf32>
    %c0_125 = arith.constant 0 : index
    %c0_126 = arith.constant 0 : index
    %168 = vector.load %arg12[%c0_125, %c0_126] : memref<1x1xf32, #tpu.memory_space<vmem>>, vector<1x1xf32>
    %169 = arith.addf %167, %168 : vector<1x1xf32>
    %170 = vector.shape_cast %169 : vector<1x1xf32> to vector<1x1xf32>
    %171 = vector.broadcast %170 : vector<1x1xf32> to vector<1x128xf32>
    %c4_127 = arith.constant 4 : index
    %c0_128 = arith.constant 0 : index
    %172 = vector.load %arg13[%c4_127, %c0_128] : memref<8x128xf32, #tpu.memory_space<vmem>>, vector<1x128xf32>
    tpu.vector_store %arg13[%c4_127, %c0_128], %171 {strides = array<i32>} : memref<8x128xf32, #tpu.memory_space<vmem>>, vector<1x128xf32>,
    %173 = vector.extract_strided_slice %102 {offsets = [360, 0], sizes = [64, 128], strides = [1, 1]} : vector<576x128xf32> to vector<64x128xf32>
    %cst_129 = arith.constant dense<0.000000e+00> : vector<128xf32>
    %174 = vector.multi_reduction <add>, %173, %cst_129 [0] : vector<64x128xf32> to vector<128xf32>
    %175 = vector.shape_cast %174 : vector<128xf32> to vector<1x128xf32>
    %cst_130 = arith.constant 1.562500e-02 : f32
    %176 = vector.broadcast %cst_130 : f32 to vector<1x128xf32>
    %177 = arith.mulf %175, %176 : vector<1x128xf32>
    %c0_131 = arith.constant 0 : index
    %c0_132 = arith.constant 0 : index
    %178 = vector.load %arg11[%c0_131, %c0_132] : memref<1x128xf32, #tpu.memory_space<vmem>>, vector<1x128xf32>
    %179 = arith.mulf %177, %178 : vector<1x128xf32>
    %cst_133 = arith.constant dense<0.000000e+00> : vector<1xf32>
    %180 = vector.multi_reduction <add>, %179, %cst_133 [1] : vector<1x128xf32> to vector<1xf32>
    %181 = vector.shape_cast %180 : vector<1xf32> to vector<1x1xf32>
    %c0_134 = arith.constant 0 : index
    %c0_135 = arith.constant 0 : index
    %182 = vector.load %arg12[%c0_134, %c0_135] : memref<1x1xf32, #tpu.memory_space<vmem>>, vector<1x1xf32>
    %183 = arith.addf %181, %182 : vector<1x1xf32>
    %184 = vector.shape_cast %183 : vector<1x1xf32> to vector<1x1xf32>
    %185 = vector.broadcast %184 : vector<1x1xf32> to vector<1x128xf32>
    %c5 = arith.constant 5 : index
    %c0_136 = arith.constant 0 : index
    %186 = vector.load %arg13[%c5, %c0_136] : memref<8x128xf32, #tpu.memory_space<vmem>>, vector<1x128xf32>
    tpu.vector_store %arg13[%c5, %c0_136], %185 {strides = array<i32>} : memref<8x128xf32, #tpu.memory_space<vmem>>, vector<1x128xf32>,
    %187 = vector.extract_strided_slice %102 {offsets = [432, 0], sizes = [64, 128], strides = [1, 1]} : vector<576x128xf32> to vector<64x128xf32>
    %cst_137 = arith.constant dense<0.000000e+00> : vector<128xf32>
    %188 = vector.multi_reduction <add>, %187, %cst_137 [0] : vector<64x128xf32> to vector<128xf32>
    %189 = vector.shape_cast %188 : vector<128xf32> to vector<1x128xf32>
    %cst_138 = arith.constant 1.562500e-02 : f32
    %190 = vector.broadcast %cst_138 : f32 to vector<1x128xf32>
    %191 = arith.mulf %189, %190 : vector<1x128xf32>
    %c0_139 = arith.constant 0 : index
    %c0_140 = arith.constant 0 : index
    %192 = vector.load %arg11[%c0_139, %c0_140] : memref<1x128xf32, #tpu.memory_space<vmem>>, vector<1x128xf32>
    %193 = arith.mulf %191, %192 : vector<1x128xf32>
    %cst_141 = arith.constant dense<0.000000e+00> : vector<1xf32>
    %194 = vector.multi_reduction <add>, %193, %cst_141 [1] : vector<1x128xf32> to vector<1xf32>
    %195 = vector.shape_cast %194 : vector<1xf32> to vector<1x1xf32>
    %c0_142 = arith.constant 0 : index
    %c0_143 = arith.constant 0 : index
    %196 = vector.load %arg12[%c0_142, %c0_143] : memref<1x1xf32, #tpu.memory_space<vmem>>, vector<1x1xf32>
    %197 = arith.addf %195, %196 : vector<1x1xf32>
    %198 = vector.shape_cast %197 : vector<1x1xf32> to vector<1x1xf32>
    %199 = vector.broadcast %198 : vector<1x1xf32> to vector<1x128xf32>
    %c6_144 = arith.constant 6 : index
    %c0_145 = arith.constant 0 : index
    %200 = vector.load %arg13[%c6_144, %c0_145] : memref<8x128xf32, #tpu.memory_space<vmem>>, vector<1x128xf32>
    tpu.vector_store %arg13[%c6_144, %c0_145], %199 {strides = array<i32>} : memref<8x128xf32, #tpu.memory_space<vmem>>, vector<1x128xf32>,
    %201 = vector.extract_strided_slice %102 {offsets = [504, 0], sizes = [64, 128], strides = [1, 1]} : vector<576x128xf32> to vector<64x128xf32>
    %cst_146 = arith.constant dense<0.000000e+00> : vector<128xf32>
    %202 = vector.multi_reduction <add>, %201, %cst_146 [0] : vector<64x128xf32> to vector<128xf32>
    %203 = vector.shape_cast %202 : vector<128xf32> to vector<1x128xf32>
    %cst_147 = arith.constant 1.562500e-02 : f32
    %204 = vector.broadcast %cst_147 : f32 to vector<1x128xf32>
    %205 = arith.mulf %203, %204 : vector<1x128xf32>
    %c0_148 = arith.constant 0 : index
    %c0_149 = arith.constant 0 : index
    %206 = vector.load %arg11[%c0_148, %c0_149] : memref<1x128xf32, #tpu.memory_space<vmem>>, vector<1x128xf32>
    %207 = arith.mulf %205, %206 : vector<1x128xf32>
    %cst_150 = arith.constant dense<0.000000e+00> : vector<1xf32>
    %208 = vector.multi_reduction <add>, %207, %cst_150 [1] : vector<1x128xf32> to vector<1xf32>
    %209 = vector.shape_cast %208 : vector<1xf32> to vector<1x1xf32>
    %c0_151 = arith.constant 0 : index
    %c0_152 = arith.constant 0 : index
    %210 = vector.load %arg12[%c0_151, %c0_152] : memref<1x1xf32, #tpu.memory_space<vmem>>, vector<1x1xf32>
    %211 = arith.addf %209, %210 : vector<1x1xf32>
    %212 = vector.shape_cast %211 : vector<1x1xf32> to vector<1x1xf32>
    %213 = vector.broadcast %212 : vector<1x1xf32> to vector<1x128xf32>
    %c7_153 = arith.constant 7 : index
    %c0_154 = arith.constant 0 : index
    %214 = vector.load %arg13[%c7_153, %c0_154] : memref<8x128xf32, #tpu.memory_space<vmem>>, vector<1x128xf32>
    tpu.vector_store %arg13[%c7_153, %c0_154], %213 {strides = array<i32>} : memref<8x128xf32, #tpu.memory_space<vmem>>, vector<1x128xf32>,
    return
  }
  func.func @transform_0(%arg0: i32) -> (i32, i32, i32) {
    %c0_i32 = arith.constant 0 : i32
    %c0_i32_0 = arith.constant 0 : i32
    %c0_i32_1 = arith.constant 0 : i32
    return %arg0, %c0_i32, %c0_i32_0 : i32, i32, i32
  }
  func.func @transform_1(%arg0: i32) -> (i32, i32) {
    %c0_i32 = arith.constant 0 : i32
    %c0_i32_0 = arith.constant 0 : i32
    %c0_i32_1 = arith.constant 0 : i32
    return %c0_i32, %c0_i32_0 : i32, i32
  }
  func.func @transform_2(%arg0: i32) -> (i32, i32) {
    %c0_i32 = arith.constant 0 : i32
    %c0_i32_0 = arith.constant 0 : i32
    %c0_i32_1 = arith.constant 0 : i32
    return %c0_i32, %c0_i32_0 : i32, i32
  }
  func.func @transform_3(%arg0: i32) -> (i32, i32) {
    %c0_i32 = arith.constant 0 : i32
    %c0_i32_0 = arith.constant 0 : i32
    %c0_i32_1 = arith.constant 0 : i32
    return %c0_i32, %c0_i32_0 : i32, i32
  }
  func.func @transform_4(%arg0: i32) -> (i32, i32, i32) {
    %c0_i32 = arith.constant 0 : i32
    %c0_i32_0 = arith.constant 0 : i32
    %c0_i32_1 = arith.constant 0 : i32
    %c0_i32_2 = arith.constant 0 : i32
    return %c0_i32, %c0_i32_0, %c0_i32_1 : i32, i32, i32
  }
  func.func @transform_5(%arg0: i32) -> (i32, i32) {
    %c0_i32 = arith.constant 0 : i32
    %c0_i32_0 = arith.constant 0 : i32
    %c0_i32_1 = arith.constant 0 : i32
    return %c0_i32, %c0_i32_0 : i32, i32
  }
  func.func @transform_6(%arg0: i32) -> (i32, i32) {
    %c0_i32 = arith.constant 0 : i32
    %c0_i32_0 = arith.constant 0 : i32
    %c0_i32_1 = arith.constant 0 : i32
    return %c0_i32, %c0_i32_0 : i32, i32
  }
  func.func @transform_7(%arg0: i32) -> (i32, i32, i32) {
    %c0_i32 = arith.constant 0 : i32
    %c0_i32_0 = arith.constant 0 : i32
    %c0_i32_1 = arith.constant 0 : i32
    %c0_i32_2 = arith.constant 0 : i32
    return %c0_i32, %c0_i32_0, %c0_i32_1 : i32, i32, i32
  }
  func.func @transform_8(%arg0: i32) -> (i32, i32) {
    %c0_i32 = arith.constant 0 : i32
    %c0_i32_0 = arith.constant 0 : i32
    %c0_i32_1 = arith.constant 0 : i32
    return %c0_i32, %c0_i32_0 : i32, i32
  }
  func.func @transform_9(%arg0: i32) -> (i32, i32) {
    %c0_i32 = arith.constant 0 : i32
    %c0_i32_0 = arith.constant 0 : i32
    %c0_i32_1 = arith.constant 0 : i32
    return %c0_i32, %c0_i32_0 : i32, i32
  }
  func.func @transform_10(%arg0: i32) -> (i32, i32) {
    %c0_i32 = arith.constant 0 : i32
    %c0_i32_0 = arith.constant 0 : i32
    %c0_i32_1 = arith.constant 0 : i32
    return %c0_i32, %c0_i32_0 : i32, i32
  }
  func.func @transform_11(%arg0: i32) -> (i32, i32) {
    %c0_i32 = arith.constant 0 : i32
    %c0_i32_0 = arith.constant 0 : i32
    %c0_i32_1 = arith.constant 0 : i32
    return %c0_i32, %c0_i32_0 : i32, i32
  }
  func.func @transform_12(%arg0: i32) -> (i32, i32) {
    %c0_i32 = arith.constant 0 : i32
    %c0_i32_0 = arith.constant 0 : i32
    return %arg0, %c0_i32 : i32, i32
  }
}

</mosaic_0001>

<bundles_post_ra>
// kernel: cnn_classifier_forward.1
= control target key start
LH: loop header
LB: loop body
LE: loop exit
PB: predicated region body
PF: predicated region fallthrough
CT: control target
= control target key end

     0   :  { %s9699_s23 = smov 0   ;;  %s12251_s0 = inlined_call_operand.vmem [shape: bf16[2,576,128], index: 0, kind: input, shape index: {}]   ;;  %s12252_s1 = inlined_call_operand.vmem [shape: bf16[128,128], index: 1, kind: input, shape index: {}]   ;;  %s12253_s2 = inlined_call_operand.vmem [shape: f32[1,128], index: 2, kind: input, shape index: {}]   ;;  %s12254_s3 = inlined_call_operand.vmem [shape: f32[1,128], index: 3, kind: input, shape index: {}]   ;;  %s12255_s4 = inlined_call_operand.vmem [shape: bf16[5,128,128], index: 4, kind: input, shape index: {}]   ;;  %s12256_s5 = inlined_call_operand.vmem [shape: f32[1,128], index: 5, kind: input, shape index: {}]   ;;  %s12257_s6 = inlined_call_operand.vmem [shape: f32[1,128], index: 6, kind: input, shape index: {}]   ;;  %s12258_s7 = inlined_call_operand.vmem [shape: bf16[3,128,128], index: 7, kind: input, shape index: {}]   ;;  %s12259_s8 = inlined_call_operand.vmem [shape: f32[1,128], index: 8, kind: input, shape index: {}]   ;;  %s12260_s9 = inlined_call_operand.vmem [shape: f32[1,128], index: 9, kind: input, shape index: {}]   ;;  %s12261_s10 = inlined_call_operand.vmem [shape: f32[1,128], index: 10, kind: input, shape index: {}]   ;;  %s12262_s11 = inlined_call_operand.<no memory space> [shape: f32[1,1], index: 11, kind: input, shape index: {}]   ;;  %s12263_s12 = inlined_call_operand.vmem [shape: f32[16,128], index: 12, kind: output, shape index: {}]  }
   0x1   :  { %v17_v0 = vstv %s12262_s11 }
   0x2   :  { %18 = vst [vmem:[#allocation4] sm:$0x1] %v17_v0 }
   0x3 LB: > { %s7581_s24 = sadd.s32 4294967295, %s9627_s23   ;;  %p7585_p0 = scmp.ge.s32.totalorder %s9627_s23, 1  ;;  %s9627_s23 = sphi %s9699_s23, %s24_s23  }
   0x4   : > { %p364_p1 = scmp.lt.s32.totalorder %s9627_s23, 3 }
   0x6   : > { %p365_p2 = pnand %p7585_p0, %p364_p1 }
   0x8   : > { %368 = sbr.rel (%p365_p2) target bundleno = 2082 (0x822), region = 68 }
   0xf   : > { %p405_p3 = scmp.lt.s32.totalorder %s7581_s24, 1  ;;  %p7588_p4 = scmp.ne.s32.totalorder %s7581_s24, 0 }
  0x10   : > { %v9629_v1 = vmov (!%p7588_p4), 0  }
  0x11   : > { %s406_s25 = scalar_select %p405_p3, %s7581_s24, 1 }
  0x12   : > { %418 = sbr.rel (%p7588_p4) target bundleno = 45 (0x2d), region = 72  ;;  %419 = vst [vmem:[#allocation2] sm:$0xff] (!%p7588_p4), %v9629_v1  ;;  %420 = vst [vmem:[#allocation2 + $0x8] sm:$0xff] (!%p7588_p4), %v9629_v1 }
  0x13   : > { %s9437_s26 = smul.u32 288, %s406_s25  ;;  %s7587_s11 = sshll.u32 %s406_s25, 3  ;;  %421 = vst [vmem:[#allocation2 + $0x10] sm:$0xff] (!%p7588_p4), %v9629_v1  ;;  %422 = vst [vmem:[#allocation2 + $0x18] sm:$0xff] (!%p7588_p4), %v9629_v1 }
  0x14   : > { %s9710_s29 = scalar_lea.vmem %s12263_s12, %s7587_s11  ;;  %423 = vst [vmem:[#allocation2 + $0x20] sm:$0xff] (!%p7588_p4), %v9629_v1  ;;  %424 = vst [vmem:[#allocation2 + $0x28] sm:$0xff] (!%p7588_p4), %v9629_v1 }
  0x15   : > { %s9715_s14 = scalar_lea.vmem %s12251_s0, %s9437_s26  ;;  %425 = vst [vmem:[#allocation2 + $0x30] sm:$0xff] (!%p7588_p4), %v9629_v1  ;;  %426 = vst [vmem:[#allocation2 + $0x38] sm:$0xff] (!%p7588_p4), %v9629_v1 }
  0x16   : > { %427 = vst [vmem:[#allocation2 + $0x40] sm:$0xff] (!%p7588_p4), %v9629_v1  ;;  %428 = vst [vmem:[#allocation2 + $0x48] sm:$0xff] (!%p7588_p4), %v9629_v1 }
  0x17   : > { %429 = vst [vmem:[#allocation2 + $0x50] sm:$0xff] (!%p7588_p4), %v9629_v1  ;;  %430 = vst [vmem:[#allocation2 + $0x58] sm:$0xff] (!%p7588_p4), %v9629_v1 }
  0x18   : > { %431 = vst [vmem:[#allocation2 + $0x60] sm:$0xff] (!%p7588_p4), %v9629_v1  ;;  %432 = vst [vmem:[#allocation2 + $0x68] sm:$0xff] (!%p7588_p4), %v9629_v1 }
  0x19   : > { %433 = vst [vmem:[#allocation2 + $0x70] sm:$0xff] %v9629_v1  ;;  %434 = vst [vmem:[#allocation2 + $0x78] sm:$0xff] %v9629_v1 }
  0x1a   : > { %435 = vst [vmem:[#allocation2 + $0x80] sm:$0xff] %v9629_v1  ;;  %436 = vst [vmem:[#allocation2 + $0x88] sm:$0xff] %v9629_v1 }
  0x1b   : > { %437 = vst [vmem:[#allocation2 + $0x90] sm:$0xff] %v9629_v1  ;;  %438 = vst [vmem:[#allocation2 + $0x98] sm:$0xff] %v9629_v1 }
  0x1c   : > { %439 = vst [vmem:[#allocation2 + $0xa0] sm:$0xff] %v9629_v1  ;;  %440 = vst [vmem:[#allocation2 + $0xa8] sm:$0xff] %v9629_v1 }
  0x1d   : > { %441 = vst [vmem:[#allocation2 + $0xb0] sm:$0xff] %v9629_v1  ;;  %442 = vst [vmem:[#allocation2 + $0xb8] sm:$0xff] %v9629_v1 }
  0x1e   : > { %443 = vst [vmem:[#allocation2 + $0xc0] sm:$0xff] %v9629_v1  ;;  %444 = vst [vmem:[#allocation2 + $0xc8] sm:$0xff] %v9629_v1 }
  0x1f   : > { %445 = vst [vmem:[#allocation2 + $0xd0] sm:$0xff] %v9629_v1  ;;  %446 = vst [vmem:[#allocation2 + $0xd8] sm:$0xff] %v9629_v1 }
  0x20   : > { %447 = vst [vmem:[#allocation2 + $0xe0] sm:$0xff] %v9629_v1  ;;  %448 = vst [vmem:[#allocation2 + $0xe8] sm:$0xff] %v9629_v1 }
  0x21   : > { %449 = vst [vmem:[#allocation2 + $0xf0] sm:$0xff] %v9629_v1  ;;  %450 = vst [vmem:[#allocation2 + $0xf8] sm:$0xff] %v9629_v1 }
  0x22   : > { %451 = vst [vmem:[#allocation2 + $0x100] sm:$0xff] %v9629_v1  ;;  %452 = vst [vmem:[#allocation2 + $0x108] sm:$0xff] %v9629_v1 }
  0x23   : > { %453 = vst [vmem:[#allocation2 + $0x110] sm:$0xff] %v9629_v1  ;;  %455 = vst [vmem:[#allocation2 + $0x120] sm:$0xff] %v9629_v1 }
  0x24   : > { %456 = vst [vmem:[#allocation3] sm:$0xff] %v9629_v1  ;;  %460 = vst [vmem:[#allocation3 + $0x20] sm:$0xff] %v9629_v1 }
  0x25   : > { %461 = vst [vmem:[#allocation3 + $0x28] sm:$0xff] %v9629_v1  ;;  %462 = vst [vmem:[#allocation3 + $0x30] sm:$0xff] %v9629_v1 }
  0x26   : > { %463 = vst [vmem:[#allocation3 + $0x38] sm:$0xff] %v9629_v1  ;;  %464 = vst [vmem:[#allocation3 + $0x40] sm:$0xff] %v9629_v1 }
  0x27   : > { %465 = vst [vmem:[#allocation3 + $0x48] sm:$0xff] %v9629_v1  ;;  %466 = vst [vmem:[#allocation3 + $0x50] sm:$0xff] %v9629_v1 }
  0x28   : > { %467 = vst [vmem:[#allocation3 + $0x58] sm:$0xff] %v9629_v1  ;;  %468 = vst [vmem:[#allocation3 + $0x60] sm:$0xff] %v9629_v1 }
  0x29   : > { %469 = vst [vmem:[#allocation3 + $0x68] sm:$0xff] %v9629_v1  ;;  %470 = vst [vmem:[#allocation3 + $0x70] sm:$0xff] %v9629_v1 }
  0x2a   : > { %474 = vst [vmem:[#allocation3 + $0x90] sm:$0xff] %v9629_v1  ;;  %478 = vst [vmem:[#allocation3 + $0xb0] sm:$0xff] %v9629_v1 }
  0x2b   : > { %483 = vst [vmem:[#allocation3 + $0xd8] sm:$0xff] %v9629_v1  ;;  %487 = vst [vmem:[#allocation3 + $0xf8] sm:$0xff] %v9629_v1 }
  0x2c   : > { %492 = vst [vmem:[#allocation3 + $0x120] sm:$0xff] %v9629_v1 }
  0x2d PF: > { %v9450_v2 = vld [vmem:[%s12252_s1] sm:$0xff]   ;;  %v9451_v3 = vld [vmem:[%s12252_s1 + $0x8] sm:$0xff]   ;;  %v9452_v4 = vld [vmem:[%s12252_s1 + $0x10] sm:$0xff]   ;;  %vm1436_vm0 = vcmask 1043456   ;;  %vm1676_vm1 = vsmask.f32 4352 }
  0x2e   : > { %8197 = vmatprep.subr.bf16.mxu0 %v9450_v2  ;;  %v9453_v5 = vld [vmem:[%s12252_s1 + $0x18] sm:$0xff]   ;;  %v9458_v6 = vld [vmem:[%s9715_s14] sm:$0xff]   ;;  %v9455_v8 = vld [vmem:[%s12252_s1 + $0x28] sm:$0xff]   ;;  %vm2451_vm2 = vcmask 1044480   ;;  %vm3518_vm3 = vsmask.f32 3328 }
  0x2f   : > { %8198 = vmatpush3.bf16.msra.mxu0 %v9450_v2  ;;  %8213 = vmatprep.mubr.bf16.mxu0 %v9458_v6  ;;  %v9454_v7 = vld [vmem:[%s12252_s1 + $0x20] sm:$0xff]   ;;  %v9456_v9 = vld [vmem:[%s12252_s1 + $0x30] sm:$0xff]   ;;  %v9457_v10 = vld [vmem:[%s12252_s1 + $0x38] sm:$0xff]   ;;  %vm4173_vm4 = vcmask 1042432   ;;  %vm7327_vm5 = vcmask 1040384  }
  0x30   : > { %8199 = vmatprep.subr.bf16.mxu0 %v9451_v3  ;;  %v9459_v11 = vld [vmem:[%s9715_s14 + $0x8] sm:$0xff]   ;;  %v9460_v12 = vld [vmem:[%s9715_s14 + $0x10] sm:$0xff]   ;;  %v9461_v13 = vld [vmem:[%s9715_s14 + $0x18] sm:$0xff]  }
  0x31   : > { %v9462_v14 = vld [vmem:[%s9715_s14 + $0x20] sm:$0xff]   ;;  %v9463_v15 = vld [vmem:[%s9715_s14 + $0x28] sm:$0xff]   ;;  %v9464_v16 = vld [vmem:[%s9715_s14 + $0x30] sm:$0xff]  }
  0x32   : > { %v9465_v17 = vld [vmem:[%s9715_s14 + $0x38] sm:$0xff]   ;;  %v9466_v18 = vld [vmem:[%s9715_s14 + $0x40] sm:$0xff]   ;;  %v9467_v19 = vld [vmem:[%s9715_s14 + $0x48] sm:$0xff]  }
  0x33   : > { %8200 = vmatpush3.bf16.msra.mxu0 %v9451_v3  ;;  %v9468_v20 = vld [vmem:[%s9715_s14 + $0x50] sm:$0xff]   ;;  %v9469_v21 = vld [vmem:[%s9715_s14 + $0x58] sm:$0xff]   ;;  %v9470_v22 = vld [vmem:[%s9715_s14 + $0x60] sm:$0xff]  }
  0x34   : > { %8201 = vmatprep.subr.bf16.mxu0 %v9452_v4  ;;  %v9471_v23 = vld [vmem:[%s9715_s14 + $0x68] sm:$0xff]   ;;  %v9472_v24 = vld [vmem:[%s9715_s14 + $0x70] sm:$0xff]   ;;  %v9473_v25 = vld [vmem:[%s9715_s14 + $0x78] sm:$0xff]  }
  0x35   : > { %v9474_v26 = vld [vmem:[%s9715_s14 + $0x80] sm:$0xff]   ;;  %v9475_v27 = vld [vmem:[%s9715_s14 + $0x88] sm:$0xff]   ;;  %v9476_v28 = vld [vmem:[%s9715_s14 + $0x90] sm:$0xff]  }
  0x36   : > { %v9477_v29 = vld [vmem:[%s9715_s14 + $0x98] sm:$0xff]   ;;  %v9478_v30 = vld [vmem:[%s9715_s14 + $0xa0] sm:$0xff]   ;;  %v9479_v31 = vld [vmem:[%s9715_s14 + $0xa8] sm:$0xff]  }
  0x37   : > { %8202 = vmatpush3.bf16.msra.mxu0 %v9452_v4  ;;  %v9480_v32 = vld [vmem:[%s9715_s14 + $0xb0] sm:$0xff]   ;;  %v9494_v33 = vld [vmem:[%s12255_s4 + $0x40] sm:$0xff]   ;;  %v9495_v34 = vld [vmem:[%s12255_s4 + $0x48] sm:$0xff]  }
  0x38   : > { %8203 = vmatprep.subr.bf16.mxu0 %v9453_v5  ;;  %8989 = vmatprep.subr.bf16.mxu1 %v9494_v33  ;;  %v9481_v35 = vld [vmem:[%s9715_s14 + $0xb8] sm:$0xff]   ;;  %v9482_v36 = vld [vmem:[%s9715_s14 + $0xc0] sm:$0xff]   ;;  %v9496_v37 = vld [vmem:[%s12255_s4 + $0x50] sm:$0xff]  }
  0x39   : > { %8997 = vmatpush3.bf16.msra.mxu1 %v9494_v33  ;;  %v9497_v38 = vld [vmem:[%s12255_s4 + $0x58] sm:$0xff]   ;;  %v9483_v39 = vld [vmem:[%s9715_s14 + $0xc8] sm:$0xff]   ;;  %v9484_v40 = vld [vmem:[%s9715_s14 + $0xd0] sm:$0xff]  }
  0x3a   : > { %8990 = vmatprep.subr.bf16.mxu1 %v9495_v34  ;;  %v9498_v41 = vld [vmem:[%s12255_s4 + $0x60] sm:$0xff]   ;;  %v9499_v42 = vld [vmem:[%s12255_s4 + $0x68] sm:$0xff]   ;;  %v9485_v43 = vld [vmem:[%s9715_s14 + $0xd8] sm:$0xff]  }
  0x3b   : > { %8204 = vmatpush3.bf16.msra.mxu0 %v9453_v5  ;;  %v9486_v44 = vld [vmem:[%s9715_s14 + $0xe0] sm:$0xff]   ;;  %v9500_v45 = vld [vmem:[%s12255_s4 + $0x70] sm:$0xff]   ;;  %v9487_v46 = vld [vmem:[%s9715_s14 + $0xe8] sm:$0xff]  }
  0x3c   : > { %8205 = vmatprep.subr.bf16.mxu0 %v9454_v7  ;;  %v9501_v47 = vld [vmem:[%s12255_s4 + $0x78] sm:$0xff]   ;;  %v9488_v48 = vld [vmem:[%s9715_s14 + $0xf0] sm:$0xff]   ;;  %v9490_v50 = vld [vmem:[%s9715_s14 + $0x100] sm:$0xff]  }
  0x3d   : > { %8998 = vmatpush3.bf16.msra.mxu1 %v9495_v34  ;;  %v9489_v49 = vld [vmem:[%s9715_s14 + $0xf8] sm:$0xff]   ;;  %v9491_v51 = vld [vmem:[%s9715_s14 + $0x108] sm:$0xff]   ;;  %v9492_v52 = vld [vmem:[%s9715_s14 + $0x110] sm:$0xff]  }
  0x3e   : > { %8991 = vmatprep.subr.bf16.mxu1 %v9496_v37  ;;  %v9493_v53 = vld [vmem:[%s9715_s14 + $0x118] sm:$0xff]   ;;  %v9804_v54 = vld [vmem:[%s12255_s4] sm:$0xff]  }
  0x3f   : > { %8206 = vmatpush3.bf16.msra.mxu0 %v9454_v7  ;;  %v9810_v55 = vld [vmem:[%s12253_s2] ss:$0 sm:$0xff] }
  0x40   : > { %8207 = vmatprep.subr.bf16.mxu0 %v9455_v8  ;;  %v9815_v57 = vld [vmem:[%s12254_s3] ss:$0 sm:$0xff] }
  0x41   : > { %8999 = vmatpush3.bf16.msra.mxu1 %v9496_v37 }
  0x42   : > { %8992 = vmatprep.subr.bf16.mxu1 %v9497_v38 }
  0x43   : > { %8208 = vmatpush3.bf16.msra.mxu0 %v9455_v8 }
  0x44   : > { %8209 = vmatprep.subr.bf16.mxu0 %v9456_v9 }
  0x45   : > { %9000 = vmatpush3.bf16.msra.mxu1 %v9497_v38 }
  0x46   : > { %8993 = vmatprep.subr.bf16.mxu1 %v9498_v41 }
  0x47   : > { %8210 = vmatpush3.bf16.msra.mxu0 %v9456_v9 }
  0x48   : > { %8211 = vmatprep.subr.bf16.mxu0 %v9457_v10 }
  0x49   : > { %9001 = vmatpush3.bf16.msra.mxu1 %v9498_v41 }
  0x4a   : > { %8994 = vmatprep.subr.bf16.mxu1 %v9499_v42 }
  0x4b   : > { %8212 = vmatpush3.bf16.msra.mxu0 %v9457_v10 }
  0x4c   : > { %8285 = vmatprep.subr.bf16.mxu0 %v9494_v33 }
  0x4d   : > { %9002 = vmatpush3.bf16.msra.mxu1 %v9499_v42 }
  0x4e   : > { %8214 = vmatmul.mubr.bf16.vlgmr.msra.gmra.mrb[0].mxu0 %v9459_v11  ;;  %8995 = vmatprep.subr.bf16.mxu1 %v9500_v45 }
  0x4f   : > { %8217 = vmatprep.mubr.bf16.mxu0 %v9460_v12  ;;  %8286 = vmatpush3.bf16.msra.mxu0 %v9494_v33 }
  0x50   : > { %8287 = vmatprep.subr.bf16.mxu0 %v9495_v34 }
  0x51   : > { %9003 = vmatpush3.bf16.msra.mxu1 %v9500_v45 }
  0x52   : > { %8996 = vmatprep.subr.bf16.mxu1 %v9501_v47 }
  0x53   : > { %8288 = vmatpush3.bf16.msra.mxu0 %v9495_v34 }
  0x54   : > { %8289 = vmatprep.subr.bf16.mxu0 %v9496_v37 }
  0x55   : > { %9004 = vmatpush3.bf16.msra.mxu1 %v9501_v47 }
  0x56   : > { %8218 = vmatmul.mubr.bf16.gmra.mrb[4].mxu0 %v9461_v13  ;;  %8373 = vmatprep.subr.bf16.mxu1 %v9804_v54 }
  0x57   : > { %8221 = vmatprep.mubr.bf16.mxu0 %v9462_v14  ;;  %8290 = vmatpush3.bf16.msra.mxu0 %v9496_v37 }
  0x58   : > { %8291 = vmatprep.subr.bf16.mxu0 %v9497_v38 }
  0x5b   : > { %8292 = vmatpush3.bf16.msra.mxu0 %v9497_v38 }
  0x5c   : > { %8293 = vmatprep.subr.bf16.mxu0 %v9498_v41 }
  0x5e   : > { %8222 = vmatmul.mubr.bf16.gmra.mrb[8].mxu0 %v9463_v15 }
  0x5f   : > { %8225 = vmatprep.mubr.bf16.mxu0 %v9464_v16  ;;  %8294 = vmatpush3.bf16.msra.mxu0 %v9498_v41 }
  0x60   : > { %8295 = vmatprep.subr.bf16.mxu0 %v9499_v42 }
  0x63   : > { %8296 = vmatpush3.bf16.msra.mxu0 %v9499_v42 }
  0x64   : > { %8297 = vmatprep.subr.bf16.mxu0 %v9500_v45 }
  0x66   : > { %8226 = vmatmul.mubr.bf16.gmra.mrb[12].mxu0 %v9465_v17 }
  0x67   : > { %8229 = vmatprep.mubr.bf16.mxu0 %v9466_v18  ;;  %8298 = vmatpush3.bf16.msra.mxu0 %v9500_v45 }
  0x68   : > { %8299 = vmatprep.subr.bf16.mxu0 %v9501_v47 }
  0x6b   : > { %8300 = vmatpush3.bf16.msra.mxu0 %v9501_v47 }
  0x6e   : > { %8230 = vmatmul.mubr.bf16.gmra.mrb[16].mxu0 %v9467_v19 }
  0x6f   : > { %8233 = vmatprep.mubr.bf16.mxu0 %v9468_v20 }
  0x76   : > { %8234 = vmatmul.mubr.bf16.gmra.mrb[20].mxu0 %v9469_v21 }
  0x77   : > { %8237 = vmatprep.mubr.bf16.mxu0 %v9470_v22 }
  0x7e   : > { %8238 = vmatmul.mubr.bf16.gmra.mrb[24].mxu0 %v9471_v23 }
  0x7f   : > { %8241 = vmatprep.mubr.bf16.mxu0 %v9472_v24 }
  0x86   : > { %8242 = vmatmul.mubr.bf16.gmra.mrb[28].mxu0 %v9473_v25 }
  0x87   : > { %8245 = vmatprep.mubr.bf16.mxu0 %v9474_v26 }
  0x8e   : > { %8246 = vmatmul.mubr.bf16.gmra.mrb[32].mxu0 %v9475_v27 }
  0x8f   : > { %8249 = vmatprep.mubr.bf16.mxu0 %v9476_v28 }
  0x96   : > { %8250 = vmatmul.mubr.bf16.gmra.mrb[36].mxu0 %v9477_v29 }
  0x97   : > { %8253 = vmatprep.mubr.bf16.mxu0 %v9478_v30 }
  0x9e   : > { %8254 = vmatmul.mubr.bf16.gmra.mrb[40].mxu0 %v9479_v31 }
  0x9f   : > { %8257 = vmatprep.mubr.bf16.mxu0 %v9480_v32 }
  0xa6   : > { %8258 = vmatmul.mubr.bf16.gmra.mrb[44].mxu0 %v9481_v35 }
  0xa7   : > { %8261 = vmatprep.mubr.bf16.mxu0 %v9482_v36 }
  0xae   : > { %8262 = vmatmul.mubr.bf16.gmra.mrb[48].mxu0 %v9483_v39 }
  0xaf   : > { %8265 = vmatprep.mubr.bf16.mxu0 %v9484_v40 }
  0xb6   : > { %8266 = vmatmul.mubr.bf16.gmra.mrb[52].mxu0 %v9485_v43 }
  0xb7   : > { %8269 = vmatprep.mubr.bf16.mxu0 %v9486_v44 }
  0xbe   : > { %8270 = vmatmul.mubr.bf16.gmra.mrb[56].mxu0 %v9487_v46 }
  0xbf   : > { %8273 = vmatprep.mubr.bf16.mxu0 %v9488_v48 }
  0xc6   : > { %8274 = vmatmul.mubr.bf16.gmra.mrb[60].mxu0 %v9489_v49 }
  0xc7   : > { %8277 = vmatprep.mubr.bf16.mxu0 %v9490_v50 }
  0xce   : > { %8278 = vmatmul.mubr.bf16.gmra.mrb[64].mxu0 %v9491_v51 }
  0xcf   : > { %8281 = vmatprep.mubr.bf16.mxu0 %v9492_v52 }
  0xd6   : > { %8282 = vmatmul.mubr.bf16.gmra.mrb[68].mxu0 %v9493_v53 }
 0x121   : > { %v8215_v56 = vpop.f32.mrb[0].mxu0 }
 0x122   : > { %v1175_v58 = vmul.f32 %v8215_v56, %v9810_v55  ;;  %v879_v59 = vpop.f32.mrb[1].mxu0 }
 0x123   : > { %v1173_v60 = vmul.f32 %v9810_v55, %v879_v59  ;;  %v8216_v61 = vpop.f32.mrb[2].mxu0 }
 0x124   : > { %v1254_v62 = vadd.f32 %v9815_v57, %v1175_v58  ;;  %v1176_v63 = vmul.f32 %v8216_v61, %v9810_v55  ;;  %v882_v0 = vpop.f32.mrb[3].mxu0 }
 0x125   : > { %v1252_v1 = vadd.f32 %v9815_v57, %v1173_v60  ;;  %v1174_v2 = vmul.f32 %v9810_v55, %v882_v0 }
 0x126   : > { %v1255_v3 = vadd.f32 %v9815_v57, %v1176_v63  ;;  %v1326_v5 = vmax.f32 %v1254_v62, 0.0 }
 0x127   : > { %v1253_v4 = vadd.f32 %v9815_v57, %v1174_v2  ;;  %v1324_v7 = vmax.f32 %v1252_v1, 0.0 }
 0x128   : > { %v1327_v6 = vmax.f32 %v1255_v3, 0.0 }
 0x129   : > { %v1325_v8 = vmax.f32 %v1253_v4, 0.0  ;;  %v8219_v9 = vpop.f32.mrb[4].mxu0 }
 0x12a   : > { %v1397_v10 = vpack.c.bf16 %v1327_v6, %v1326_v5  ;;  %v1179_v11 = vmul.f32 %v8219_v9, %v9810_v55  ;;  %v895_v12 = vpop.f32.mrb[5].mxu0 }
 0x12b   : > { %v1396_v13 = vpack.c.bf16 %v1325_v8, %v1324_v7  ;;  %v1177_v14 = vmul.f32 %v9810_v55, %v895_v12  ;;  %v8220_v15 = vpop.f32.mrb[6].mxu0 }
 0x12c   : > { %v1438_v16 = vrot.slane %v1397_v10, 4  ;;  %v1258_v17 = vadd.f32 %v9815_v57, %v1179_v11  ;;  %v1180_v18 = vmul.f32 %v8220_v15, %v9810_v55  ;;  %v898_v19 = vpop.f32.mrb[7].mxu0 }
 0x12d   : > { %v1437_v20 = vrot.slane %v1396_v13, 4  ;;  %v1256_v21 = vadd.f32 %v9815_v57, %v1177_v14  ;;  %v1178_v22 = vmul.f32 %v9810_v55, %v898_v19 }
 0x12e   : > { %v1259_v23 = vadd.f32 %v9815_v57, %v1180_v18  ;;  %v1330_v26 = vmax.f32 %v1258_v17, 0.0 }
 0x12f   : > { %v9833_v24 = vsel %vm1436_vm0, %v1437_v20, %v1438_v16  ;;  %1449 = vst [vmem:[#allocation2] sm:$0xf0] %v1437_v20  ;;  %v1257_v25 = vadd.f32 %v9815_v57, %v1178_v22  ;;  %v1328_v30 = vmax.f32 %v1256_v21, 0.0 }
 0x130   : > { %1450 = vst [vmem:[#allocation2 + $0x8] sm:$0xff] %v9833_v24  ;;  %v1331_v27 = vmax.f32 %v1259_v23, 0.0  ;;  %v12329_v28 = vshrl.u32 %v9833_v24, 16  ;;  %v12328_v29 = vshll.u32 %v9833_v24, 16 }
 0x131   : > { %v1329_v31 = vmax.f32 %v1257_v25, 0.0  ;;  %v8223_v32 = vpop.f32.mrb[8].mxu0 }
 0x132   : > { %v1399_v33 = vpack.c.bf16 %v1331_v27, %v1330_v26  ;;  %v1183_v34 = vmul.f32 %v8223_v32, %v9810_v55  ;;  %v911_v35 = vpop.f32.mrb[9].mxu0  ;;  %v1688_v36 = vrot.slane %v12329_v28, 3  ;;  %v1691_v37 = vrot.slane %v12328_v29, 4 }
 0x133   : > { %v1398_v38 = vpack.c.bf16 %v1329_v31, %v1328_v30  ;;  %v1181_v39 = vmul.f32 %v9810_v55, %v911_v35  ;;  %v8224_v40 = vpop.f32.mrb[10].mxu0 }
 0x134   : > { %v1442_v41 = vrot.slane %v1399_v33, 4  ;;  %v1262_v42 = vadd.f32 %v9815_v57, %v1183_v34  ;;  %v1184_v43 = vmul.f32 %v8224_v40, %v9810_v55  ;;  %v914_v44 = vpop.f32.mrb[11].mxu0  ;;  %v1692_v51 = vor.u32 %v1691_v37, %v1688_v36 }
 0x135   : > { %v1440_v45 = vrot.slane %v1398_v38, 4  ;;  %v1260_v46 = vadd.f32 %v9815_v57, %v1181_v39  ;;  %v1182_v47 = vmul.f32 %v9810_v55, %v914_v44 }
 0x136   : > { %1453 = vst [vmem:[#allocation2 + $0x20] sm:$0xf] %v1442_v41  ;;  %v1334_v48 = vmax.f32 %v1262_v42, 0.0  ;;  %v1263_v49 = vadd.f32 %v9815_v57, %v1184_v43  ;;  %v1605_v50 = vld [vmem:[#allocation2] sm:$0xf8] }
 0x137   : > { %v9851_v52 = vsel %vm1436_vm0, %v1438_v16, %v1440_v45  ;;  %v9854_v53 = vsel %vm1436_vm0, %v1440_v45, %v1442_v41  ;;  %v1332_v56 = vmax.f32 %v1260_v46, 0.0  ;;  %v1261_v58 = vadd.f32 %v9815_v57, %v1182_v47 }
 0x138   : > { %1451 = vst [vmem:[#allocation2 + $0x10] sm:$0xff] %v9851_v52  ;;  %1452 = vst [vmem:[#allocation2 + $0x18] sm:$0xff] %v9854_v53  ;;  %v1335_v59 = vmax.f32 %v1263_v49, 0.0  ;;  %v1678_v60 = vshrl.u32 %v1605_v50, 16  ;;  %v1681_v61 = vshll.u32 %v1605_v50, 16  ;;  %v12327_v62 = vshrl.u32 %v9851_v52, 16 }
 0x139   : > { %v1333_v63 = vmax.f32 %v1261_v58, 0.0  ;;  %v8227_v0 = vpop.f32.mrb[12].mxu0  ;;  %v12326_v1 = vshll.u32 %v9851_v52, 16  ;;  %v12325_v2 = vshrl.u32 %v9854_v53, 16  ;;  %v12324_v3 = vshll.u32 %v9854_v53, 16 }
 0x13a   : > { %v9863_v4 = vpack.c.bf16 %v1335_v59, %v1334_v48  ;;  %v1187_v5 = vmul.f32 %v8227_v0, %v9810_v55  ;;  %v927_v6 = vpop.f32.mrb[13].mxu0  ;;  %v1680_v7 = vrot.slane %v1678_v60, 3  ;;  %v1683_v8 = vrot.slane %v1681_v61, 4 }
 0x13b   : > { %v1400_v9 = vpack.c.bf16 %v1333_v63, %v1332_v56  ;;  %v1185_v10 = vmul.f32 %v9810_v55, %v927_v6  ;;  %v8228_v11 = vpop.f32.mrb[14].mxu0  ;;  %v1697_v12 = vrot.slane %v12327_v62, 3  ;;  %v1700_v13 = vrot.slane %v12326_v1, 4 }
 0x13c   : > { %v1460_v14 = vrot.slane %v9863_v4, 4  ;;  %v1266_v15 = vadd.f32 %v9815_v57, %v1187_v5  ;;  %v1188_v16 = vmul.f32 %v8228_v11, %v9810_v55  ;;  %v930_v17 = vpop.f32.mrb[15].mxu0  ;;  %v1684_v18 = vor.u32 %v1683_v8, %v1680_v7 }
 0x13d   : > { %v1459_v19 = vrot.slane %v1400_v9, 4  ;;  %v1264_v20 = vadd.f32 %v9815_v57, %v1185_v10  ;;  %v1186_v21 = vmul.f32 %v9810_v55, %v930_v17  ;;  %v1701_v22 = vor.u32 %v1700_v13, %v1697_v12  ;;  %v9876_v23 = vld [vmem:[#allocation2 + $0x20] sm:$0xff] }
 0x13e   : > { %v1267_v25 = vadd.f32 %v9815_v57, %v1188_v16  ;;  %v1693_v26 = vsel %vm1676_vm1, %v1684_v18, %v1692_v51  ;;  %v1706_v27 = vrot.slane %v12325_v2, 3  ;;  %v1338_v31 = vmax.f32 %v1266_v15, 0.0 }
 0x13f   : > { %v9883_v30 = vsel %vm1436_vm0, %v1459_v19, %v1460_v14  ;;  %v1265_v32 = vadd.f32 %v9815_v57, %v1186_v21  ;;  %8301 = vmatprep.mubr.bf16.mxu0 %v1693_v26  ;;  %v1702_v33 = vsel %vm1676_vm1, %v1692_v51, %v1701_v22  ;;  %v1709_v35 = vrot.slane %v12324_v3, 4 }
 0x140   : > { %1472 = vst [vmem:[#allocation2 + $0x28] sm:$0xff] %v9883_v30  ;;  %v1339_v34 = vmax.f32 %v1267_v25, 0.0  ;;  %8302 = vmatmul.mubr.bf16.vlgmr.msra.gmra.mrb[72].mxu0 %v1702_v33  ;;  %v12323_v36 = vshrl.u32 %v9876_v23, 16  ;;  %v12312_v37 = vshll.u32 %v9876_v23, 16  ;;  %v1336_v38 = vmax.f32 %v1264_v20, 0.0 }
 0x141   : > { %v1337_v39 = vmax.f32 %v1265_v32, 0.0  ;;  %v8231_v40 = vpop.f32.mrb[16].mxu0  ;;  %v12311_v41 = vshrl.u32 %v9883_v30, 16  ;;  %v12307_v42 = vshll.u32 %v9883_v30, 16  ;;  %v1710_v46 = vor.u32 %v1709_v35, %v1706_v27 }
 0x142   : > { %v9894_v43 = vpack.c.bf16 %v1339_v34, %v1338_v31  ;;  %v1191_v44 = vmul.f32 %v8231_v40, %v9810_v55  ;;  %v943_v45 = vpop.f32.mrb[17].mxu0  ;;  %v1715_v47 = vrot.slane %v12323_v36, 3  ;;  %v1718_v51 = vrot.slane %v12312_v37, 4  ;;  %v10401_v36 = vld [vmem:[#allocation2 + $0x8] sm:$0xff] }
 0x143   : > { %v1402_v48 = vpack.c.bf16 %v1337_v39, %v1336_v38  ;;  %v1189_v49 = vmul.f32 %v9810_v55, %v943_v45  ;;  %v8232_v50 = vpop.f32.mrb[18].mxu0  ;;  %v1724_v56 = vrot.slane %v12311_v41, 3  ;;  %v1711_v63 = vsel %vm1676_vm1, %v1701_v22, %v1710_v46 }
 0x144   : > { %v1464_v58 = vrot.slane %v9894_v43, 4  ;;  %v1270_v59 = vadd.f32 %v9815_v57, %v1191_v44  ;;  %v1192_v60 = vmul.f32 %v8232_v50, %v9810_v55  ;;  %v946_v61 = vpop.f32.mrb[19].mxu0  ;;  %8305 = vmatprep.mubr.bf16.mxu0 %v1711_v63  ;;  %v1719_v6 = vor.u32 %v1718_v51, %v1715_v47 }
 0x145   : > { %v1462_v0 = vrot.slane %v1402_v48, 4  ;;  %v1268_v4 = vadd.f32 %v9815_v57, %v1189_v49  ;;  %v1190_v5 = vmul.f32 %v9810_v55, %v946_v61  ;;  %v1727_v9 = vrot.slane %v12307_v42, 4 }
 0x146   : > { %v1342_v7 = vmax.f32 %v1270_v59, 0.0  ;;  %v1271_v8 = vadd.f32 %v9815_v57, %v1192_v60  ;;  %v1720_v16 = vsel %vm1676_vm1, %v1710_v46, %v1719_v6 }
 0x147   : > { %v9914_v10 = vsel %vm1436_vm0, %v1460_v14, %v1462_v0  ;;  %v9917_v11 = vsel %vm1436_vm0, %v1462_v0, %v1464_v58  ;;  %v1340_v12 = vmax.f32 %v1268_v4, 0.0  ;;  %v1269_v13 = vadd.f32 %v9815_v57, %v1190_v5 }
 0x148   : > { %1473 = vst [vmem:[#allocation2 + $0x30] sm:$0xff] %v9914_v10  ;;  %1474 = vst [vmem:[#allocation2 + $0x38] sm:$0xff] %v9917_v11  ;;  %v1343_v15 = vmax.f32 %v1271_v8, 0.0  ;;  %v1728_v17 = vor.u32 %v1727_v9, %v1724_v56  ;;  %v12306_v18 = vshrl.u32 %v9914_v10, 16  ;;  %8306 = vmatmul.mubr.bf16.gmra.mrb[76].mxu0 %v1720_v16  ;;  %v12305_v14 = vshll.u32 %v9914_v10, 16 }
 0x149   : > { %v1341_v19 = vmax.f32 %v1269_v13, 0.0  ;;  %v8235_v20 = vpop.f32.mrb[20].mxu0  ;;  %v12300_v21 = vshrl.u32 %v9917_v11, 16  ;;  %v12299_v22 = vshll.u32 %v9917_v11, 16 }
 0x14a   : > { %v1405_v25 = vpack.c.bf16 %v1343_v15, %v1342_v7  ;;  %v1195_v26 = vmul.f32 %v8235_v20, %v9810_v55  ;;  %v959_v27 = vpop.f32.mrb[21].mxu0  ;;  %v1729_v31 = vsel %vm1676_vm1, %v1719_v6, %v1728_v17  ;;  %v1733_v32 = vrot.slane %v12306_v18, 3 }
 0x14b   : > { %v1404_v33 = vpack.c.bf16 %v1341_v19, %v1340_v12  ;;  %v1193_v34 = vmul.f32 %v9810_v55, %v959_v27  ;;  %v8236_v35 = vpop.f32.mrb[22].mxu0  ;;  %8309 = vmatprep.mubr.bf16.mxu0 %v1729_v31  ;;  %v1736_v38 = vrot.slane %v12305_v14, 4  ;;  %v1742_v39 = vrot.slane %v12300_v21, 3 }
 0x14c   : > { %v1480_v40 = vrot.slane %v1405_v25, 4  ;;  %v1274_v43 = vadd.f32 %v9815_v57, %v1195_v26  ;;  %v1196_v44 = vmul.f32 %v8236_v35, %v9810_v55  ;;  %v962_v45 = vpop.f32.mrb[23].mxu0  ;;  %v1745_v46 = vrot.slane %v12299_v22, 4 }
 0x14d   : > { %v1466_v47 = vrot.slane %v1404_v33, 4  ;;  %v1272_v48 = vadd.f32 %v9815_v57, %v1193_v34  ;;  %v1194_v49 = vmul.f32 %v9810_v55, %v962_v45  ;;  %v1737_v50 = vor.u32 %v1736_v38, %v1733_v32 }
 0x14e   : > { %1492 = vst [vmem:[#allocation2 + $0x48] sm:$0xf0] %v1480_v40  ;;  %v1275_v51 = vadd.f32 %v9815_v57, %v1196_v44  ;;  %v1746_v56 = vor.u32 %v1745_v46, %v1742_v39  ;;  %v1346_v60 = vmax.f32 %v1274_v43, 0.0 }
 0x14f   : > { %v9944_v59 = vsel %vm1436_vm0, %v1464_v58, %v1466_v47  ;;  %v1273_v61 = vadd.f32 %v9815_v57, %v1194_v49  ;;  %v1738_v63 = vsel %vm1676_vm1, %v1728_v17, %v1737_v50  ;;  %v1344_v7 = vmax.f32 %v1272_v48, 0.0 }
 0x150   : > { %1475 = vst [vmem:[#allocation2 + $0x40] sm:$0xff] %v9944_v59  ;;  %v1347_v0 = vmax.f32 %v1275_v51, 0.0  ;;  %v1747_v4 = vsel %vm1676_vm1, %v1737_v50, %v1746_v56  ;;  %v12288_v5 = vshrl.u32 %v9944_v59, 16  ;;  %v12285_v6 = vshll.u32 %v9944_v59, 16  ;;  %8310 = vmatmul.mubr.bf16.gmra.mrb[80].mxu0 %v1738_v63 }
 0x151   : > { %v1345_v8 = vmax.f32 %v1273_v61, 0.0  ;;  %v8239_v9 = vpop.f32.mrb[24].mxu0  ;;  %8313 = vmatprep.mubr.bf16.mxu0 %v1747_v4 }
 0x152   : > { %v1407_v58 = vpack.c.bf16 %v1347_v0, %v1346_v60  ;;  %v1199_v12 = vmul.f32 %v8239_v9, %v9810_v55  ;;  %v975_v13 = vpop.f32.mrb[25].mxu0  ;;  %v1751_v15 = vrot.slane %v12288_v5, 3  ;;  %v1754_v16 = vrot.slane %v12285_v6, 4 }
 0x153   : > { %v1406_v17 = vpack.c.bf16 %v1345_v8, %v1344_v7  ;;  %v1197_v19 = vmul.f32 %v9810_v55, %v975_v13  ;;  %v8240_v20 = vpop.f32.mrb[26].mxu0 }
 0x154   : > { %v1483_v25 = vrot.slane %v1407_v58, 4  ;;  %v1278_v26 = vadd.f32 %v9815_v57, %v1199_v12  ;;  %v1200_v27 = vmul.f32 %v8240_v20, %v9810_v55  ;;  %v978_v31 = vpop.f32.mrb[27].mxu0  ;;  %v1755_v32 = vor.u32 %v1754_v16, %v1751_v15 }
 0x155   : > { %v1481_v33 = vrot.slane %v1406_v17, 4  ;;  %v1276_v34 = vadd.f32 %v9815_v57, %v1197_v19  ;;  %v1198_v35 = vmul.f32 %v9810_v55, %v978_v31  ;;  %v9962_v38 = vld [vmem:[#allocation2 + $0x48] sm:$0xff] }
 0x156   : > { %v1350_v39 = vmax.f32 %v1278_v26, 0.0  ;;  %v1279_v43 = vadd.f32 %v9815_v57, %v1200_v27  ;;  %v1756_v44 = vsel %vm1676_vm1, %v1746_v56, %v1755_v32  ;;  %v12284_v45 = vshrl.u32 %v9962_v38, 16 }
 0x157   : > { %v9968_v46 = vsel %vm1436_vm0, %v1480_v40, %v1481_v33  ;;  %v9971_v47 = vsel %vm1436_vm0, %v1481_v33, %v1483_v25  ;;  %v1348_v48 = vmax.f32 %v1276_v34, 0.0  ;;  %v1277_v49 = vadd.f32 %v9815_v57, %v1198_v35 }
 0x158   : > { %1493 = vst [vmem:[#allocation2 + $0x50] sm:$0xff] %v9968_v46  ;;  %1494 = vst [vmem:[#allocation2 + $0x58] sm:$0xff] %v9971_v47  ;;  %v1351_v50 = vmax.f32 %v1279_v43, 0.0  ;;  %v1760_v51 = vrot.slane %v12284_v45, 3  ;;  %v12282_v56 = vshll.u32 %v9962_v38, 16  ;;  %v12281_v60 = vshrl.u32 %v9968_v46, 16  ;;  %8314 = vmatmul.mubr.bf16.gmra.mrb[84].mxu0 %v1756_v44 }
 0x159   : > { %v1349_v40 = vmax.f32 %v1277_v49, 0.0  ;;  %v8243_v61 = vpop.f32.mrb[28].mxu0  ;;  %v12280_v63 = vshll.u32 %v9968_v46, 16  ;;  %v12273_v0 = vshrl.u32 %v9971_v47, 16  ;;  %v12268_v4 = vshll.u32 %v9971_v47, 16 }
 0x15a   : > { %v1409_v7 = vpack.c.bf16 %v1351_v50, %v1350_v39  ;;  %v1203_v8 = vmul.f32 %v8243_v61, %v9810_v55  ;;  %v991_v9 = vpop.f32.mrb[29].mxu0  ;;  %v1763_v58 = vrot.slane %v12282_v56, 4  ;;  %v1769_v12 = vrot.slane %v12281_v60, 3 }
 0x15b   : > { %v1408_v13 = vpack.c.bf16 %v1349_v40, %v1348_v48  ;;  %v1201_v15 = vmul.f32 %v9810_v55, %v991_v9  ;;  %v8244_v16 = vpop.f32.mrb[30].mxu0  ;;  %v1772_v17 = vrot.slane %v12280_v63, 4  ;;  %v1778_v31 = vrot.slane %v12273_v0, 3 }
 0x15c   : > { %v1282_v19 = vadd.f32 %v9815_v57, %v1203_v8  ;;  %v1204_v20 = vmul.f32 %v8244_v16, %v9810_v55  ;;  %v994_v26 = vpop.f32.mrb[31].mxu0  ;;  %v1764_v27 = vor.u32 %v1763_v58, %v1760_v51  ;;  %v1781_v48 = vrot.slane %v12268_v4, 4 }
 0x15d   : > { %v1485_v33 = vrot.slane %v1408_v13, 4  ;;  %v1280_v34 = vadd.f32 %v9815_v57, %v1201_v15  ;;  %v1202_v35 = vmul.f32 %v9810_v55, %v994_v26  ;;  %v1773_v39 = vor.u32 %v1772_v17, %v1769_v12 }
 0x15e   : > { %v1283_v43 = vadd.f32 %v9815_v57, %v1204_v20  ;;  %v1765_v44 = vsel %vm1676_vm1, %v1755_v32, %v1764_v27  ;;  %v1354_v50 = vmax.f32 %v1282_v19, 0.0  ;;  %v1782_v8 = vor.u32 %v1781_v48, %v1778_v31 }
 0x15f   : > { %v10002_v49 = vsel %vm1436_vm0, %v1483_v25, %v1485_v33  ;;  %1496 = vst [vmem:[#allocation2 + $0x68] sm:$0xf] %v1485_v33  ;;  %v1281_v51 = vadd.f32 %v9815_v57, %v1202_v35  ;;  %8317 = vmatprep.mubr.bf16.mxu0 %v1765_v44  ;;  %v1774_v40 = vsel %vm1676_vm1, %v1764_v27, %v1773_v39  ;;  %v1352_v58 = vmax.f32 %v1280_v34, 0.0  ;;  %v10468_v2 = vld [vmem:[#allocation2 + $0x58] sm:$0xff] }
 0x160   : > { %1495 = vst [vmem:[#allocation2 + $0x60] sm:$0xff] %v10002_v49  ;;  %v1355_v61 = vmax.f32 %v1283_v43, 0.0  ;;  %v12266_v9 = vshrl.u32 %v10002_v49, 16  ;;  %v12264_v32 = vshll.u32 %v10002_v49, 16  ;;  %8318 = vmatmul.mubr.bf16.gmra.mrb[88].mxu0 %v1774_v40  ;;  %v1783_v17 = vsel %vm1676_vm1, %v1773_v39, %v1782_v8 }
 0x161   : > { %v1353_v12 = vmax.f32 %v1281_v51, 0.0  ;;  %v8247_v13 = vpop.f32.mrb[32].mxu0  ;;  %8321 = vmatprep.mubr.bf16.mxu0 %v1783_v17  ;;  %v1502_v33 = vrot.slane %v1409_v7, 4  ;;  %v2473_v1 = vrot.slane %v10468_v2, 3 }
 0x162   : > { %v10009_v25 = vpack.c.bf16 %v1355_v61, %v1354_v50  ;;  %v1207_v15 = vmul.f32 %v8247_v13, %v9810_v55  ;;  %v1007_v16 = vpop.f32.mrb[33].mxu0  ;;  %v1787_v19 = vrot.slane %v12266_v9, 3  ;;  %v1790_v31 = vrot.slane %v12264_v32, 4 }
 0x163   : > { %v1410_v20 = vpack.c.bf16 %v1353_v12, %v1352_v58  ;;  %v1205_v26 = vmul.f32 %v9810_v55, %v1007_v16  ;;  %v8248_v27 = vpop.f32.mrb[34].mxu0 }
 0x164   : > { %v1505_v34 = vrot.slane %v10009_v25, 4  ;;  %v1286_v35 = vadd.f32 %v9815_v57, %v1207_v15  ;;  %v1208_v43 = vmul.f32 %v8248_v27, %v9810_v55  ;;  %v1010_v44 = vpop.f32.mrb[35].mxu0  ;;  %v1791_v51 = vor.u32 %v1790_v31, %v1787_v19 }
 0x165   : > { %v1503_v39 = vrot.slane %v1410_v20, 4  ;;  %v1284_v48 = vadd.f32 %v9815_v57, %v1205_v26  ;;  %v1206_v50 = vmul.f32 %v9810_v55, %v1010_v44 }
 0x166   : > { %v1358_v40 = vmax.f32 %v1286_v35, 0.0  ;;  %v1287_v61 = vadd.f32 %v9815_v57, %v1208_v43  ;;  %v10024_v58 = vld [vmem:[#allocation2 + $0x68] sm:$0xff]  ;;  %v1792_v16 = vsel %vm1676_vm1, %v1782_v8, %v1791_v51 }
 0x167   : > { %v10027_v7 = vsel %vm1436_vm0, %v1502_v33, %v1503_v39  ;;  %v10030_v12 = vsel %vm1436_vm0, %v1503_v39, %v1505_v34  ;;  %v1356_v13 = vmax.f32 %v1284_v48, 0.0  ;;  %v1285_v25 = vadd.f32 %v9815_v57, %v1206_v50 }
 0x168   : > { %1515 = vst [vmem:[#allocation2 + $0x70] sm:$0xff] %v10027_v7  ;;  %1516 = vst [vmem:[#allocation2 + $0x78] sm:$0xff] %v10030_v12  ;;  %v1359_v15 = vmax.f32 %v1287_v61, 0.0  ;;  %v12265_v17 = vshrl.u32 %v10024_v58, 16  ;;  %v12267_v19 = vshll.u32 %v10024_v58, 16  ;;  %8322 = vmatmul.mubr.bf16.gmra.mrb[92].mxu0 %v1792_v16  ;;  %v12269_v27 = vshrl.u32 %v10027_v7, 16 }
 0x169   : > { %v1357_v20 = vmax.f32 %v1285_v25, 0.0  ;;  %v8251_v26 = vpop.f32.mrb[36].mxu0  ;;  %v12271_v31 = vshll.u32 %v10027_v7, 16  ;;  %v12270_v33 = vshrl.u32 %v10030_v12, 16 }
 0x16a   : > { %v1413_v35 = vpack.c.bf16 %v1359_v15, %v1358_v40  ;;  %v1211_v43 = vmul.f32 %v8251_v26, %v9810_v55  ;;  %v1023_v44 = vpop.f32.mrb[37].mxu0  ;;  %v1796_v8 = vrot.slane %v12265_v17, 3  ;;  %v1799_v39 = vrot.slane %v12267_v19, 4 }
 0x16b   : > { %v1412_v48 = vpack.c.bf16 %v1357_v20, %v1356_v13  ;;  %v1209_v50 = vmul.f32 %v9810_v55, %v1023_v44  ;;  %v8252_v61 = vpop.f32.mrb[38].mxu0  ;;  %v1805_v25 = vrot.slane %v12269_v27, 3  ;;  %v1808_v16 = vrot.slane %v12271_v31, 4 }
 0x16c   : > { %v1509_v40 = vrot.slane %v1413_v35, 4  ;;  %v1290_v15 = vadd.f32 %v9815_v57, %v1211_v43  ;;  %v1212_v26 = vmul.f32 %v8252_v61, %v9810_v55  ;;  %v1026_v32 = vpop.f32.mrb[39].mxu0  ;;  %v1800_v17 = vor.u32 %v1799_v39, %v1796_v8 }
 0x16d   : > { %v1507_v9 = vrot.slane %v1412_v48, 4  ;;  %v1288_v19 = vadd.f32 %v9815_v57, %v1209_v50  ;;  %v1210_v13 = vmul.f32 %v9810_v55, %v1026_v32  ;;  %v1809_v20 = vor.u32 %v1808_v16, %v1805_v25 }
 0x16e   : > { %v1362_v44 = vmax.f32 %v1290_v15, 0.0  ;;  %v1291_v4 = vadd.f32 %v9815_v57, %v1212_v26  ;;  %v1801_v27 = vsel %vm1676_vm1, %v1791_v51, %v1800_v17  ;;  %v1814_v35 = vrot.slane %v12270_v33, 3 }
 0x16f   : > { %v10060_v43 = vsel %vm1436_vm0, %v1505_v34, %v1507_v9  ;;  %v10063_v61 = vsel %vm1436_vm0, %v1507_v9, %v1509_v40  ;;  %v1360_v8 = vmax.f32 %v1288_v19, 0.0  ;;  %v1289_v39 = vadd.f32 %v9815_v57, %v1210_v13  ;;  %8325 = vmatprep.mubr.bf16.mxu0 %v1801_v27 }
 0x170   : > { %1517 = vst [vmem:[#allocation2 + $0x80] sm:$0xff] %v10060_v43  ;;  %1518 = vst [vmem:[#allocation2 + $0x88] sm:$0xff] %v10063_v61  ;;  %v1363_v32 = vmax.f32 %v1291_v4, 0.0  ;;  %v1810_v51 = vsel %vm1676_vm1, %v1800_v17, %v1809_v20  ;;  %v12272_v48 = vshll.u32 %v10030_v12, 16  ;;  %v12274_v50 = vshrl.u32 %v10060_v43, 16 }
 0x171   : > { %v1361_v34 = vmax.f32 %v1289_v39, 0.0  ;;  %v8255_v25 = vpop.f32.mrb[40].mxu0  ;;  %8326 = vmatmul.mubr.bf16.gmra.mrb[96].mxu0 %v1810_v51  ;;  %v12275_v9 = vshll.u32 %v10060_v43, 16  ;;  %v12276_v19 = vshrl.u32 %v10063_v61, 16  ;;  %v12279_v27 = vshll.u32 %v10063_v61, 16 }
 0x172   : > { %v1415_v16 = vpack.c.bf16 %v1363_v32, %v1362_v44  ;;  %v1215_v40 = vmul.f32 %v8255_v25, %v9810_v55  ;;  %v1039_v15 = vpop.f32.mrb[41].mxu0  ;;  %v1817_v4 = vrot.slane %v12272_v48, 4  ;;  %v1823_v17 = vrot.slane %v12274_v50, 3 }
 0x173   : > { %v1414_v26 = vpack.c.bf16 %v1361_v34, %v1360_v8  ;;  %v1213_v13 = vmul.f32 %v9810_v55, %v1039_v15  ;;  %v8256_v39 = vpop.f32.mrb[42].mxu0  ;;  %v1826_v51 = vrot.slane %v12275_v9, 4  ;;  %v1832_v33 = vrot.slane %v12276_v19, 3 }
 0x174   : > { %v1524_v44 = vrot.slane %v1415_v16, 4  ;;  %v1294_v32 = vadd.f32 %v9815_v57, %v1215_v40  ;;  %v1216_v25 = vmul.f32 %v8256_v39, %v9810_v55  ;;  %v1042_v31 = vpop.f32.mrb[43].mxu0  ;;  %v1818_v48 = vor.u32 %v1817_v4, %v1814_v35 }
 0x175   : > { %v1523_v0 = vrot.slane %v1414_v26, 4  ;;  %v1292_v50 = vadd.f32 %v9815_v57, %v1213_v13  ;;  %v1214_v8 = vmul.f32 %v9810_v55, %v1042_v31  ;;  %v1827_v34 = vor.u32 %v1826_v51, %v1823_v17 }
 0x176   : > { %v1295_v15 = vadd.f32 %v9815_v57, %v1216_v25  ;;  %v1819_v9 = vsel %vm1676_vm1, %v1809_v20, %v1818_v48  ;;  %v1835_v19 = vrot.slane %v12279_v27, 4  ;;  %v1366_v40 = vmax.f32 %v1294_v32, 0.0 }
 0x177   : > { %v10093_v16 = vsel %vm1436_vm0, %v1523_v0, %v1524_v44  ;;  %1535 = vst [vmem:[#allocation2 + $0x90] sm:$0xf0] %v1523_v0  ;;  %v1293_v35 = vadd.f32 %v9815_v57, %v1214_v8  ;;  %8329 = vmatprep.mubr.bf16.mxu0 %v1819_v9  ;;  %v1828_v4 = vsel %vm1676_vm1, %v1818_v48, %v1827_v34  ;;  %v1364_v13 = vmax.f32 %v1292_v50, 0.0 }
 0x178   : > { %1536 = vst [vmem:[#allocation2 + $0x98] sm:$0xff] %v10093_v16  ;;  %v1367_v31 = vmax.f32 %v1295_v15, 0.0  ;;  %v10098_v17 = vor.u32 %v1835_v19, %v1832_v33  ;;  %v12278_v20 = vshrl.u32 %v10093_v16, 16  ;;  %v12277_v26 = vshll.u32 %v10093_v16, 16 }
 0x179   : > { %v1365_v39 = vmax.f32 %v1293_v35, 0.0  ;;  %v8259_v51 = vpop.f32.mrb[44].mxu0  ;;  %8330 = vmatmul.mubr.bf16.gmra.mrb[100].mxu0 %v1828_v4 }
 0x17a   : > { %v1417_v0 = vpack.c.bf16 %v1367_v31, %v1366_v40  ;;  %v1219_v32 = vmul.f32 %v8259_v51, %v9810_v55  ;;  %v1055_v25 = vpop.f32.mrb[45].mxu0  ;;  %v1837_v48 = vsel %vm1676_vm1, %v1827_v34, %v10098_v17  ;;  %v1850_v9 = vrot.slane %v12278_v20, 3 }
 0x17b   : > { %v1416_v33 = vpack.c.bf16 %v1365_v39, %v1364_v13  ;;  %v1217_v19 = vmul.f32 %v9810_v55, %v1055_v25  ;;  %v8260_v8 = vpop.f32.mrb[46].mxu0  ;;  %8333 = vmatprep.mubr.bf16.mxu0 %v1837_v48  ;;  %v1853_v50 = vrot.slane %v12277_v26, 4 }
 0x17c   : > { %v1528_v15 = vrot.slane %v1417_v0, 4  ;;  %v1298_v40 = vadd.f32 %v9815_v57, %v1219_v32  ;;  %v1220_v35 = vmul.f32 %v8260_v8, %v9810_v55  ;;  %v1058_v4 = vpop.f32.mrb[47].mxu0 }
 0x17d   : > { %v1526_v31 = vrot.slane %v1416_v33, 4  ;;  %v1296_v34 = vadd.f32 %v9815_v57, %v1217_v19  ;;  %v1218_v51 = vmul.f32 %v9810_v55, %v1058_v4  ;;  %v1854_v48 = vor.u32 %v1853_v50, %v1850_v9 }
 0x17e   : > { %1539 = vst [vmem:[#allocation2 + $0xb0] sm:$0xf] %v1528_v15  ;;  %v1370_v13 = vmax.f32 %v1298_v40, 0.0  ;;  %v1299_v39 = vadd.f32 %v9815_v57, %v1220_v35  ;;  %v10115_v25 = vld [vmem:[#allocation2 + $0x90] sm:$0xff] }
 0x17f   : > { %v10118_v26 = vsel %vm1436_vm0, %v1524_v44, %v1526_v31  ;;  %v10121_v0 = vsel %vm1436_vm0, %v1526_v31, %v1528_v15  ;;  %v1368_v32 = vmax.f32 %v1296_v34, 0.0  ;;  %v1297_v33 = vadd.f32 %v9815_v57, %v1218_v51 }
 0x180   : > { %1537 = vst [vmem:[#allocation2 + $0xa0] sm:$0xff] %v10118_v26  ;;  %1538 = vst [vmem:[#allocation2 + $0xa8] sm:$0xff] %v10121_v0  ;;  %v1371_v19 = vmax.f32 %v1299_v39, 0.0  ;;  %v12283_v8 = vshrl.u32 %v10115_v25, 16  ;;  %v12286_v40 = vshll.u32 %v10115_v25, 16  ;;  %v12287_v9 = vshrl.u32 %v10118_v26, 16 }
 0x181   : > { %v1369_v50 = vmax.f32 %v1297_v33, 0.0  ;;  %v8263_v44 = vpop.f32.mrb[48].mxu0  ;;  %v12292_v35 = vshll.u32 %v10118_v26, 16  ;;  %v12291_v15 = vshrl.u32 %v10121_v0, 16  ;;  %v12289_v4 = vshll.u32 %v10121_v0, 16 }
 0x182   : > { %v10132_v31 = vpack.c.bf16 %v1371_v19, %v1370_v13  ;;  %v1223_v34 = vmul.f32 %v8263_v44, %v9810_v55  ;;  %v1071_v51 = vpop.f32.mrb[49].mxu0  ;;  %v1841_v39 = vrot.slane %v12283_v8, 3  ;;  %v1844_v20 = vrot.slane %v12286_v40, 4 }
 0x183   : > { %v1418_v27 = vpack.c.bf16 %v1369_v50, %v1368_v32  ;;  %v1221_v33 = vmul.f32 %v9810_v55, %v1071_v51  ;;  %v8264_v63 = vpop.f32.mrb[50].mxu0  ;;  %v1859_v60 = vrot.slane %v12287_v9, 3  ;;  %v1862_v13 = vrot.slane %v12292_v35, 4 }
 0x184   : > { %v1546_v19 = vrot.slane %v10132_v31, 4  ;;  %v1302_v44 = vadd.f32 %v9815_v57, %v1223_v34  ;;  %v1224_v56 = vmul.f32 %v8264_v63, %v9810_v55  ;;  %v1074_v8 = vpop.f32.mrb[51].mxu0  ;;  %v1845_v45 = vor.u32 %v1844_v20, %v1841_v39  ;;  %v9503_v63 = vld [vmem:[%s12255_s4 + $0x8] sm:$0xff]  }
 0x185   : > { %v1545_v6 = vrot.slane %v1418_v27, 4  ;;  %v1300_v32 = vadd.f32 %v9815_v57, %v1221_v33  ;;  %v1222_v50 = vmul.f32 %v9810_v55, %v1074_v8  ;;  %v1863_v51 = vor.u32 %v1862_v13, %v1859_v60  ;;  %v10149_v40 = vld [vmem:[#allocation2 + $0xb0] sm:$0xff] }
 0x186   : > { %v1374_v9 = vmax.f32 %v1302_v44, 0.0  ;;  %v1303_v5 = vadd.f32 %v9815_v57, %v1224_v56  ;;  %v1846_v31 = vsel %vm1676_vm1, %v10098_v17, %v1845_v45  ;;  %v1855_v34 = vsel %vm1676_vm1, %v1845_v45, %v1854_v48 }
 0x187   : > { %v10159_v27 = vsel %vm1436_vm0, %v1545_v6, %v1546_v19  ;;  %v1372_v20 = vmax.f32 %v1300_v32, 0.0  ;;  %v1301_v60 = vadd.f32 %v9815_v57, %v1222_v50  ;;  %8334 = vmatmul.mubr.bf16.gmra.mrb[104].mxu0 %v1846_v31  ;;  %8337 = vmatprep.mubr.bf16.mxu1 %v1855_v34  ;;  %v1864_v8 = vsel %vm1676_vm1, %v1854_v48, %v1863_v51 }
 0x188   : > { %1558 = vst [vmem:[#allocation2 + $0xb8] sm:$0xff] %v10159_v27  ;;  %v1375_v56 = vmax.f32 %v1303_v5, 0.0  ;;  %8338 = vmatmul.mubr.bf16.vlgmr.msra.gmra.mrb[0].mxu1 %v1864_v8  ;;  %v1868_v45 = vrot.slane %v12291_v15, 3  ;;  %v1871_v17 = vrot.slane %v12289_v4, 4  ;;  %v12290_v6 = vshrl.u32 %v10149_v40, 16 }
 0x189   : > { %v1373_v39 = vmax.f32 %v1301_v60, 0.0  ;;  %v8267_v33 = vpop.f32.mrb[52].mxu0  ;;  %8374 = vmatpush3.bf16.msra.mxu1 %v9804_v54  ;;  %v12293_v13 = vshll.u32 %v10149_v40, 16  ;;  %v12294_v48 = vshrl.u32 %v10159_v27, 16  ;;  %v12298_v44 = vshll.u32 %v10159_v27, 16  ;;  %v9504_v54 = vld [vmem:[%s12255_s4 + $0x10] sm:$0xff]  }
 0x18a   : > { %v10173_v5 = vpack.c.bf16 %v1375_v56, %v1374_v9  ;;  %v1227_v32 = vmul.f32 %v8267_v33, %v9810_v55  ;;  %v1087_v50 = vpop.f32.mrb[53].mxu0  ;;  %v1872_v31 = vor.u32 %v1871_v17, %v1868_v45  ;;  %v1877_v34 = vrot.slane %v12290_v6, 3  ;;  %8375 = vmatprep.subr.bf16.mxu1 %v9503_v63 }
 0x18b   : > { %v1420_v60 = vpack.c.bf16 %v1373_v39, %v1372_v20  ;;  %v1225_v8 = vmul.f32 %v9810_v55, %v1087_v50  ;;  %v8268_v4 = vpop.f32.mrb[54].mxu0  ;;  %v1880_v9 = vrot.slane %v12293_v13, 4  ;;  %v1886_v56 = vrot.slane %v12294_v48, 3 }
 0x18c   : > { %v1550_v45 = vrot.slane %v10173_v5, 4  ;;  %v1306_v17 = vadd.f32 %v9815_v57, %v1227_v32  ;;  %v1228_v33 = vmul.f32 %v8268_v4, %v9810_v55  ;;  %v1090_v6 = vpop.f32.mrb[55].mxu0  ;;  %v1873_v15 = vsel %vm1676_vm1, %v1863_v51, %v1872_v31 }
 0x18d   : > { %v1548_v35 = vrot.slane %v1420_v60, 4  ;;  %v1304_v20 = vadd.f32 %v9815_v57, %v1225_v8  ;;  %v1226_v39 = vmul.f32 %v9810_v55, %v1090_v6  ;;  %8341 = vmatprep.mubr.bf16.mxu1 %v1873_v15  ;;  %v1881_v50 = vor.u32 %v1880_v9, %v1877_v34  ;;  %8376 = vmatpush3.bf16.msra.mxu1 %v9503_v63  ;;  %v9505_v15 = vld [vmem:[%s12255_s4 + $0x18] sm:$0xff]  }
 0x18e   : > { %v1378_v13 = vmax.f32 %v1306_v17, 0.0  ;;  %v1307_v48 = vadd.f32 %v9815_v57, %v1228_v33  ;;  %v1889_v5 = vrot.slane %v12298_v44, 4  ;;  %8377 = vmatprep.subr.bf16.mxu1 %v9504_v54 }
 0x18f   : > { %v10196_v4 = vsel %vm1436_vm0, %v1546_v19, %v1548_v35  ;;  %v10199_v51 = vsel %vm1436_vm0, %v1548_v35, %v1550_v45  ;;  %v1376_v32 = vmax.f32 %v1304_v20, 0.0  ;;  %v1305_v60 = vadd.f32 %v9815_v57, %v1226_v39 }
 0x190   : > { %1559 = vst [vmem:[#allocation2 + $0xc0] sm:$0xff] %v10196_v4  ;;  %1560 = vst [vmem:[#allocation2 + $0xc8] sm:$0xff] %v10199_v51  ;;  %v1379_v63 = vmax.f32 %v1307_v48, 0.0  ;;  %v1882_v6 = vsel %vm1676_vm1, %v1872_v31, %v1881_v50  ;;  %v1890_v34 = vor.u32 %v1889_v5, %v1886_v56  ;;  %v12297_v19 = vshrl.u32 %v10196_v4, 16  ;;  %v10221_v5 = vld [vmem:[%s12253_s2] ss:$0 sm:$0xff] }
 0x191   : > { %v1377_v8 = vmax.f32 %v1305_v60, 0.0  ;;  %v8271_v35 = vpop.f32.mrb[56].mxu0  ;;  %8342 = vmatmul.mubr.bf16.gmra.mrb[4].mxu1 %v1882_v6  ;;  %v12296_v9 = vshll.u32 %v10196_v4, 16  ;;  %v12295_v57 = vshrl.u32 %v10199_v51, 16  ;;  %v12303_v17 = vshll.u32 %v10199_v51, 16 }
 0x192   : > { %v10212_v33 = vpack.c.bf16 %v1379_v63, %v1378_v13  ;;  %v1231_v20 = vmul.f32 %v8271_v35, %v9810_v55  ;;  %v1103_v39 = vpop.f32.mrb[57].mxu0  ;;  %v1891_v48 = vsel %vm1676_vm1, %v1881_v50, %v1890_v34  ;;  %v1895_v31 = vrot.slane %v12297_v19, 3  ;;  %8378 = vmatpush3.bf16.msra.mxu1 %v9504_v54  ;;  %v9506_v54 = vld [vmem:[%s12255_s4 + $0x20] sm:$0xff]  }
 0x193   : > { %v1422_v56 = vpack.c.bf16 %v1377_v8, %v1376_v32  ;;  %v1229_v60 = vmul.f32 %v10221_v5, %v1103_v39  ;;  %v8272_v6 = vpop.f32.mrb[58].mxu0  ;;  %8345 = vmatprep.mubr.bf16.mxu1 %v1891_v48  ;;  %v1898_v55 = vrot.slane %v12296_v9, 4  ;;  %v1904_v13 = vrot.slane %v12295_v57, 3  ;;  %8379 = vmatprep.subr.bf16.mxu1 %v9505_v15  ;;  %v10235_v32 = vld [vmem:[%s12254_s3] ss:$0 sm:$0xff] }
 0x194   : > { %v1566_v50 = vrot.slane %v10212_v33, 4  ;;  %v1310_v63 = vadd.f32 %v10235_v32, %v1231_v20  ;;  %v1232_v8 = vmul.f32 %v10221_v5, %v8272_v6  ;;  %v1106_v35 = vpop.f32.mrb[59].mxu0  ;;  %v1907_v39 = vrot.slane %v12303_v17, 4 }
 0x195   : > { %v1552_v48 = vrot.slane %v1422_v56, 4  ;;  %v1308_v57 = vadd.f32 %v10235_v32, %v1229_v60  ;;  %v1230_v9 = vmul.f32 %v10221_v5, %v1106_v35  ;;  %v1899_v19 = vor.u32 %v1898_v55, %v1895_v31  ;;  %v9507_v56 = vld [vmem:[%s12255_s4 + $0x28] sm:$0xff]  }
 0x196   : > { %1578 = vst [vmem:[#allocation2 + $0xd8] sm:$0xf0] %v1566_v50  ;;  %v1311_v33 = vadd.f32 %v10235_v32, %v1232_v8  ;;  %v1908_v44 = vor.u32 %v1907_v39, %v1904_v13  ;;  %8380 = vmatpush3.bf16.msra.mxu1 %v9505_v15  ;;  %v1382_v20 = vmax.f32 %v1310_v63, 0.0 }
 0x197   : > { %v10245_v22 = vsel %vm1436_vm0, %v1550_v45, %v1552_v48  ;;  %v1309_v6 = vadd.f32 %v10235_v32, %v1230_v9  ;;  %v1900_v21 = vsel %vm1676_vm1, %v1890_v34, %v1899_v19  ;;  %8381 = vmatprep.subr.bf16.mxu1 %v9506_v54  ;;  %v1380_v55 = vmax.f32 %v1308_v57, 0.0 }
 0x198   : > { %1561 = vst [vmem:[#allocation2 + $0xd0] sm:$0xff] %v10245_v22  ;;  %v1383_v31 = vmax.f32 %v1311_v33, 0.0  ;;  %v1909_v60 = vsel %vm1676_vm1, %v1899_v19, %v1908_v44  ;;  %v12302_v15 = vshrl.u32 %v10245_v22, 16  ;;  %v12301_v45 = vshll.u32 %v10245_v22, 16 }
 0x199   : > { %v1381_v13 = vmax.f32 %v1309_v6, 0.0  ;;  %v8275_v63 = vpop.f32.mrb[60].mxu0  ;;  %8346 = vmatmul.mubr.bf16.gmra.mrb[8].mxu1 %v1900_v21  ;;  %v9508_v21 = vld [vmem:[%s12255_s4 + $0x30] sm:$0xff]  }
 0x19a   : > { %v10256_v9 = vpack.c.bf16 %v1383_v31, %v1382_v20  ;;  %v1235_v34 = vmul.f32 %v10221_v5, %v8275_v63  ;;  %v1119_v8 = vpop.f32.mrb[61].mxu0  ;;  %8349 = vmatprep.mubr.bf16.mxu1 %v1909_v60  ;;  %v1913_v35 = vrot.slane %v12302_v15, 3  ;;  %v1916_v19 = vrot.slane %v12301_v45, 4  ;;  %8382 = vmatpush3.bf16.msra.mxu1 %v9506_v54 }
 0x19b   : > { %v1424_v39 = vpack.c.bf16 %v1381_v13, %v1380_v55  ;;  %v1233_v48 = vmul.f32 %v10221_v5, %v1119_v8  ;;  %v8276_v57 = vpop.f32.mrb[62].mxu0  ;;  %8383 = vmatprep.subr.bf16.mxu1 %v9507_v56 }
 0x19c   : > { %v1569_v33 = vrot.slane %v10256_v9, 4  ;;  %v1314_v20 = vadd.f32 %v10235_v32, %v1235_v34  ;;  %v1236_v6 = vmul.f32 %v10221_v5, %v8276_v57  ;;  %v1122_v31 = vpop.f32.mrb[63].mxu0  ;;  %v1917_v60 = vor.u32 %v1916_v19, %v1913_v35 }
 0x19d   : > { %v1567_v63 = vrot.slane %v1424_v39, 4  ;;  %v1312_v54 = vadd.f32 %v10235_v32, %v1233_v48  ;;  %v1234_v55 = vmul.f32 %v10221_v5, %v1122_v31  ;;  %v10272_v13 = vld [vmem:[#allocation2 + $0xd8] sm:$0xff] }
 0x19e   : > { %v1386_v8 = vmax.f32 %v1314_v20, 0.0  ;;  %v1315_v45 = vadd.f32 %v10235_v32, %v1236_v6  ;;  %v1918_v15 = vsel %vm1676_vm1, %v1908_v44, %v1917_v60  ;;  %v12304_v9 = vshrl.u32 %v10272_v13, 16  ;;  %8384 = vmatpush3.bf16.msra.mxu1 %v9507_v56  ;;  %v9509_v48 = vld [vmem:[%s12255_s4 + $0x38] sm:$0xff]  }
 0x19f   : > { %v10278_v34 = vsel %vm1436_vm0, %v1566_v50, %v1567_v63  ;;  %v10281_v35 = vsel %vm1436_vm0, %v1567_v63, %v1569_v33  ;;  %v1384_v19 = vmax.f32 %v1312_v54, 0.0  ;;  %v1313_v39 = vadd.f32 %v10235_v32, %v1234_v55  ;;  %8385 = vmatprep.subr.bf16.mxu1 %v9508_v21 }
 0x1a0   : > { %1579 = vst [vmem:[#allocation2 + $0xe0] sm:$0xff] %v10278_v34  ;;  %1580 = vst [vmem:[#allocation2 + $0xe8] sm:$0xff] %v10281_v35  ;;  %v1387_v44 = vmax.f32 %v1315_v45, 0.0  ;;  %v1922_v50 = vrot.slane %v12304_v9, 3  ;;  %v12308_v56 = vshll.u32 %v10272_v13, 16  ;;  %v12309_v57 = vshrl.u32 %v10278_v34, 16 }
 0x1a1   : > { %v1385_v20 = vmax.f32 %v1313_v39, 0.0  ;;  %v8279_v6 = vpop.f32.mrb[64].mxu0  ;;  %8350 = vmatmul.mubr.bf16.gmra.mrb[12].mxu1 %v1918_v15  ;;  %v12310_v31 = vshll.u32 %v10278_v34, 16  ;;  %v12322_v63 = vshrl.u32 %v10281_v35, 16  ;;  %v12317_v54 = vshll.u32 %v10281_v35, 16 }
 0x1a2   : > { %v10296_v55 = vpack.c.bf16 %v1387_v44, %v1386_v8  ;;  %v1239_v45 = vmul.f32 %v10221_v5, %v8279_v6  ;;  %v1135_v17 = vpop.f32.mrb[65].mxu0  ;;  %v1925_v9 = vrot.slane %v12308_v56, 4  ;;  %v1931_v14 = vrot.slane %v12309_v57, 3  ;;  %8386 = vmatpush3.bf16.msra.mxu1 %v9508_v21  ;;  %v10309_v8 = vld [vmem:[%s12255_s4 + $0x80] sm:$0xff]  }
 0x1a3   : > { %v1426_v39 = vpack.c.bf16 %v1385_v20, %v1384_v19  ;;  %v1237_v15 = vmul.f32 %v10221_v5, %v1135_v17  ;;  %v8280_v18 = vpop.f32.mrb[66].mxu0  ;;  %v1934_v42 = vrot.slane %v12310_v31, 4  ;;  %8387 = vmatprep.subr.bf16.mxu1 %v9509_v48  ;;  %v1940_v21 = vrot.slane %v12322_v63, 3 }
 0x1a4   : > { %v1318_v44 = vadd.f32 %v10235_v32, %v1239_v45  ;;  %v1240_v6 = vmul.f32 %v10221_v5, %v8280_v18  ;;  %v1138_v56 = vpop.f32.mrb[67].mxu0  ;;  %v1926_v57 = vor.u32 %v1925_v9, %v1922_v50  ;;  %v1943_v45 = vrot.slane %v12317_v54, 4 }
 0x1a5   : > { %v1571_v17 = vrot.slane %v1426_v39, 4  ;;  %v1316_v19 = vadd.f32 %v10235_v32, %v1237_v15  ;;  %v1238_v20 = vmul.f32 %v10221_v5, %v1138_v56  ;;  %v1935_v31 = vor.u32 %v1934_v42, %v1931_v14 }
 0x1a6   : > { %v1319_v41 = vadd.f32 %v10235_v32, %v1240_v6  ;;  %v1927_v37 = vsel %vm1676_vm1, %v1917_v60, %v1926_v57  ;;  %8388 = vmatpush3.bf16.msra.mxu1 %v9509_v48  ;;  %v1390_v9 = vmax.f32 %v1318_v44, 0.0  ;;  %v1944_v14 = vor.u32 %v1943_v45, %v1940_v21 }
 0x1a7   : > { %v10322_v18 = vsel %vm1436_vm0, %v1569_v33, %v1571_v17  ;;  %1582 = vst [vmem:[#allocation2 + $0xf8] sm:$0xf] %v1571_v17  ;;  %v1317_v50 = vadd.f32 %v10235_v32, %v1238_v20  ;;  %8353 = vmatprep.mubr.bf16.mxu1 %v1927_v37  ;;  %v1936_v39 = vsel %vm1676_vm1, %v1926_v57, %v1935_v31  ;;  %v1388_v56 = vmax.f32 %v1316_v19, 0.0 }
 0x1a8   : > { %8461 = vmatprep.subr.bf16.mxu1 %v10309_v8  ;;  %1581 = vst [vmem:[#allocation2 + $0xf0] sm:$0xff] %v10322_v18  ;;  %v1391_v42 = vmax.f32 %v1319_v41, 0.0  ;;  %v12313_v60 = vshrl.u32 %v10322_v18, 16  ;;  %v12314_v48 = vshll.u32 %v10322_v18, 16  ;;  %v1945_v57 = vsel %vm1676_vm1, %v1935_v31, %v1944_v14 }
 0x1a9   : > { %v1389_v33 = vmax.f32 %v1317_v50, 0.0  ;;  %v8283_v15 = vpop.f32.mrb[68].mxu0  ;;  %8354 = vmatmul.mubr.bf16.gmra.mrb[16].mxu1 %v1936_v39  ;;  %v1588_v45 = vrot.slane %v10296_v55, 4 }
 0x1aa   : > { %v1429_v44 = vpack.c.bf16 %v1391_v42, %v1390_v9  ;;  %v1243_v6 = vmul.f32 %v10221_v5, %v8283_v15  ;;  %v1151_v37 = vpop.f32.mrb[69].mxu0  ;;  %v1949_v17 = vrot.slane %v12313_v60, 3  ;;  %8357 = vmatprep.mubr.bf16.mxu1 %v1945_v57  ;;  %v1952_v19 = vrot.slane %v12314_v48, 4 }
 0x1ab   : > { %v1428_v20 = vpack.c.bf16 %v1389_v33, %v1388_v56  ;;  %v1241_v41 = vmul.f32 %v10221_v5, %v1151_v37  ;;  %v8284_v21 = vpop.f32.mrb[70].mxu0 }
 0x1ac   : > { %v1591_v50 = vrot.slane %v1429_v44, 4  ;;  %v1322_v9 = vadd.f32 %v10235_v32, %v1243_v6  ;;  %v1244_v39 = vmul.f32 %v10221_v5, %v8284_v21  ;;  %v1154_v42 = vpop.f32.mrb[71].mxu0  ;;  %v1953_v33 = vor.u32 %v1952_v19, %v1949_v17 }
 0x1ad   : > { %v1589_v31 = vrot.slane %v1428_v20, 4  ;;  %v1320_v15 = vadd.f32 %v10235_v32, %v1241_v41  ;;  %v1242_v56 = vmul.f32 %v10221_v5, %v1154_v42 }
 0x1ae   : > { %v1394_v37 = vmax.f32 %v1322_v9, 0.0  ;;  %v1323_v57 = vadd.f32 %v10235_v32, %v1244_v39  ;;  %v10343_v60 = vld [vmem:[#allocation2 + $0xf8] sm:$0xff]  ;;  %v1954_v17 = vsel %vm1676_vm1, %v1944_v14, %v1953_v33 }
 0x1af   : > { %v10346_v48 = vsel %vm1436_vm0, %v1588_v45, %v1589_v31  ;;  %v10349_v55 = vsel %vm1436_vm0, %v1589_v31, %v1591_v50  ;;  %v1392_v44 = vmax.f32 %v1320_v15, 0.0  ;;  %v1321_v6 = vadd.f32 %v10235_v32, %v1242_v56 }
 0x1b0   : > { %1601 = vst [vmem:[#allocation2 + $0x100] sm:$0xff] %v10346_v48  ;;  %1602 = vst [vmem:[#allocation2 + $0x108] sm:$0xff] %v10349_v55  ;;  %v1395_v5 = vmax.f32 %v1323_v57, 0.0  ;;  %v12315_v20 = vshrl.u32 %v10343_v60, 16  ;;  %v12316_v41 = vshll.u32 %v10343_v60, 16  ;;  %v12321_v19 = vshrl.u32 %v10346_v48, 16 }
 0x1b1   : > { %v1393_v21 = vmax.f32 %v1321_v6, 0.0  ;;  %8358 = vmatmul.mubr.bf16.gmra.mrb[20].mxu1 %v1954_v17  ;;  %v12318_v45 = vshll.u32 %v10346_v48, 16  ;;  %v12320_v9 = vshrl.u32 %v10349_v55, 16  ;;  %v12319_v14 = vshll.u32 %v10349_v55, 16 }
 0x1b2   : > { %v1431_v32 = vpack.c.bf16 %v1395_v5, %v1394_v37  ;;  %v1958_v39 = vrot.slane %v12315_v20, 3  ;;  %v1961_v42 = vrot.slane %v12316_v41, 4  ;;  %v1967_v15 = vrot.slane %v12321_v19, 3  ;;  %v9560_v19 = vld [vmem:[#allocation2] sm:$0xf8] }
 0x1b3   : > { %v1430_v31 = vpack.c.bf16 %v1393_v21, %v1392_v44  ;;  %v1970_v56 = vrot.slane %v12318_v45, 4  ;;  %v1976_v57 = vrot.slane %v12320_v9, 3  ;;  %v1979_v5 = vrot.slane %v12319_v14, 4 }
 0x1b4   : > { %v1595_v6 = vrot.slane %v1431_v32, 4  ;;  %v1962_v37 = vor.u32 %v1961_v42, %v1958_v39  ;;  %v2452_v63 = vrot.slane %v9560_v19, 3  ;;  %v9511_v19 = vld [vmem:[%s12255_s4 + $0x88] sm:$0xff]  }
 0x1b5   : > { %v1593_v17 = vrot.slane %v1430_v31, 4  ;;  %v1971_v20 = vor.u32 %v1970_v56, %v1967_v15  ;;  %v1980_v54 = vor.u32 %v1979_v5, %v1976_v57  ;;  %v10387_v31 = vld [vmem:[#allocation2 + $0x120] sm:$0xf] }
 0x1b6   : > { %v1963_v41 = vsel %vm1676_vm1, %v1953_v33, %v1962_v37 }
 0x1b7   : > { %v10375_v44 = vsel %vm1436_vm0, %v1591_v50, %v1593_v17  ;;  %v10378_v21 = vsel %vm1436_vm0, %v1593_v17, %v1595_v6  ;;  %8361 = vmatprep.mubr.bf16.mxu1 %v1963_v41  ;;  %v1972_v45 = vsel %vm1676_vm1, %v1962_v37, %v1971_v20  ;;  %v1981_v32 = vsel %vm1676_vm1, %v1971_v20, %v1980_v54 }
 0x1b8   : > { %12410 = vst [vmem:[#allocation5_spill] sm:$0xff] %v10378_v21  ;;  %1603 = vst [vmem:[#allocation2 + $0x110] sm:$0xff] %v10375_v44  ;;  %v1983_v39 = vshrl.u32 %v10375_v44, 16  ;;  %v1986_v42 = vshll.u32 %v10375_v44, 16  ;;  %v1992_v33 = vshrl.u32 %v10378_v21, 16  ;;  %v1995_v50 = vshll.u32 %v10378_v21, 16 }
 0x1b9   : > { %8362 = vmatmul.mubr.bf16.gmra.mrb[24].mxu1 %v1972_v45  ;;  %v2001_v45 = vshrl.u32 %v10387_v31, 16  ;;  %v2004_v6 = vshll.u32 %v10387_v31, 16 }
 0x1ba   : > { %8365 = vmatprep.mubr.bf16.mxu1 %v1981_v32  ;;  %v1985_v41 = vrot.slane %v1983_v39, 3  ;;  %v1988_v15 = vrot.slane %v1986_v42, 4  ;;  %v1994_v20 = vrot.slane %v1992_v33, 3  ;;  %v1997_v56 = vrot.slane %v1995_v50, 4 }
 0x1bb   : > { %v2003_v32 = vrot.slane %v2001_v45, 3  ;;  %v2006_v14 = vrot.slane %v2004_v6, 4  ;;  %v10421_v6 = vld [vmem:[#allocation2 + $0x20] sm:$0xff]  ;;  %v3659_v62 = vrot.slane %v1983_v39, 4  ;;  %v2479_v39 = vrot.slane %v10027_v7, 3 }
 0x1bc   : > { %v1989_v57 = vor.u32 %v1988_v15, %v1985_v41  ;;  %v1998_v37 = vor.u32 %v1997_v56, %v1994_v20  ;;  %v2453_v41 = vrot.slane %v10401_v36, 3 }
 0x1bd   : > { %v2007_v9 = vor.u32 %v2006_v14, %v2003_v32 }
 0x1be   : > { %v1990_v5 = vsel %vm1676_vm1, %v1980_v54, %v1989_v57  ;;  %v1999_v17 = vsel %vm1676_vm1, %v1989_v57, %v1998_v37  ;;  %v2454_v20 = vsel %vm2451_vm2, %v2452_v63, %v2453_v41  ;;  %v10406_v54 = vld [vmem:[#allocation2 + $0x10] sm:$0xff]  ;;  %v10409_v57 = vld [vmem:[#allocation2 + $0x18] sm:$0xff] }
 0x1bf   : > { %v2008_v15 = vsel %vm1676_vm1, %v1998_v37, %v2007_v9  ;;  %v2455_v56 = vrot.slane %v10406_v54, 3  ;;  %v2457_v14 = vrot.slane %v10409_v57, 3  ;;  %v9512_v63 = vld [vmem:[%s12255_s4 + $0x90] sm:$0xff]   ;;  %v2459_v37 = vrot.slane %v10421_v6, 3 }
 0x1c1   : > { %8366 = vmatmul.mubr.bf16.gmra.mrb[28].mxu1 %v1990_v5  ;;  %v2456_v45 = vsel %vm2451_vm2, %v2453_v41, %v2455_v56  ;;  %v2458_v9 = vsel %vm2451_vm2, %v2455_v56, %v2457_v14  ;;  %v10424_v5 = vld [vmem:[#allocation2 + $0x28] sm:$0xff]  ;;  %v2460_v32 = vsel %vm2451_vm2, %v2457_v14, %v2459_v37 }
 0x1c2   : > { %8369 = vmatprep.mubr.bf16.mxu1 %v1999_v17  ;;  %v2461_v17 = vrot.slane %v10424_v5, 3  ;;  %v9515_v14 = vld [vmem:[%s12255_s4 + $0xa8] sm:$0xff]  }
 0x1c4   : > { %v2462_v41 = vsel %vm2451_vm2, %v2459_v37, %v2461_v17  ;;  %v9516_v37 = vld [vmem:[%s12255_s4 + $0xb0] sm:$0xff]  }
 0x1c9   : > { %8370 = vmatmul.mubr.bf16.gmra.mrb[32].mxu1 %v2008_v15  ;;  %v9514_v15 = vld [vmem:[%s12255_s4 + $0xa0] sm:$0xff]  }
 0x1ca   : > { %8389 = vmatprep.mubr.bf16.mxu1 %v2454_v20  ;;  %v10435_v20 = vld [vmem:[#allocation2 + $0x30] sm:$0xff] }
 0x1cb   : > { %v2463_v56 = vrot.slane %v10435_v20, 3 }
 0x1d1   : > { %8390 = vmatmul.mubr.bf16.vlgmr.msra.gmra.mrb[36].mxu1 %v2456_v45 }
 0x1d2   : > { %8462 = vmatpush3.bf16.msra.mxu1 %v10309_v8  ;;  %8393 = vmatprep.mubr.bf16.mxu1 %v2458_v9  ;;  %v9513_v8 = vld [vmem:[%s12255_s4 + $0x98] sm:$0xff]   ;;  %v2464_v9 = vsel %vm2451_vm2, %v2461_v17, %v2463_v56 }
 0x1d3   : > { %8463 = vmatprep.subr.bf16.mxu1 %v9511_v19  ;;  %v9517_v17 = vld [vmem:[%s12255_s4 + $0xb8] sm:$0xff]  }
 0x1d6   : > { %8464 = vmatpush3.bf16.msra.mxu1 %v9511_v19  ;;  %v10438_v19 = vld [vmem:[#allocation2 + $0x38] sm:$0xff] }
 0x1d7   : > { %8465 = vmatprep.subr.bf16.mxu1 %v9512_v63  ;;  %v2465_v45 = vrot.slane %v10438_v19, 3 }
 0x1d9   : > { %8394 = vmatmul.mubr.bf16.gmra.mrb[40].mxu1 %v2460_v32  ;;  %v10449_v32 = vld [vmem:[#allocation2 + $0x40] sm:$0xff] }
 0x1da   : > { %8397 = vmatprep.mubr.bf16.mxu1 %v2462_v41  ;;  %8466 = vmatpush3.bf16.msra.mxu1 %v9512_v63  ;;  %v2466_v63 = vsel %vm2451_vm2, %v2463_v56, %v2465_v45  ;;  %v10452_v41 = vld [vmem:[#allocation2 + $0x48] sm:$0xff] }
 0x1db   : > { %8467 = vmatprep.subr.bf16.mxu1 %v9513_v8  ;;  %v2469_v3 = vrot.slane %v10452_v41, 3 }
 0x1de   : > { %8468 = vmatpush3.bf16.msra.mxu1 %v9513_v8  ;;  %v2467_v8 = vrot.slane %v10449_v32, 3 }
 0x1df   : > { %8469 = vmatprep.subr.bf16.mxu1 %v9514_v15 }
 0x1e0   : > { %v2470_v56 = vsel %vm2451_vm2, %v2467_v8, %v2469_v3 }
 0x1e1   : > { %8398 = vmatmul.mubr.bf16.gmra.mrb[44].mxu1 %v2464_v9  ;;  %v10463_v9 = vld [vmem:[%s12255_s4 + $0xc0] sm:$0xff]  }
 0x1e2   : > { %8401 = vmatprep.mubr.bf16.mxu1 %v2466_v63  ;;  %8470 = vmatpush3.bf16.msra.mxu1 %v9514_v15  ;;  %v2468_v15 = vsel %vm2451_vm2, %v2465_v45, %v2467_v8  ;;  %v10465_v63 = vld [vmem:[#allocation2 + $0x50] sm:$0xff]  ;;  %v10474_v8 = vld [vmem:[#allocation2 + $0x60] sm:$0xff] }
 0x1e3   : > { %8471 = vmatprep.subr.bf16.mxu1 %v9515_v14 }
 0x1e6   : > { %8472 = vmatpush3.bf16.msra.mxu1 %v9515_v14  ;;  %v2471_v14 = vrot.slane %v10465_v63, 3 }
 0x1e7   : > { %8473 = vmatprep.subr.bf16.mxu1 %v9516_v37 }
 0x1e8   : > { %v2472_v45 = vsel %vm2451_vm2, %v2469_v3, %v2471_v14  ;;  %v3663_v3 = vrot.slane %v1992_v33, 4 }
 0x1e9   : > { %8402 = vmatmul.mubr.bf16.gmra.mrb[48].mxu1 %v2468_v15  ;;  %v2475_v15 = vrot.slane %v10474_v8, 3 }
 0x1ea   : > { %8405 = vmatprep.mubr.bf16.mxu1 %v2470_v56  ;;  %8474 = vmatpush3.bf16.msra.mxu1 %v9516_v37  ;;  %v2474_v37 = vsel %vm2451_vm2, %v2471_v14, %v2473_v1  ;;  %v2477_v56 = vrot.slane %v10024_v58, 3  ;;  %v3664_v14 = vrot.slane %v1995_v50, 5  ;;  %v2485_v50 = vrot.slane %v10063_v61, 3 }
 0x1eb   : > { %8475 = vmatprep.subr.bf16.mxu1 %v9517_v17  ;;  %v2476_v29 = vsel %vm2451_vm2, %v2473_v1, %v2475_v15 }
 0x1ec   : > { %v10490_v28 = vor.u32 %v3664_v14, %v3663_v3  ;;  %v2480_v33 = vsel %vm2451_vm2, %v2477_v56, %v2479_v39  ;;  %v10505_v3 = vld [vmem:[#allocation2 + $0x120] sm:$0x1f]  ;;  %v2487_v14 = vrot.slane %v10115_v25, 3 }
 0x1ee   : > { %8476 = vmatpush3.bf16.msra.mxu1 %v9517_v17  ;;  %v3660_v17 = vrot.slane %v1986_v42, 5  ;;  %12412 = vst [vmem:[#allocation7_spill] sm:$0xff] %v10490_v28  ;;  %v2481_v42 = vrot.slane %v10030_v12, 3 }
 0x1ef   : > { %8549 = vmatprep.subr.bf16.mxu1 %v10463_v9 }
 0x1f1   : > { %8406 = vmatmul.mubr.bf16.gmra.mrb[52].mxu1 %v2472_v45  ;;  %v2478_v45 = vsel %vm2451_vm2, %v2475_v15, %v2477_v56  ;;  %v12332_v56 = vrot.slane %v10378_v21, 5 }
 0x1f2   : > { %8409 = vmatprep.mubr.bf16.mxu1 %v2474_v37  ;;  %v10488_v37 = vor.u32 %v3660_v17, %v3659_v62  ;;  %v2483_v62 = vrot.slane %v10060_v43, 3 }
 0x1f4   : > { %12411 = vst [vmem:[#allocation6_spill] sm:$0xff] %v10488_v37  ;;  %v10496_v1 = vsel %vm3518_vm3, %v10488_v37, %v10490_v28  ;;  %v2484_v15 = vsel %vm2451_vm2, %v2481_v42, %v2483_v62  ;;  %v2486_v17 = vsel %vm2451_vm2, %v2483_v62, %v2485_v50 }
 0x1f5   : > { %12413 = vst [vmem:[#allocation8_spill] sm:$0xff] %v10496_v1  ;;  %v2493_v1 = vrot.slane %v10121_v0, 3 }
 0x1f9   : > { %8410 = vmatmul.mubr.bf16.gmra.mrb[56].mxu1 %v2476_v29  ;;  %v2482_v29 = vsel %vm2451_vm2, %v2479_v39, %v2481_v42  ;;  %v2489_v39 = vrot.slane %v10093_v16, 3  ;;  %v2488_v42 = vsel %vm2451_vm2, %v2485_v50, %v2487_v14 }
 0x1fa   : > { %8413 = vmatprep.mubr.bf16.mxu1 %v2478_v45  ;;  %v4245_v45 = vrot.slane %v10505_v3, 5 }
 0x201   : > { %8414 = vmatmul.mubr.bf16.gmra.mrb[60].mxu1 %v2480_v33  ;;  %v10514_v33 = vsel %vm4173_vm4, %v12332_v56, %v4245_v45  ;;  %v2497_v56 = vrot.slane %v10159_v27, 3 }
 0x202   : > { %8417 = vmatprep.mubr.bf16.mxu1 %v2482_v29  ;;  %12414 = vst [vmem:[#allocation9_spill] sm:$0xff] %v10514_v33  ;;  %v2490_v29 = vsel %vm2451_vm2, %v2487_v14, %v2489_v39 }
 0x209   : > { %8418 = vmatmul.mubr.bf16.gmra.mrb[64].mxu1 %v2484_v15 }
 0x20a   : > { %8421 = vmatprep.mubr.bf16.mxu1 %v2486_v17  ;;  %v2491_v17 = vrot.slane %v10118_v26, 3 }
 0x20c   : > { %v2492_v45 = vsel %vm2451_vm2, %v2489_v39, %v2491_v17  ;;  %v2494_v50 = vsel %vm2451_vm2, %v2491_v17, %v2493_v1 }
 0x211   : > { %8422 = vmatmul.mubr.bf16.gmra.mrb[68].mxu1 %v2488_v42  ;;  %v2495_v42 = vrot.slane %v10149_v40, 3 }
 0x212   : > { %8425 = vmatprep.mubr.bf16.mxu1 %v2490_v29 }
 0x213   : > { %v10518_v62 = vpop.f32.mrb[72].mxu0  ;;  %v2498_v39 = vsel %vm2451_vm2, %v2495_v42, %v2497_v56 }
 0x214   : > { %12415 = vst [vmem:[#allocation10_spill] sm:$0xff] %v10518_v62  ;;  %v10520_v15 = vpop.f32.mrb[73].mxu0 }
 0x215   : > { %12416 = vst [vmem:[#allocation11_spill] sm:$0xff] %v10520_v15  ;;  %v10523_v28 = vpop.f32.mrb[74].mxu0 }
 0x216   : > { %12417 = vst [vmem:[#allocation12_spill] sm:$0xff] %v10523_v28  ;;  %v10526_v37 = vpop.f32.mrb[75].mxu0 }
 0x217   : > { %12418 = vst [vmem:[#allocation13_spill] sm:$0xff] %v10526_v37  ;;  %v2496_v37 = vsel %vm2451_vm2, %v2493_v1, %v2495_v42  ;;  %v2503_v42 = vrot.slane %v10245_v22, 3 }
 0x219   : > { %8426 = vmatmul.mubr.bf16.gmra.mrb[0].mxu1 %v2492_v45  ;;  %v2499_v45 = vrot.slane %v10196_v4, 3 }
 0x21a   : > { %8429 = vmatprep.mubr.bf16.mxu1 %v2494_v50 }
 0x21b   : > { %v10530_v14 = vpop.f32.mrb[76].mxu0 }
 0x21c   : > { %12419 = vst [vmem:[#allocation14_spill] sm:$0xff] %v10530_v14  ;;  %v10533_v29 = vpop.f32.mrb[77].mxu0 }
 0x21d   : > { %12420 = vst [vmem:[#allocation15_spill] sm:$0xff] %v10533_v29  ;;  %v10536_v15 = vpop.f32.mrb[78].mxu0  ;;  %v2501_v29 = vrot.slane %v10199_v51, 3 }
 0x21e   : > { %12421 = vst [vmem:[#allocation16_spill] sm:$0xff] %v10536_v15  ;;  %v10538_v28 = vpop.f32.mrb[79].mxu0 }
 0x21f   : > { %12422 = vst [vmem:[#allocation17_spill] sm:$0xff] %v10538_v28  ;;  %v2500_v28 = vsel %vm2451_vm2, %v2497_v56, %v2499_v45 }
 0x221   : > { %8430 = vmatmul.mubr.bf16.gmra.mrb[4].mxu1 %v2496_v37  ;;  %v2502_v37 = vsel %vm2451_vm2, %v2499_v45, %v2501_v29  ;;  %v2507_v45 = vrot.slane %v10278_v34, 3 }
 0x222   : > { %8433 = vmatprep.mubr.bf16.mxu1 %v2498_v39 }
 0x223   : > { %v10542_v17 = vpop.f32.mrb[80].mxu0 }
 0x224   : > { %12423 = vst [vmem:[#allocation18_spill] sm:$0xff] %v10542_v17  ;;  %v10545_v50 = vpop.f32.mrb[81].mxu0 }
 0x225   : > { %12424 = vst [vmem:[#allocation19_spill] sm:$0xff] %v10545_v50  ;;  %v10548_v14 = vpop.f32.mrb[82].mxu0  ;;  %v2505_v50 = vrot.slane %v10272_v13, 3 }
 0x226   : > { %12425 = vst [vmem:[#allocation20_spill] sm:$0xff] %v10548_v14  ;;  %v10550_v62 = vpop.f32.mrb[83].mxu0 }
 0x227   : > { %12426 = vst [vmem:[#allocation21_spill] sm:$0xff] %v10550_v62  ;;  %v2504_v62 = vsel %vm2451_vm2, %v2501_v29, %v2503_v42 }
 0x229   : > { %8434 = vmatmul.mubr.bf16.gmra.mrb[8].mxu1 %v2500_v28  ;;  %v2506_v28 = vsel %vm2451_vm2, %v2503_v42, %v2505_v50  ;;  %v2511_v42 = vrot.slane %v10322_v18, 3 }
 0x22a   : > { %8437 = vmatprep.mubr.bf16.mxu1 %v2502_v37 }
 0x22b   : > { %v10554_v1 = vpop.f32.mrb[84].mxu0 }
 0x22c   : > { %12427 = vst [vmem:[#allocation22_spill] sm:$0xff] %v10554_v1  ;;  %v10557_v39 = vpop.f32.mrb[85].mxu0 }
 0x22d   : > { %12428 = vst [vmem:[#allocation23_spill] sm:$0xff] %v10557_v39  ;;  %v10560_v17 = vpop.f32.mrb[86].mxu0  ;;  %v2509_v39 = vrot.slane %v10281_v35, 3 }
 0x22e   : > { %12429 = vst [vmem:[#allocation24_spill] sm:$0xff] %v10560_v17  ;;  %v10562_v15 = vpop.f32.mrb[87].mxu0 }
 0x22f   : > { %12430 = vst [vmem:[#allocation25_spill] sm:$0xff] %v10562_v15  ;;  %v2508_v15 = vsel %vm2451_vm2, %v2505_v50, %v2507_v45 }
 0x231   : > { %8438 = vmatmul.mubr.bf16.gmra.mrb[12].mxu1 %v2504_v62  ;;  %v2510_v62 = vsel %vm2451_vm2, %v2507_v45, %v2509_v39  ;;  %v2515_v45 = vrot.slane %v10346_v48, 3 }
 0x232   : > { %8441 = vmatprep.mubr.bf16.mxu1 %v2506_v28 }
 0x233   : > { %v10566_v56 = vpop.f32.mrb[88].mxu0 }
 0x234   : > { %12431 = vst [vmem:[#allocation26_spill] sm:$0xff] %v10566_v56  ;;  %v10569_v37 = vpop.f32.mrb[89].mxu0 }
 0x235   : > { %12432 = vst [vmem:[#allocation27_spill] sm:$0xff] %v10569_v37  ;;  %v10572_v1 = vpop.f32.mrb[90].mxu0  ;;  %v2513_v37 = vrot.slane %v10343_v60, 3 }
 0x236   : > { %12433 = vst [vmem:[#allocation28_spill] sm:$0xff] %v10572_v1  ;;  %v10574_v14 = vpop.f32.mrb[91].mxu0 }
 0x237   : > { %12434 = vst [vmem:[#allocation29_spill] sm:$0xff] %v10574_v14  ;;  %v2512_v14 = vsel %vm2451_vm2, %v2509_v39, %v2511_v42 }
 0x239   : > { %8442 = vmatmul.mubr.bf16.gmra.mrb[16].mxu1 %v2508_v15  ;;  %v2514_v15 = vsel %vm2451_vm2, %v2511_v42, %v2513_v37  ;;  %v2519_v42 = vrot.slane %v10375_v44, 3 }
 0x23a   : > { %8445 = vmatprep.mubr.bf16.mxu1 %v2510_v62 }
 0x23b   : > { %v10578_v29 = vpop.f32.mrb[92].mxu0 }
 0x23c   : > { %12435 = vst [vmem:[#allocation30_spill] sm:$0xff] %v10578_v29  ;;  %v10581_v28 = vpop.f32.mrb[93].mxu0 }
 0x23d   : > { %12436 = vst [vmem:[#allocation31_spill] sm:$0xff] %v10581_v28  ;;  %v10584_v56 = vpop.f32.mrb[94].mxu0  ;;  %v2517_v28 = vrot.slane %v10349_v55, 3 }
 0x23e   : > { %12437 = vst [vmem:[#allocation32_spill] sm:$0xff] %v10584_v56  ;;  %v10586_v17 = vpop.f32.mrb[95].mxu0 }
 0x23f   : > { %12438 = vst [vmem:[#allocation33_spill] sm:$0xff] %v10586_v17  ;;  %v2516_v17 = vsel %vm2451_vm2, %v2513_v37, %v2515_v45  ;;  %v1641_v37 = vld [vmem:[#allocation2 + $0x120] sm:$0x7] }
 0x241   : > { %8446 = vmatmul.mubr.bf16.gmra.mrb[20].mxu1 %v2512_v14  ;;  %v2518_v14 = vsel %vm2451_vm2, %v2515_v45, %v2517_v28  ;;  %v10614_v45 = vld [vmem:[#allocation2] sm:$0xf0] }
 0x242   : > { %8449 = vmatprep.mubr.bf16.mxu1 %v2514_v15 }
 0x244   : > { %v10590_v50 = vpop.f32.mrb[96].mxu0 }
 0x245   : > { %12439 = vst [vmem:[#allocation34_spill] sm:$0xff] %v10590_v50  ;;  %v10593_v62 = vpop.f32.mrb[97].mxu0 }
 0x246   : > { %12440 = vst [vmem:[#allocation35_spill] sm:$0xff] %v10593_v62  ;;  %v10596_v29 = vpop.f32.mrb[98].mxu0  ;;  %v2521_v62 = vrot.slane %v10378_v21, 3 }
 0x247   : > { %12441 = vst [vmem:[#allocation36_spill] sm:$0xff] %v10596_v29  ;;  %v10598_v1 = vpop.f32.mrb[99].mxu0 }
 0x248   : > { %12442 = vst [vmem:[#allocation37_spill] sm:$0xff] %v10598_v1  ;;  %v2520_v1 = vsel %vm2451_vm2, %v2517_v28, %v2519_v42 }
 0x249   : > { %8450 = vmatmul.mubr.bf16.gmra.mrb[24].mxu1 %v2516_v17  ;;  %v2522_v17 = vsel %vm2451_vm2, %v2519_v42, %v2521_v62  ;;  %v2953_v42 = vrot.slane %v10406_v54, 4  ;;  %v9520_v54 = vld [vmem:[%s12255_s4 + $0xd0] sm:$0xff]  }
 0x24a   : > { %8453 = vmatprep.mubr.bf16.mxu1 %v2518_v14  ;;  %v2523_v14 = vrot.slane %v1641_v37, 3  ;;  %v2955_v37 = vrot.slane %v10409_v57, 4  ;;  %v2959_v57 = vrot.slane %v10424_v5, 4  ;;  %v2961_v5 = vrot.slane %v10435_v20, 4  ;;  %v9524_v20 = vld [vmem:[%s12255_s4 + $0xf0] sm:$0xff]  }
 0x24c   : > { %v10602_v39 = vpop.f32.mrb[100].mxu0  ;;  %v2524_v29 = vsel %vm2451_vm2, %v2521_v62, %v2523_v14  ;;  %v2956_v62 = vsel %vm1436_vm0, %v2953_v42, %v2955_v37  ;;  %v2963_v14 = vrot.slane %v10438_v19, 4  ;;  %v2965_v19 = vrot.slane %v10449_v32, 4  ;;  %v10669_v32 = vld [vmem:[%s12255_s4 + $0x100] sm:$0xff]  }
 0x24d   : > { %12443 = vst [vmem:[#allocation38_spill] sm:$0xff] %v10602_v39  ;;  %v10605_v15 = vpop.f32.mrb[101].mxu0  ;;  %v2950_v39 = vrot.slane %v10614_v45, 4 }
 0x24e   : > { %12444 = vst [vmem:[#allocation39_spill] sm:$0xff] %v10605_v15  ;;  %v10608_v50 = vpop.f32.mrb[102].mxu0  ;;  %v2951_v15 = vrot.slane %v10401_v36, 4  ;;  %v9519_v36 = vld [vmem:[%s12255_s4 + $0xc8] sm:$0xff]  }
 0x24f   : > { %12445 = vst [vmem:[#allocation40_spill] sm:$0xff] %v10608_v50  ;;  %v10610_v56 = vpop.f32.mrb[103].mxu0 }
 0x250   : > { %12446 = vst [vmem:[#allocation41_spill] sm:$0xff] %v10610_v56  ;;  %v2952_v50 = vsel %vm1436_vm0, %v2950_v39, %v2951_v15  ;;  %v9521_v39 = vld [vmem:[%s12255_s4 + $0xd8] sm:$0xff]  }
 0x251   : > { %8454 = vmatmul.mubr.bf16.gmra.mrb[28].mxu1 %v2520_v1 }
 0x252   : > { %8457 = vmatprep.mubr.bf16.mxu1 %v2522_v17 }
 0x259   : > { %8458 = vmatmul.mubr.bf16.gmra.mrb[32].mxu1 %v2524_v29  ;;  %v2954_v29 = vsel %vm1436_vm0, %v2951_v15, %v2953_v42  ;;  %v9523_v42 = vld [vmem:[%s12255_s4 + $0xe8] sm:$0xff]  }
 0x25a   : > { %v10620_v56 = vpop.f32.mrb[104].mxu0  ;;  %8477 = vmatprep.mubr.bf16.mxu1 %v2952_v50  ;;  %v2957_v50 = vrot.slane %v10421_v6, 4  ;;  %v9522_v6 = vld [vmem:[%s12255_s4 + $0xe0] sm:$0xff]  }
 0x25b   : > { %12447 = vst [vmem:[#allocation42_spill] sm:$0xff] %v10620_v56  ;;  %v10622_v1 = vpop.f32.mrb[105].mxu0 }
 0x25c   : > { %12448 = vst [vmem:[#allocation43_spill] sm:$0xff] %v10622_v1  ;;  %v10624_v28 = vpop.f32.mrb[106].mxu0  ;;  %v2958_v15 = vsel %vm1436_vm0, %v2955_v37, %v2957_v50  ;;  %v2962_v37 = vsel %vm1436_vm0, %v2959_v57, %v2961_v5  ;;  %v3003_v1 = vrot.slane %v10272_v13, 4 }
 0x25d   : > { %12449 = vst [vmem:[#allocation44_spill] sm:$0xff] %v10624_v28  ;;  %v10627_v17 = vpop.f32.mrb[107].mxu0  ;;  %v3001_v28 = vrot.slane %v10245_v22, 4 }
 0x25e   : > { %12450 = vst [vmem:[#allocation45_spill] sm:$0xff] %v10627_v17 }
 0x261   : > { %8478 = vmatmul.mubr.bf16.vlgmr.msra.gmra.mrb[36].mxu1 %v2954_v29  ;;  %v2967_v29 = vrot.slane %v10452_v41, 4  ;;  %v2969_v41 = vrot.slane %v10465_v63, 4  ;;  %v10682_v63 = vld [vmem:[#allocation2 + $0x70] sm:$0xff] }
 0x262   : > { %8550 = vmatpush3.bf16.msra.mxu1 %v10463_v9  ;;  %8481 = vmatprep.mubr.bf16.mxu1 %v2956_v62  ;;  %v2960_v9 = vsel %vm1436_vm0, %v2957_v50, %v2959_v57  ;;  %v9525_v62 = vld [vmem:[%s12255_s4 + $0xf8] sm:$0xff]   ;;  %v2971_v57 = vrot.slane %v10468_v2, 4 }
 0x263   : > { %8551 = vmatprep.subr.bf16.mxu1 %v9519_v36  ;;  %v2968_v50 = vsel %vm1436_vm0, %v2965_v19, %v2967_v29 }
 0x266   : > { %8552 = vmatpush3.bf16.msra.mxu1 %v9519_v36  ;;  %v2964_v36 = vsel %vm1436_vm0, %v2961_v5, %v2963_v14 }
 0x267   : > { %8553 = vmatprep.subr.bf16.mxu1 %v9520_v54 }
 0x269   : > { %8482 = vmatmul.mubr.bf16.gmra.mrb[40].mxu1 %v2958_v15  ;;  %v2972_v15 = vsel %vm1436_vm0, %v2969_v41, %v2971_v57 }
 0x26a   : > { %8485 = vmatprep.mubr.bf16.mxu1 %v2960_v9  ;;  %8554 = vmatpush3.bf16.msra.mxu1 %v9520_v54  ;;  %v2966_v54 = vsel %vm1436_vm0, %v2963_v14, %v2965_v19  ;;  %v2973_v9 = vrot.slane %v10474_v8, 4 }
 0x26b   : > { %8555 = vmatprep.subr.bf16.mxu1 %v9521_v39 }
 0x26c   : > { %v2974_v14 = vsel %vm1436_vm0, %v2971_v57, %v2973_v9 }
 0x26e   : > { %8556 = vmatpush3.bf16.msra.mxu1 %v9521_v39  ;;  %v2970_v39 = vsel %vm1436_vm0, %v2967_v29, %v2969_v41  ;;  %v10690_v29 = vld [vmem:[#allocation2 + $0x80] sm:$0xff] }
 0x26f   : > { %8557 = vmatprep.subr.bf16.mxu1 %v9522_v6 }
 0x271   : > { %8486 = vmatmul.mubr.bf16.gmra.mrb[44].mxu1 %v2962_v37  ;;  %v10685_v37 = vld [vmem:[#allocation2 + $0x78] sm:$0xff] }
 0x272   : > { %8489 = vmatprep.mubr.bf16.mxu1 %v2964_v36  ;;  %8558 = vmatpush3.bf16.msra.mxu1 %v9522_v6  ;;  %v10677_v6 = vld [vmem:[#allocation2 + $0x68] sm:$0xff]  ;;  %v2979_v36 = vrot.slane %v10685_v37, 4 }
 0x273   : > { %8559 = vmatprep.subr.bf16.mxu1 %v9523_v42  ;;  %v2975_v5 = vrot.slane %v10677_v6, 4 }
 0x275   : > { %v2976_v2 = vsel %vm1436_vm0, %v2973_v9, %v2975_v5  ;;  %v10701_v9 = vld [vmem:[#allocation2 + $0x98] sm:$0xff] }
 0x276   : > { %8560 = vmatpush3.bf16.msra.mxu1 %v9523_v42  ;;  %v2977_v42 = vrot.slane %v10682_v63, 4 }
 0x277   : > { %8561 = vmatprep.subr.bf16.mxu1 %v9524_v20 }
 0x278   : > { %v2980_v19 = vsel %vm1436_vm0, %v2977_v42, %v2979_v36 }
 0x279   : > { %8490 = vmatmul.mubr.bf16.gmra.mrb[48].mxu1 %v2966_v54  ;;  %v10693_v54 = vld [vmem:[#allocation2 + $0x88] sm:$0xff] }
 0x27a   : > { %8493 = vmatprep.mubr.bf16.mxu1 %v2968_v50  ;;  %8562 = vmatpush3.bf16.msra.mxu1 %v9524_v20  ;;  %v2978_v20 = vsel %vm1436_vm0, %v2975_v5, %v2977_v42  ;;  %v2983_v50 = vrot.slane %v10693_v54, 4  ;;  %v2987_v5 = vrot.slane %v10701_v9, 4  ;;  %v10706_v42 = vld [vmem:[#allocation2 + $0xa0] sm:$0xff] }
 0x27b   : > { %8563 = vmatprep.subr.bf16.mxu1 %v9525_v62 }
 0x27e   : > { %8564 = vmatpush3.bf16.msra.mxu1 %v9525_v62  ;;  %v2981_v62 = vrot.slane %v10690_v29, 4 }
 0x27f   : > { %8637 = vmatprep.subr.bf16.mxu1 %v10669_v32 }
 0x280   : > { %v2982_v41 = vsel %vm1436_vm0, %v2979_v36, %v2981_v62  ;;  %v2984_v57 = vsel %vm1436_vm0, %v2981_v62, %v2983_v50  ;;  %v2989_v36 = vrot.slane %v10706_v42, 4 }
 0x281   : > { %8494 = vmatmul.mubr.bf16.gmra.mrb[52].mxu1 %v2970_v39  ;;  %v10698_v39 = vld [vmem:[#allocation2 + $0x90] sm:$0xff] }
 0x282   : > { %8497 = vmatprep.mubr.bf16.mxu1 %v2972_v15  ;;  %v2985_v15 = vrot.slane %v10698_v39, 4  ;;  %v2990_v62 = vsel %vm1436_vm0, %v2987_v5, %v2989_v36 }
 0x289   : > { %8498 = vmatmul.mubr.bf16.gmra.mrb[56].mxu1 %v2974_v14  ;;  %v2986_v14 = vsel %vm1436_vm0, %v2983_v50, %v2985_v15 }
 0x28a   : > { %8501 = vmatprep.mubr.bf16.mxu1 %v2976_v2  ;;  %v2988_v2 = vsel %vm1436_vm0, %v2985_v15, %v2987_v5  ;;  %v10717_v15 = vld [vmem:[#allocation2 + $0xb8] sm:$0xff]  ;;  %v2997_v5 = vrot.slane %v10196_v4, 4 }
 0x28b   : > { %12451 = vst [vmem:[#allocation46_spill] sm:$0xff] %v10717_v15 }
 0x291   : > { %8502 = vmatmul.mubr.bf16.gmra.mrb[60].mxu1 %v2978_v20  ;;  %v10709_v20 = vld [vmem:[#allocation2 + $0xa8] sm:$0xff] }
 0x292   : > { %8505 = vmatprep.mubr.bf16.mxu1 %v2980_v19  ;;  %v2991_v19 = vrot.slane %v10709_v20, 4 }
 0x299   : > { %8506 = vmatmul.mubr.bf16.gmra.mrb[64].mxu1 %v2982_v41  ;;  %v2992_v41 = vsel %vm1436_vm0, %v2989_v36, %v2991_v19 }
 0x29a   : > { %8509 = vmatprep.mubr.bf16.mxu1 %v2984_v57  ;;  %v10714_v57 = vld [vmem:[#allocation2 + $0xb0] sm:$0xff] }
 0x29b   : > { %v2993_v50 = vrot.slane %v10714_v57, 4 }
 0x2a1   : > { %8510 = vmatmul.mubr.bf16.gmra.mrb[68].mxu1 %v2986_v14  ;;  %v2995_v14 = vrot.slane %v10717_v15, 4 }
 0x2a2   : > { %8513 = vmatprep.mubr.bf16.mxu1 %v2988_v2  ;;  %v2994_v2 = vsel %vm1436_vm0, %v2991_v19, %v2993_v50 }
 0x2a3   : > { %v2996_v17 = vsel %vm1436_vm0, %v2993_v50, %v2995_v14  ;;  %v2998_v36 = vsel %vm1436_vm0, %v2995_v14, %v2997_v5  ;;  %v3004_v50 = vsel %vm1436_vm0, %v3001_v28, %v3003_v1 }
 0x2a9   : > { %8514 = vmatmul.mubr.bf16.gmra.mrb[0].mxu1 %v2990_v62  ;;  %v2999_v62 = vrot.slane %v10199_v51, 4 }
 0x2aa   : > { %8517 = vmatprep.mubr.bf16.mxu1 %v2992_v41 }
 0x2ab   : > { %v3000_v41 = vsel %vm1436_vm0, %v2997_v5, %v2999_v62  ;;  %v3002_v19 = vsel %vm1436_vm0, %v2999_v62, %v3001_v28 }
 0x2b1   : > { %8518 = vmatmul.mubr.bf16.gmra.mrb[4].mxu1 %v2994_v2  ;;  %v3007_v2 = vrot.slane %v10281_v35, 4 }
 0x2b2   : > { %8521 = vmatprep.mubr.bf16.mxu1 %v2996_v17  ;;  %v3005_v17 = vrot.slane %v10278_v34, 4 }
 0x2b4   : > { %v3006_v14 = vsel %vm1436_vm0, %v3003_v1, %v3005_v17  ;;  %v3008_v5 = vsel %vm1436_vm0, %v3005_v17, %v3007_v2 }
 0x2b9   : > { %8522 = vmatmul.mubr.bf16.gmra.mrb[8].mxu1 %v2998_v36  ;;  %v3009_v36 = vrot.slane %v10322_v18, 4 }
 0x2ba   : > { %8525 = vmatprep.mubr.bf16.mxu1 %v3000_v41  ;;  %v3011_v41 = vrot.slane %v10343_v60, 4 }
 0x2bb   : > { %v3010_v62 = vsel %vm1436_vm0, %v3007_v2, %v3009_v36  ;;  %v3520_v2 = vshrl.u32 %v10614_v45, 16 }
 0x2bc   : > { %v3012_v28 = vsel %vm1436_vm0, %v3009_v36, %v3011_v41 }
 0x2bd   : > { %v3522_v56 = vrot.slane %v3520_v2, 4 }
 0x2c1   : > { %8526 = vmatmul.mubr.bf16.gmra.mrb[12].mxu1 %v3002_v19  ;;  %v3013_v19 = vrot.slane %v10346_v48, 4 }
 0x2c2   : > { %8529 = vmatprep.mubr.bf16.mxu1 %v3004_v50  ;;  %v3015_v50 = vrot.slane %v10349_v55, 4 }
 0x2c3   : > { %v3014_v1 = vsel %vm1436_vm0, %v3011_v41, %v3013_v19  ;;  %v12452_v41 = vshrl.u32 %v9833_v24, 16 }
 0x2c4   : > { %v3016_v17 = vsel %vm1436_vm0, %v3013_v19, %v3015_v50 }
 0x2c5   : > { %v3527_v19 = vrot.slane %v12452_v41, 4 }
 0x2c9   : > { %8530 = vmatmul.mubr.bf16.gmra.mrb[16].mxu1 %v3006_v14  ;;  %v3017_v14 = vrot.slane %v10375_v44, 4 }
 0x2ca   : > { %8533 = vmatprep.mubr.bf16.mxu1 %v3008_v5  ;;  %v3019_v5 = vrot.slane %v10378_v21, 4 }
 0x2cb   : > { %v3018_v36 = vsel %vm1436_vm0, %v3015_v50, %v3017_v14  ;;  %v12454_v50 = vshrl.u32 %v9851_v52, 16 }
 0x2d1   : > { %8534 = vmatmul.mubr.bf16.gmra.mrb[20].mxu1 %v3010_v62  ;;  %v3523_v62 = vshll.u32 %v10614_v45, 16 }
 0x2d2   : > { %8537 = vmatprep.mubr.bf16.mxu1 %v3012_v28  ;;  %v3020_v28 = vsel %vm1436_vm0, %v3017_v14, %v3019_v5  ;;  %v12455_v14 = vshll.u32 %v9851_v52, 16  ;;  %v12458_v52 = vshrl.u32 %v9876_v23, 16 }
 0x2d3   : > { %v3525_v33 = vrot.slane %v3523_v62, 5 }
 0x2d4   : > { %v3532_v2 = vrot.slane %v12455_v14, 5 }
 0x2d5   : > { %v3526_v21 = vor.u32 %v3525_v33, %v3522_v56  ;;  %v9527_v56 = vld [vmem:[%s12255_s4 + $0x108] sm:$0xff]  }
 0x2d9   : > { %8538 = vmatmul.mubr.bf16.gmra.mrb[24].mxu1 %v3014_v1  ;;  %v12453_v1 = vshll.u32 %v9833_v24, 16  ;;  %v12457_v24 = vshll.u32 %v9854_v53, 16 }
 0x2da   : > { %8541 = vmatprep.mubr.bf16.mxu1 %v3016_v17  ;;  %v3021_v17 = vrot.slane %v10387_v31, 4 }
 0x2db   : > { %v3528_v44 = vrot.slane %v12453_v1, 5  ;;  %v3536_v1 = vrot.slane %v12457_v24, 5 }
 0x2dc   : > { %v3022_v45 = vsel %vm1436_vm0, %v3019_v5, %v3021_v17 }
 0x2dd   : > { %v3529_v15 = vor.u32 %v3528_v44, %v3527_v19  ;;  %v3539_v19 = vrot.slane %v12458_v52, 4 }
 0x2df   : > { %v3530_v62 = vsel %vm3518_vm3, %v3526_v21, %v3529_v15  ;;  %v12459_v21 = vshll.u32 %v9876_v23, 16 }
 0x2e1   : > { %8542 = vmatmul.mubr.bf16.gmra.mrb[28].mxu1 %v3018_v36  ;;  %v3531_v36 = vrot.slane %v12454_v50, 4  ;;  %v3540_v44 = vrot.slane %v12459_v21, 5  ;;  %v12461_v50 = vshll.u32 %v9883_v30, 16 }
 0x2e2   : > { %8545 = vmatprep.mubr.bf16.mxu1 %v3020_v28  ;;  %v12456_v28 = vshrl.u32 %v9854_v53, 16  ;;  %v12460_v53 = vshrl.u32 %v9883_v30, 16  ;;  %v12462_v30 = vshrl.u32 %v9914_v10, 16 }
 0x2e3   : > { %v3533_v31 = vor.u32 %v3532_v2, %v3531_v36  ;;  %v3544_v36 = vrot.slane %v12461_v50, 5  ;;  %v3541_v14 = vor.u32 %v3540_v44, %v3539_v19  ;;  %v9529_v2 = vld [vmem:[%s12255_s4 + $0x118] sm:$0xff]   ;;  %v12468_v50 = vshrl.u32 %v9962_v38, 16 }
 0x2e4   : > { %v3535_v41 = vrot.slane %v12456_v28, 4  ;;  %v3547_v28 = vrot.slane %v12462_v30, 4 }
 0x2e5   : > { %v3534_v5 = vsel %vm3518_vm3, %v3529_v15, %v3533_v31  ;;  %v9528_v15 = vld [vmem:[%s12255_s4 + $0x110] sm:$0xff]  }
 0x2e6   : > { %v3537_v33 = vor.u32 %v3536_v1, %v3535_v41  ;;  %v12464_v1 = vshrl.u32 %v9917_v11, 16 }
 0x2e8   : > { %v3538_v17 = vsel %vm3518_vm3, %v3533_v31, %v3537_v33  ;;  %v3551_v31 = vrot.slane %v12464_v1, 4  ;;  %v12472_v1 = vshrl.u32 %v9971_v47, 16 }
 0x2e9   : > { %8546 = vmatmul.mubr.bf16.gmra.mrb[32].mxu1 %v3022_v45  ;;  %v3543_v45 = vrot.slane %v12460_v53, 4 }
 0x2ea   : > { %8565 = vmatprep.mubr.bf16.mxu1 %v3530_v62  ;;  %v3542_v62 = vsel %vm3518_vm3, %v3537_v33, %v3541_v14  ;;  %v9530_v33 = vld [vmem:[%s12255_s4 + $0x120] sm:$0xff]  }
 0x2eb   : > { %v3545_v23 = vor.u32 %v3544_v36, %v3543_v45  ;;  %v3559_v36 = vrot.slane %v12468_v50, 4 }
 0x2ed   : > { %v3546_v24 = vsel %vm3518_vm3, %v3541_v14, %v3545_v23 }
 0x2f1   : > { %8566 = vmatmul.mubr.bf16.vlgmr.msra.gmra.mrb[36].mxu1 %v3534_v5 }
 0x2f2   : > { %8638 = vmatpush3.bf16.msra.mxu1 %v10669_v32  ;;  %8569 = vmatprep.mubr.bf16.mxu1 %v3538_v17  ;;  %v12463_v32 = vshll.u32 %v9914_v10, 16  ;;  %v9531_v10 = vld [vmem:[%s12255_s4 + $0x128] sm:$0xff]   ;;  %v12467_v17 = vshll.u32 %v9944_v59, 16 }
 0x2f3   : > { %8639 = vmatprep.subr.bf16.mxu1 %v9527_v56 }
 0x2f4   : > { %v3548_v41 = vrot.slane %v12463_v32, 5  ;;  %v3556_v53 = vrot.slane %v12467_v17, 5  ;;  %v12471_v32 = vshll.u32 %v9968_v46, 16 }
 0x2f6   : > { %8640 = vmatpush3.bf16.msra.mxu1 %v9527_v56  ;;  %v12465_v56 = vshll.u32 %v9917_v11, 16  ;;  %v3549_v52 = vor.u32 %v3548_v41, %v3547_v28  ;;  %v12466_v11 = vshrl.u32 %v9944_v59, 16  ;;  %v9533_v59 = vld [vmem:[%s12255_s4 + $0x138] sm:$0xff]   ;;  %v3564_v41 = vrot.slane %v12471_v32, 5 }
 0x2f7   : > { %8641 = vmatprep.subr.bf16.mxu1 %v9528_v15 }
 0x2f8   : > { %v3552_v5 = vrot.slane %v12465_v56, 5  ;;  %v3550_v21 = vsel %vm3518_vm3, %v3545_v23, %v3549_v52  ;;  %v3555_v44 = vrot.slane %v12466_v11, 4  ;;  %v9532_v23 = vld [vmem:[%s12255_s4 + $0x130] sm:$0xff]   ;;  %v12473_v56 = vshll.u32 %v9971_v47, 16 }
 0x2f9   : > { %8570 = vmatmul.mubr.bf16.gmra.mrb[40].mxu1 %v3542_v62  ;;  %v12476_v47 = vshrl.u32 %v10024_v58, 16 }
 0x2fa   : > { %8573 = vmatprep.mubr.bf16.mxu1 %v3546_v24  ;;  %8642 = vmatpush3.bf16.msra.mxu1 %v9528_v15  ;;  %v3553_v19 = vor.u32 %v3552_v5, %v3551_v31  ;;  %v12469_v15 = vshll.u32 %v9962_v38, 16  ;;  %v12470_v38 = vshrl.u32 %v9968_v46, 16  ;;  %v3567_v31 = vrot.slane %v12472_v1, 4 }
 0x2fb   : > { %8643 = vmatprep.subr.bf16.mxu1 %v9529_v2  ;;  %v3568_v5 = vrot.slane %v12473_v56, 5  ;;  %v12474_v46 = vshrl.u32 %v10002_v49, 16  ;;  %v3575_v17 = vrot.slane %v12476_v47, 4 }
 0x2fc   : > { %v3554_v45 = vsel %vm3518_vm3, %v3549_v52, %v3553_v19  ;;  %v3560_v14 = vrot.slane %v12469_v15, 5  ;;  %v3563_v28 = vrot.slane %v12470_v38, 4 }
 0x2fd   : > { %v3569_v52 = vor.u32 %v3568_v5, %v3567_v31  ;;  %v12484_v5 = vshrl.u32 %v10063_v61, 16 }
 0x2fe   : > { %8644 = vmatpush3.bf16.msra.mxu1 %v9529_v2  ;;  %v3557_v2 = vor.u32 %v3556_v53, %v3555_v44  ;;  %v3561_v62 = vor.u32 %v3560_v14, %v3559_v36  ;;  %v12477_v53 = vshll.u32 %v10024_v58, 16  ;;  %v12478_v14 = vshrl.u32 %v10027_v7, 16 }
 0x2ff   : > { %8645 = vmatprep.subr.bf16.mxu1 %v9530_v33  ;;  %v12481_v58 = vshll.u32 %v10030_v12, 16 }
 0x300   : > { %v3558_v30 = vsel %vm3518_vm3, %v3553_v19, %v3557_v2  ;;  %v3562_v24 = vsel %vm3518_vm3, %v3557_v2, %v3561_v62 }
 0x301   : > { %8574 = vmatmul.mubr.bf16.gmra.mrb[44].mxu1 %v3550_v21  ;;  %v12475_v21 = vshll.u32 %v10002_v49, 16  ;;  %v12479_v49 = vshll.u32 %v10027_v7, 16  ;;  %v3584_v38 = vrot.slane %v12481_v58, 5  ;;  %v12483_v7 = vshll.u32 %v10060_v43, 16 }
 0x302   : > { %8577 = vmatprep.mubr.bf16.mxu1 %v3554_v45  ;;  %8646 = vmatpush3.bf16.msra.mxu1 %v9530_v33  ;;  %v3565_v33 = vor.u32 %v3564_v41, %v3563_v28  ;;  %v3576_v45 = vrot.slane %v12477_v53, 5 }
 0x303   : > { %8647 = vmatprep.subr.bf16.mxu1 %v9531_v10  ;;  %v3572_v11 = vrot.slane %v12475_v21, 5  ;;  %v3580_v2 = vrot.slane %v12479_v49, 5  ;;  %v3588_v31 = vrot.slane %v12483_v7, 5  ;;  %v12486_v21 = vshrl.u32 %v10115_v25, 16 }
 0x304   : > { %v3566_v19 = vsel %vm3518_vm3, %v3561_v62, %v3565_v33  ;;  %v3570_v44 = vsel %vm3518_vm3, %v3565_v33, %v3569_v52  ;;  %v3577_v36 = vor.u32 %v3576_v45, %v3575_v17  ;;  %v3591_v33 = vrot.slane %v12484_v5, 4 }
 0x305   : > { %v12488_v17 = vshrl.u32 %v10093_v16, 16  ;;  %v12496_v7 = vshrl.u32 %v10159_v27, 16 }
 0x306   : > { %8648 = vmatpush3.bf16.msra.mxu1 %v9531_v10  ;;  %v3571_v10 = vrot.slane %v12474_v46, 4 }
 0x307   : > { %8649 = vmatprep.subr.bf16.mxu1 %v9532_v23  ;;  %v3599_v53 = vrot.slane %v12488_v17, 4 }
 0x308   : > { %v3573_v50 = vor.u32 %v3572_v11, %v3571_v10  ;;  %v3595_v11 = vrot.slane %v12486_v21, 4  ;;  %v12500_v21 = vshrl.u32 %v10199_v51, 16 }
 0x309   : > { %8578 = vmatmul.mubr.bf16.gmra.mrb[48].mxu1 %v3558_v30 }
 0x30a   : > { %8581 = vmatprep.mubr.bf16.mxu1 %v3562_v24  ;;  %8650 = vmatpush3.bf16.msra.mxu1 %v9532_v23  ;;  %v3574_v15 = vsel %vm3518_vm3, %v3569_v52, %v3573_v50  ;;  %v3579_v23 = vrot.slane %v12478_v14, 4  ;;  %v3578_v62 = vsel %vm3518_vm3, %v3573_v50, %v3577_v36  ;;  %v12482_v24 = vshrl.u32 %v10060_v43, 16 }
 0x30b   : > { %8651 = vmatprep.subr.bf16.mxu1 %v9533_v59  ;;  %v12487_v43 = vshll.u32 %v10115_v25, 16  ;;  %v12490_v14 = vshrl.u32 %v10118_v26, 16  ;;  %v12491_v25 = vshll.u32 %v10118_v26, 16  ;;  %v12495_v26 = vshll.u32 %v10149_v40, 16 }
 0x30c   : > { %v3581_v28 = vor.u32 %v3580_v2, %v3579_v23  ;;  %v3587_v1 = vrot.slane %v12482_v24, 4 }
 0x30d   : > { %v3603_v23 = vrot.slane %v12490_v14, 4  ;;  %v3604_v49 = vrot.slane %v12491_v25, 5  ;;  %v3612_v24 = vrot.slane %v12495_v26, 5  ;;  %v12510_v26 = vshrl.u32 %v10322_v18, 16 }
 0x30e   : > { %8652 = vmatpush3.bf16.msra.mxu1 %v9533_v59  ;;  %v12480_v59 = vshrl.u32 %v10030_v12, 16  ;;  %v3582_v41 = vsel %vm3518_vm3, %v3577_v36, %v3581_v28  ;;  %v12485_v12 = vshll.u32 %v10063_v61, 16  ;;  %v12489_v61 = vshll.u32 %v10093_v16, 16 }
 0x30f   : > { %v3605_v58 = vor.u32 %v3604_v49, %v3603_v23 }
 0x310   : > { %v3583_v30 = vrot.slane %v12480_v59, 4  ;;  %v3592_v52 = vrot.slane %v12485_v12, 5  ;;  %v3600_v45 = vrot.slane %v12489_v61, 5 }
 0x311   : > { %8582 = vmatmul.mubr.bf16.gmra.mrb[52].mxu1 %v3566_v19  ;;  %v3589_v19 = vor.u32 %v3588_v31, %v3587_v1  ;;  %v3615_v31 = vrot.slane %v12496_v7, 4 }
 0x312   : > { %8585 = vmatprep.mubr.bf16.mxu1 %v3570_v44  ;;  %v3585_v32 = vor.u32 %v3584_v38, %v3583_v30  ;;  %v3593_v46 = vor.u32 %v3592_v52, %v3591_v33  ;;  %v3596_v44 = vrot.slane %v12487_v43, 5  ;;  %v3601_v36 = vor.u32 %v3600_v45, %v3599_v53 }
 0x313   : > { %v12493_v30 = vshll.u32 %v10121_v0, 16  ;;  %v12498_v52 = vshrl.u32 %v10196_v4, 16  ;;  %v12502_v53 = vshrl.u32 %v10245_v22, 16 }
 0x314   : > { %v3586_v56 = vsel %vm3518_vm3, %v3581_v28, %v3585_v32  ;;  %v3590_v10 = vsel %vm3518_vm3, %v3585_v32, %v3589_v19  ;;  %v3594_v47 = vsel %vm3518_vm3, %v3589_v19, %v3593_v46  ;;  %v3597_v50 = vor.u32 %v3596_v44, %v3595_v11 }
 0x315   : > { %v3608_v16 = vrot.slane %v12493_v30, 5  ;;  %v3606_v28 = vsel %vm3518_vm3, %v3601_v36, %v3605_v58  ;;  %v12494_v32 = vshrl.u32 %v10149_v40, 16  ;;  %v3619_v19 = vrot.slane %v12498_v52, 4 }
 0x316   : > { %v3602_v2 = vsel %vm3518_vm3, %v3597_v50, %v3601_v36  ;;  %v12499_v40 = vshll.u32 %v10196_v4, 16  ;;  %v3623_v11 = vrot.slane %v12500_v21, 4  ;;  %v3627_v61 = vrot.slane %v12502_v53, 4  ;;  %v12518_v53 = vld [vmem:[#allocation6_spill] sm:$0xff] }
 0x317   : > { %v12503_v4 = vshll.u32 %v10245_v22, 16  ;;  %v12504_v36 = vshrl.u32 %v10272_v13, 16  ;;  %v12507_v22 = vshll.u32 %v10278_v34, 16  ;;  %v12514_v52 = vshrl.u32 %v10346_v48, 16 }
 0x319   : > { %8586 = vmatmul.mubr.bf16.gmra.mrb[56].mxu1 %v3574_v15  ;;  %v3598_v15 = vsel %vm3518_vm3, %v3593_v46, %v3597_v50  ;;  %v3620_v46 = vrot.slane %v12499_v40, 5  ;;  %v3628_v45 = vrot.slane %v12503_v4, 5 }
 0x31a   : > { %8589 = vmatprep.mubr.bf16.mxu1 %v3578_v62  ;;  %v12492_v62 = vshrl.u32 %v10121_v0, 16  ;;  %v12497_v0 = vshll.u32 %v10159_v27, 16  ;;  %v12501_v27 = vshll.u32 %v10199_v51, 16  ;;  %v12505_v51 = vshll.u32 %v10272_v13, 16 }
 0x31b   : > { %v3621_v44 = vor.u32 %v3620_v46, %v3619_v19  ;;  %v3629_v23 = vor.u32 %v3628_v45, %v3627_v61  ;;  %v12509_v13 = vshll.u32 %v10281_v35, 16  ;;  %v3651_v19 = vrot.slane %v12514_v52, 4 }
 0x31c   : > { %v3607_v59 = vrot.slane %v12492_v62, 4  ;;  %v3624_v43 = vrot.slane %v12501_v27, 5  ;;  %v3632_v14 = vrot.slane %v12505_v51, 5  ;;  %v9584_v51 = vld [vmem:[#allocation2 + $0x8] sm:$0xff] }
 0x31e   : > { %v3609_v38 = vor.u32 %v3608_v16, %v3607_v59  ;;  %v3636_v59 = vrot.slane %v12507_v22, 5  ;;  %v12508_v16 = vshrl.u32 %v10281_v35, 16  ;;  %v12513_v35 = vshll.u32 %v10343_v60, 16 }
 0x320   : > { %v3610_v1 = vsel %vm3518_vm3, %v3605_v58, %v3609_v38  ;;  %v3639_v58 = vrot.slane %v12508_v16, 4  ;;  %v9587_v16 = vld [vmem:[#allocation2 + $0x20] sm:$0xff] }
 0x321   : > { %8590 = vmatmul.mubr.bf16.gmra.mrb[60].mxu1 %v3582_v41  ;;  %v3611_v41 = vrot.slane %v12494_v32, 4 }
 0x322   : > { %8593 = vmatprep.mubr.bf16.mxu1 %v3586_v56  ;;  %v3616_v56 = vrot.slane %v12497_v0, 5 }
 0x323   : > { %v3613_v5 = vor.u32 %v3612_v24, %v3611_v41  ;;  %v3643_v24 = vrot.slane %v12510_v26, 4  ;;  %v9535_v26 = vld [vmem:[%s12258_s7 + $0x48] sm:$0xff]  }
 0x324   : > { %v3617_v33 = vor.u32 %v3616_v56, %v3615_v31  ;;  %v12512_v31 = vshrl.u32 %v10343_v60, 16  ;;  %v3648_v56 = vrot.slane %v12513_v35, 5  ;;  %v12517_v60 = vshll.u32 %v10349_v55, 16 }
 0x325   : > { %v3614_v12 = vsel %vm3518_vm3, %v3609_v38, %v3613_v5  ;;  %v3640_v38 = vrot.slane %v12509_v13, 5  ;;  %v9588_v13 = vld [vmem:[#allocation2 + $0x28] sm:$0xff] }
 0x326   : > { %v3622_v17 = vsel %vm3518_vm3, %v3617_v33, %v3621_v44  ;;  %v3647_v0 = vrot.slane %v12512_v31, 4  ;;  %v9536_v31 = vld [vmem:[%s12258_s7 + $0x50] sm:$0xff]  }
 0x327   : > { %v3641_v32 = vor.u32 %v3640_v38, %v3639_v58  ;;  %v4181_v58 = vrot.slane %v9587_v16, 5  ;;  %v4183_v38 = vrot.slane %v9588_v13, 5  ;;  %v9599_v13 = vld [vmem:[#allocation2 + $0xe0] sm:$0xff] }
 0x329   : > { %8594 = vmatmul.mubr.bf16.gmra.mrb[64].mxu1 %v3590_v10  ;;  %v3618_v10 = vsel %vm3518_vm3, %v3613_v5, %v3617_v33  ;;  %v3649_v33 = vor.u32 %v3648_v56, %v3647_v0  ;;  %v9537_v56 = vld [vmem:[%s12258_s7 + $0x58] sm:$0xff]  }
 0x32a   : > { %8597 = vmatprep.mubr.bf16.mxu1 %v3594_v47  ;;  %v3625_v47 = vor.u32 %v3624_v43, %v3623_v11  ;;  %v3656_v11 = vrot.slane %v12517_v60, 5 }
 0x32c   : > { %v3626_v50 = vsel %vm3518_vm3, %v3621_v44, %v3625_v47  ;;  %v3630_v49 = vsel %vm3518_vm3, %v3625_v47, %v3629_v23 }
 0x331   : > { %8598 = vmatmul.mubr.bf16.gmra.mrb[68].mxu1 %v3598_v15  ;;  %v3631_v15 = vrot.slane %v12504_v36, 4 }
 0x332   : > { %8601 = vmatprep.mubr.bf16.mxu1 %v3602_v2  ;;  %v12506_v2 = vshrl.u32 %v10278_v34, 16  ;;  %v12511_v34 = vshll.u32 %v10322_v18, 16  ;;  %v12515_v18 = vshll.u32 %v10346_v48, 16  ;;  %v3668_v48 = vshrl.u32 %v10505_v3, 16 }
 0x333   : > { %v3633_v25 = vor.u32 %v3632_v14, %v3631_v15  ;;  %v4175_v14 = vrot.slane %v9584_v51, 5 }
 0x334   : > { %v3635_v62 = vrot.slane %v12506_v2, 4  ;;  %v3652_v40 = vrot.slane %v12515_v18, 5  ;;  %v3670_v4 = vrot.slane %v3668_v48, 4 }
 0x335   : > { %v3634_v30 = vsel %vm3518_vm3, %v3629_v23, %v3633_v25  ;;  %v12520_v23 = vld [vmem:[#allocation7_spill] sm:$0xff] }
 0x336   : > { %v3653_v27 = vor.u32 %v3652_v40, %v3651_v19  ;;  %v9538_v19 = vld [vmem:[%s12258_s7 + $0x60] sm:$0xff]  }
 0x338   : > { %v3654_v44 = vsel %vm3518_vm3, %v3649_v33, %v3653_v27 }
 0x339   : > { %8602 = vmatmul.mubr.bf16.gmra.mrb[0].mxu1 %v3606_v28  ;;  %v3637_v28 = vor.u32 %v3636_v59, %v3635_v62  ;;  %v9586_v62 = vld [vmem:[#allocation2 + $0x18] sm:$0xff] }
 0x33a   : > { %8605 = vmatprep.mubr.bf16.mxu1 %v3610_v1  ;;  %v3644_v1 = vrot.slane %v12511_v34, 5  ;;  %v4179_v22 = vrot.slane %v9586_v62, 5 }
 0x33b   : > { %v3638_v41 = vsel %vm3518_vm3, %v3633_v25, %v3637_v28  ;;  %v3642_v7 = vsel %vm3518_vm3, %v3637_v28, %v3641_v32 }
 0x33c   : > { %v3645_v5 = vor.u32 %v3644_v1, %v3643_v24  ;;  %v4182_v28 = vsel %vm4173_vm4, %v4179_v22, %v4181_v58  ;;  %v9589_v24 = vld [vmem:[#allocation2 + $0x30] sm:$0xff]  ;;  %v9590_v1 = vld [vmem:[#allocation2 + $0x38] sm:$0xff] }
 0x33d   : > { %v4185_v34 = vrot.slane %v9589_v24, 5 }
 0x33e   : > { %v3650_v46 = vsel %vm3518_vm3, %v3645_v5, %v3649_v33 }
 0x33f   : > { %v4186_v0 = vsel %vm4173_vm4, %v4183_v38, %v4185_v34 }
 0x341   : > { %8606 = vmatmul.mubr.bf16.gmra.mrb[4].mxu1 %v3614_v12  ;;  %v3646_v12 = vsel %vm3518_vm3, %v3641_v32, %v3645_v5  ;;  %v4184_v32 = vsel %vm4173_vm4, %v4181_v58, %v4183_v38  ;;  %v9591_v5 = vld [vmem:[#allocation2 + $0x40] sm:$0xff]  ;;  %v4229_v38 = vrot.slane %v9599_v13, 5  ;;  %v12531_v13 = vld [vmem:[#allocation16_spill] sm:$0xff] }
 0x342   : > { %8609 = vmatprep.mubr.bf16.mxu1 %v3618_v10  ;;  %v12516_v10 = vshrl.u32 %v10349_v55, 16  ;;  %v12519_v55 = vld [vmem:[#allocation8_spill] sm:$0xff]  ;;  %v4189_v33 = vrot.slane %v9591_v5, 5  ;;  %v9603_v5 = vld [vmem:[#allocation2 + $0x100] sm:$0xff] }
 0x344   : > { %v3655_v21 = vrot.slane %v12516_v10, 4 }
 0x346   : > { %v3657_v43 = vor.u32 %v3656_v11, %v3655_v21  ;;  %v9594_v21 = vld [vmem:[#allocation2 + $0x58] sm:$0xff] }
 0x347   : > { %v4195_v60 = vrot.slane %v9594_v21, 5 }
 0x348   : > { %v3658_v47 = vsel %vm3518_vm3, %v3653_v27, %v3657_v43  ;;  %v3662_v61 = vsel %vm3518_vm3, %v3657_v43, %v12518_v53  ;;  %v4197_v43 = vrot.slane %v10474_v8, 5  ;;  %v4203_v53 = vrot.slane %v10685_v37, 5 }
 0x349   : > { %8610 = vmatmul.mubr.bf16.gmra.mrb[8].mxu1 %v3622_v17  ;;  %v3671_v17 = vshll.u32 %v10505_v3, 16  ;;  %v9585_v3 = vld [vmem:[#allocation2 + $0x10] sm:$0xff]  ;;  %v4205_v8 = vrot.slane %v10690_v29, 5  ;;  %v4211_v37 = vrot.slane %v10701_v9, 5  ;;  %v4213_v29 = vrot.slane %v10706_v42, 5 }
 0x34a   : > { %8613 = vmatprep.mubr.bf16.mxu1 %v3626_v50  ;;  %v4153_v50 = vld [vmem:[#allocation2] sm:$0xe0]  ;;  %v4177_v2 = vrot.slane %v9585_v3, 5  ;;  %v9596_v3 = vld [vmem:[#allocation2 + $0xc8] sm:$0xff] }
 0x34b   : > { %v3673_v45 = vrot.slane %v3671_v17, 5  ;;  %v4174_v15 = vrot.slane %v4153_v50, 5  ;;  %v4201_v17 = vrot.slane %v10682_v63, 5  ;;  %v4209_v63 = vrot.slane %v10698_v39, 5 }
 0x34c   : > { %v4178_v59 = vsel %vm4173_vm4, %v4175_v14, %v4177_v2  ;;  %v4217_v39 = vrot.slane %v10714_v57, 5 }
 0x34d   : > { %v3674_v36 = vor.u32 %v3673_v45, %v3670_v4  ;;  %v4204_v4 = vsel %vm4173_vm4, %v4201_v17, %v4203_v53  ;;  %v4206_v45 = vsel %vm4173_vm4, %v4203_v53, %v4205_v8 }
 0x34f   : > { %v3675_v25 = vsel %vm3518_vm3, %v12520_v23, %v3674_v36  ;;  %v4212_v36 = vsel %vm4173_vm4, %v4209_v63, %v4211_v37 }
 0x351   : > { %8614 = vmatmul.mubr.bf16.gmra.mrb[12].mxu1 %v3630_v49  ;;  %v4176_v49 = vsel %vm4173_vm4, %v4174_v15, %v4175_v14  ;;  %v4214_v15 = vsel %vm4173_vm4, %v4211_v37, %v4213_v29  ;;  %v12521_v14 = vld [vmem:[#allocation46_spill] sm:$0xff] }
 0x352   : > { %8617 = vmatprep.mubr.bf16.mxu1 %v3634_v30  ;;  %v4180_v30 = vsel %vm4173_vm4, %v4177_v2, %v4179_v22  ;;  %v4219_v9 = vrot.slane %v12521_v14, 5  ;;  %v9597_v22 = vld [vmem:[#allocation2 + $0xd0] sm:$0xff] }
 0x353   : > { %v4225_v57 = vrot.slane %v9597_v22, 5 }
 0x359   : > { %8618 = vmatmul.mubr.bf16.gmra.mrb[16].mxu1 %v3638_v41  ;;  %v9534_v41 = vld [vmem:[%s12258_s7 + $0x40] sm:$0xff]  }
 0x35a   : > { %8621 = vmatprep.mubr.bf16.mxu1 %v3642_v7  ;;  %8725 = vmatprep.subr.bf16.mxu0 %v9534_v41  ;;  %v4187_v7 = vrot.slane %v9590_v1, 5 }
 0x35b   : > { %8726 = vmatpush3.bf16.msra.mxu0 %v9534_v41  ;;  %v9539_v41 = vld [vmem:[%s12258_s7 + $0x68] sm:$0xff]  }
 0x35c   : > { %8727 = vmatprep.subr.bf16.mxu0 %v9535_v26  ;;  %v4188_v35 = vsel %vm4173_vm4, %v4185_v34, %v4187_v7  ;;  %v4190_v18 = vsel %vm4173_vm4, %v4187_v7, %v4189_v33  ;;  %v9601_v34 = vld [vmem:[#allocation2 + $0xf0] sm:$0xff]  ;;  %v9602_v7 = vld [vmem:[#allocation2 + $0xf8] sm:$0xff] }
 0x35d   : > { %v4233_v1 = vrot.slane %v9601_v34, 5 }
 0x35f   : > { %8728 = vmatpush3.bf16.msra.mxu0 %v9535_v26 }
 0x360   : > { %8729 = vmatprep.subr.bf16.mxu0 %v9536_v31 }
 0x361   : > { %8622 = vmatmul.mubr.bf16.gmra.mrb[20].mxu1 %v3646_v12  ;;  %v9592_v12 = vld [vmem:[#allocation2 + $0x48] sm:$0xff] }
 0x362   : > { %8625 = vmatprep.mubr.bf16.mxu1 %v3650_v46  ;;  %v4191_v52 = vrot.slane %v9592_v12, 5  ;;  %v9593_v46 = vld [vmem:[#allocation2 + $0x50] sm:$0xff]  ;;  %v9604_v12 = vld [vmem:[#allocation2 + $0x108] sm:$0xff] }
 0x363   : > { %8730 = vmatpush3.bf16.msra.mxu0 %v9536_v31  ;;  %v4193_v10 = vrot.slane %v9593_v46, 5  ;;  %v4235_v31 = vrot.slane %v9602_v7, 5  ;;  %v9605_v46 = vld [vmem:[#allocation2 + $0x110] sm:$0xff] }
 0x364   : > { %8731 = vmatprep.subr.bf16.mxu0 %v9537_v56  ;;  %v4192_v40 = vsel %vm4173_vm4, %v4189_v33, %v4191_v52  ;;  %v4237_v33 = vrot.slane %v9603_v5, 5 }
 0x365   : > { %v4194_v11 = vsel %vm4173_vm4, %v4191_v52, %v4193_v10  ;;  %v4196_v27 = vsel %vm4173_vm4, %v4193_v10, %v4195_v60  ;;  %v4239_v52 = vrot.slane %v9604_v12, 5  ;;  %v4241_v10 = vrot.slane %v9605_v46, 5 }
 0x367   : > { %8732 = vmatpush3.bf16.msra.mxu0 %v9537_v56  ;;  %v4236_v56 = vsel %vm4173_vm4, %v4233_v1, %v4235_v31  ;;  %v4242_v21 = vsel %vm4173_vm4, %v4239_v52, %v4241_v10 }
 0x368   : > { %8733 = vmatprep.subr.bf16.mxu0 %v9538_v19 }
 0x369   : > { %8626 = vmatmul.mubr.bf16.gmra.mrb[24].mxu1 %v3654_v44  ;;  %v4199_v44 = vrot.slane %v10677_v6, 5  ;;  %v4207_v6 = vrot.slane %v10693_v54, 5  ;;  %v4215_v54 = vrot.slane %v10709_v20, 5  ;;  %v4223_v20 = vrot.slane %v9596_v3, 5  ;;  %v12529_v3 = vld [vmem:[#allocation14_spill] sm:$0xff] }
 0x36a   : > { %8629 = vmatprep.mubr.bf16.mxu1 %v3658_v47  ;;  %v4198_v47 = vsel %vm4173_vm4, %v4195_v60, %v4197_v43  ;;  %v12522_v60 = vld [vmem:[#allocation5_spill] sm:$0xff] }
 0x36b   : > { %8734 = vmatpush3.bf16.msra.mxu0 %v9538_v19  ;;  %v4200_v48 = vsel %vm4173_vm4, %v4197_v43, %v4199_v44  ;;  %v4210_v50 = vsel %vm4173_vm4, %v4207_v6, %v4209_v63  ;;  %v4216_v51 = vsel %vm4173_vm4, %v4213_v29, %v4215_v54  ;;  %v4218_v23 = vsel %vm4173_vm4, %v4215_v54, %v4217_v39  ;;  %v11020_v43 = vld [vmem:[%s12258_s7] sm:$0xff]   ;;  %v12527_v63 = vld [vmem:[#allocation12_spill] sm:$0xff]  ;;  %v12528_v29 = vld [vmem:[#allocation13_spill] sm:$0xff] }
 0x36c   : > { %v4226_v16 = vsel %vm4173_vm4, %v4223_v20, %v4225_v57  ;;  %8735 = vmatprep.subr.bf16.mxu0 %v9539_v41  ;;  %v4238_v19 = vsel %vm4173_vm4, %v4235_v31, %v4237_v33 }
 0x36f   : > { %8736 = vmatpush3.bf16.msra.mxu0 %v9539_v41 }
 0x371   : > { %8630 = vmatmul.mubr.bf16.gmra.mrb[28].mxu1 %v3662_v61  ;;  %v4202_v61 = vsel %vm4173_vm4, %v4199_v44, %v4201_v17  ;;  %v12524_v44 = vld [vmem:[#allocation9_spill] sm:$0xff]  ;;  %v12525_v17 = vld [vmem:[#allocation10_spill] sm:$0xff] }
 0x372   : > { %8633 = vmatprep.mubr.bf16.mxu1 %v12519_v55  ;;  %v4208_v55 = vsel %vm4173_vm4, %v4205_v8, %v4207_v6  ;;  %v12526_v8 = vld [vmem:[#allocation11_spill] sm:$0xff] }
 0x379   : > { %8634 = vmatmul.mubr.bf16.gmra.mrb[32].mxu1 %v3675_v25  ;;  %v4220_v25 = vsel %vm4173_vm4, %v4217_v39, %v4219_v9 }
 0x37a   : > { %8653 = vmatprep.mubr.bf16.mxu1 %v4176_v49  ;;  %v9595_v49 = vld [vmem:[#allocation2 + $0xc0] sm:$0xff] }
 0x37b   : > { %v4221_v42 = vrot.slane %v9595_v49, 5 }
 0x37d   : > { %v4222_v2 = vsel %vm4173_vm4, %v4219_v9, %v4221_v42  ;;  %v4224_v62 = vsel %vm4173_vm4, %v4221_v42, %v4223_v20 }
 0x381   : > { %8654 = vmatmul.mubr.bf16.vlgmr.msra.gmra.mrb[36].mxu1 %v4178_v59  ;;  %v9598_v59 = vld [vmem:[#allocation2 + $0xd8] sm:$0xff] }
 0x382   : > { %8657 = vmatprep.mubr.bf16.mxu1 %v4180_v30  ;;  %v4227_v30 = vrot.slane %v9598_v59, 5 }
 0x384   : > { %v4228_v58 = vsel %vm4173_vm4, %v4225_v57, %v4227_v30  ;;  %v4230_v26 = vsel %vm4173_vm4, %v4227_v30, %v4229_v38  ;;  %v12530_v57 = vld [vmem:[#allocation15_spill] sm:$0xff] }
 0x389   : > { %8658 = vmatmul.mubr.bf16.gmra.mrb[40].mxu1 %v4182_v28  ;;  %v9600_v28 = vld [vmem:[#allocation2 + $0xe8] sm:$0xff] }
 0x38a   : > { %8661 = vmatprep.mubr.bf16.mxu1 %v4184_v32  ;;  %v4231_v32 = vrot.slane %v9600_v28, 5 }
 0x38c   : > { %v4232_v24 = vsel %vm4173_vm4, %v4229_v38, %v4231_v32 }
 0x391   : > { %8662 = vmatmul.mubr.bf16.gmra.mrb[44].mxu1 %v4186_v0  ;;  %v9540_v0 = vld [vmem:[%s12258_s7 + $0x70] sm:$0xff]  }
 0x392   : > { %8665 = vmatprep.mubr.bf16.mxu1 %v4188_v35  ;;  %8737 = vmatprep.subr.bf16.mxu0 %v9540_v0  ;;  %v4234_v35 = vsel %vm4173_vm4, %v4231_v32, %v4233_v1 }
 0x393   : > { %8738 = vmatpush3.bf16.msra.mxu0 %v9540_v0 }
 0x399   : > { %8666 = vmatmul.mubr.bf16.gmra.mrb[48].mxu1 %v4190_v18  ;;  %v4240_v18 = vsel %vm4173_vm4, %v4237_v33, %v4239_v52 }
 0x39a   : > { %8669 = vmatprep.mubr.bf16.mxu1 %v4192_v40  ;;  %v9541_v40 = vld [vmem:[%s12258_s7 + $0x78] sm:$0xff]  }
 0x39b   : > { %8739 = vmatprep.subr.bf16.mxu0 %v9541_v40 }
 0x39c   : > { %8740 = vmatpush3.bf16.msra.mxu0 %v9541_v40 }
 0x39d   : > { %8813 = vmatprep.subr.bf16.mxu0 %v11020_v43 }
 0x3a1   : > { %8670 = vmatmul.mubr.bf16.gmra.mrb[52].mxu1 %v4194_v11  ;;  %v12523_v11 = vrot.slane %v12522_v60, 5  ;;  %v12535_v60 = vld [vmem:[#allocation19_spill] sm:$0xff] }
 0x3a2   : > { %8673 = vmatprep.mubr.bf16.mxu1 %v4196_v27 }
 0x3a3   : > { %v4244_v27 = vsel %vm4173_vm4, %v4241_v10, %v12523_v11 }
 0x3a9   : > { %8674 = vmatmul.mubr.bf16.gmra.mrb[56].mxu1 %v4198_v47 }
 0x3aa   : > { %8677 = vmatprep.mubr.bf16.mxu1 %v4200_v48  ;;  %v11027_v48 = vld [vmem:[%s12256_s5] ss:$0 sm:$0xff] }
 0x3b1   : > { %8678 = vmatmul.mubr.bf16.gmra.mrb[60].mxu1 %v4202_v61 }
 0x3b2   : > { %8681 = vmatprep.mubr.bf16.mxu1 %v4204_v4  ;;  %v11033_v4 = vld [vmem:[%s12257_s6] ss:$0 sm:$0xff] }
 0x3b9   : > { %8682 = vmatmul.mubr.bf16.gmra.mrb[64].mxu1 %v4206_v45 }
 0x3ba   : > { %8685 = vmatprep.mubr.bf16.mxu1 %v4208_v55 }
 0x3c1   : > { %8686 = vmatmul.mubr.bf16.gmra.mrb[68].mxu1 %v4210_v50 }
 0x3c2   : > { %8689 = vmatprep.mubr.bf16.mxu1 %v4212_v36 }
 0x3c9   : > { %8690 = vmatmul.mubr.bf16.gmra.mrb[0].mxu1 %v4214_v15 }
 0x3ca   : > { %8693 = vmatprep.mubr.bf16.mxu1 %v4216_v51 }
 0x3d1   : > { %8694 = vmatmul.mubr.bf16.gmra.mrb[4].mxu1 %v4218_v23 }
 0x3d2   : > { %8697 = vmatprep.mubr.bf16.mxu1 %v4220_v25 }
 0x3d9   : > { %8698 = vmatmul.mubr.bf16.gmra.mrb[8].mxu1 %v4222_v2 }
 0x3da   : > { %8701 = vmatprep.mubr.bf16.mxu1 %v4224_v62 }
 0x3e1   : > { %8702 = vmatmul.mubr.bf16.gmra.mrb[12].mxu1 %v4226_v16 }
 0x3e2   : > { %8705 = vmatprep.mubr.bf16.mxu1 %v4228_v58 }
 0x3e9   : > { %8706 = vmatmul.mubr.bf16.gmra.mrb[16].mxu1 %v4230_v26  ;;  %v12532_v26 = vld [vmem:[#allocation17_spill] sm:$0xff] }
 0x3ea   : > { %8709 = vmatprep.mubr.bf16.mxu1 %v4232_v24 }
 0x3f1   : > { %8710 = vmatmul.mubr.bf16.gmra.mrb[20].mxu1 %v4234_v35 }
 0x3f2   : > { %8713 = vmatprep.mubr.bf16.mxu1 %v4236_v56 }
 0x3f9   : > { %8714 = vmatmul.mubr.bf16.gmra.mrb[24].mxu1 %v4238_v19 }
 0x3fa   : > { %8717 = vmatprep.mubr.bf16.mxu1 %v4240_v18  ;;  %v12534_v18 = vld [vmem:[#allocation18_spill] sm:$0xff] }
 0x401   : > { %8718 = vmatmul.mubr.bf16.gmra.mrb[28].mxu1 %v4242_v21 }
 0x402   : > { %8721 = vmatprep.mubr.bf16.mxu1 %v4244_v27 }
 0x409   : > { %8722 = vmatmul.mubr.bf16.gmra.mrb[32].mxu1 %v12524_v44 }
 0x454   : > { %v8655_v47 = vpop.f32.mrb[36].mxu1 }
 0x455   : > { %v9005_v53 = vadd.f32 %v8655_v47, %v12525_v17  ;;  %v4365_v61 = vpop.f32.mrb[37].mxu1  ;;  %v12536_v17 = vld [vmem:[#allocation20_spill] sm:$0xff] }
 0x456   : > { %v9006_v6 = vadd.f32 %v4365_v61, %v12526_v8  ;;  %v8656_v45 = vpop.f32.mrb[38].mxu1 }
 0x457   : > { %v4733_v55 = vmul.f32 %v9005_v53, %v11027_v48  ;;  %v9007_v37 = vadd.f32 %v8656_v45, %v12527_v63  ;;  %v4368_v50 = vpop.f32.mrb[39].mxu1  ;;  %v12537_v45 = vld [vmem:[#allocation21_spill] sm:$0xff] }
 0x458   : > { %v4731_v36 = vmul.f32 %v9006_v6, %v11027_v48  ;;  %v9008_v54 = vadd.f32 %v4368_v50, %v12528_v29 }
 0x459   : > { %v4812_v15 = vadd.f32 %v11033_v4, %v4733_v55  ;;  %v4734_v51 = vmul.f32 %v9007_v37, %v11027_v48 }
 0x45a   : > { %v4810_v39 = vadd.f32 %v11033_v4, %v4731_v36  ;;  %v4732_v14 = vmul.f32 %v9008_v54, %v11027_v48 }
 0x45b   : > { %v4813_v9 = vadd.f32 %v11033_v4, %v4734_v51  ;;  %v4884_v49 = vmax.f32 %v4812_v15, 0.0 }
 0x45c   : > { %v4811_v23 = vadd.f32 %v11033_v4, %v4732_v14  ;;  %v8659_v25 = vpop.f32.mrb[40].mxu1  ;;  %v4882_v62 = vmax.f32 %v4810_v39, 0.0 }
 0x45d   : > { %v4885_v42 = vmax.f32 %v4813_v9, 0.0  ;;  %v9009_v20 = vadd.f32 %v8659_v25, %v12529_v3  ;;  %v4381_v2 = vpop.f32.mrb[41].mxu1  ;;  %v12540_v3 = vld [vmem:[#allocation22_spill] sm:$0xff] }
 0x45e   : > { %v4883_v22 = vmax.f32 %v4811_v23, 0.0  ;;  %v9010_v59 = vadd.f32 %v4381_v2, %v12530_v57  ;;  %v8660_v30 = vpop.f32.mrb[42].mxu1 }
 0x45f   : > { %v4955_v16 = vpack.c.bf16 %v4885_v42, %v4884_v49  ;;  %v4737_v58 = vmul.f32 %v9009_v20, %v11027_v48  ;;  %v9011_v38 = vadd.f32 %v8660_v30, %v12531_v13  ;;  %v4384_v28 = vpop.f32.mrb[43].mxu1  ;;  %v12541_v30 = vld [vmem:[#allocation23_spill] sm:$0xff] }
 0x460   : > { %v4954_v32 = vpack.c.bf16 %v4883_v22, %v4882_v62  ;;  %v4735_v41 = vmul.f32 %v9010_v59, %v11027_v48  ;;  %v9012_v24 = vadd.f32 %v4384_v28, %v12532_v26 }
 0x461   : > { %v4995_v34 = vrot.slane %v4955_v16, 4  ;;  %v4816_v1 = vadd.f32 %v11033_v4, %v4737_v58  ;;  %v4738_v7 = vmul.f32 %v9011_v38, %v11027_v48 }
 0x462   : > { %v4994_v31 = vrot.slane %v4954_v32, 4  ;;  %v4814_v0 = vadd.f32 %v11033_v4, %v4735_v41  ;;  %v4736_v35 = vmul.f32 %v9012_v24, %v11027_v48  ;;  %v12542_v32 = vld [vmem:[#allocation24_spill] sm:$0xff] }
 0x463   : > { %v4817_v56 = vadd.f32 %v11033_v4, %v4738_v7  ;;  %v4888_v52 = vmax.f32 %v4816_v1, 0.0 }
 0x464   : > { %v11058_v5 = vsel %vm1436_vm0, %v4994_v31, %v4995_v34  ;;  %5006 = vst [vmem:[#allocation3] sm:$0xf0] %v4994_v31  ;;  %v4815_v33 = vadd.f32 %v11033_v4, %v4736_v35  ;;  %v8663_v12 = vpop.f32.mrb[44].mxu1  ;;  %v4886_v10 = vmax.f32 %v4814_v0, 0.0  ;;  %v12543_v31 = vld [vmem:[#allocation25_spill] sm:$0xff] }
 0x465   : > { %12533 = vst [vmem:[#allocation6_spill] sm:$0xff] %v11058_v5  ;;  %v4889_v19 = vmax.f32 %v4817_v56, 0.0  ;;  %v9013_v40 = vadd.f32 %v8663_v12, %v12534_v18  ;;  %v4397_v46 = vpop.f32.mrb[45].mxu1  ;;  %v5271_v39 = vrot.slane %v11058_v5, 4 }
 0x466   : > { %v4887_v21 = vmax.f32 %v4815_v33, 0.0  ;;  %v9014_v11 = vadd.f32 %v4397_v46, %v12535_v60  ;;  %v8664_v27 = vpop.f32.mrb[46].mxu1 }
 0x467   : > { %v4957_v44 = vpack.c.bf16 %v4889_v19, %v4888_v52  ;;  %v4741_v47 = vmul.f32 %v9013_v40, %v11027_v48  ;;  %v9015_v53 = vadd.f32 %v8664_v27, %v12536_v17  ;;  %v4400_v61 = vpop.f32.mrb[47].mxu1 }
 0x468   : > { %v4956_v8 = vpack.c.bf16 %v4887_v21, %v4886_v10  ;;  %v4739_v6 = vmul.f32 %v9014_v11, %v11027_v48  ;;  %v9016_v55 = vadd.f32 %v4400_v61, %v12537_v45  ;;  %v9544_v21 = vld [vmem:[%s12258_s7 + $0x10] sm:$0xff]  }
 0x469   : > { %v4999_v63 = vrot.slane %v4957_v44, 4  ;;  %v4820_v37 = vadd.f32 %v11033_v4, %v4741_v47  ;;  %v4742_v50 = vmul.f32 %v9015_v53, %v11027_v48  ;;  %v12544_v53 = vld [vmem:[#allocation26_spill] sm:$0xff] }
 0x46a   : > { %v4997_v36 = vrot.slane %v4956_v8, 4  ;;  %v4818_v29 = vadd.f32 %v11033_v4, %v4739_v6  ;;  %v4740_v54 = vmul.f32 %v9016_v55, %v11027_v48  ;;  %v12545_v55 = vld [vmem:[#allocation27_spill] sm:$0xff] }
 0x46b   : > { %5010 = vst [vmem:[#allocation3 + $0x20] sm:$0xf] %v4999_v63  ;;  %v4821_v15 = vadd.f32 %v11033_v4, %v4742_v50  ;;  %v5215_v51 = vld [vmem:[#allocation3] sm:$0xf0]  ;;  %v4892_v23 = vmax.f32 %v4820_v37, 0.0 }
 0x46c   : > { %v11074_v14 = vsel %vm1436_vm0, %v4995_v34, %v4997_v36  ;;  %v11077_v9 = vsel %vm1436_vm0, %v4997_v36, %v4999_v63  ;;  %v4819_v25 = vadd.f32 %v11033_v4, %v4740_v54  ;;  %v8667_v49 = vpop.f32.mrb[48].mxu1  ;;  %v5270_v62 = vrot.slane %v5215_v51, 4  ;;  %v9543_v34 = vld [vmem:[%s12258_s7 + $0x8] sm:$0xff]  }
 0x46d   : > { %12538 = vst [vmem:[#allocation8_spill] sm:$0xff] %v11074_v14  ;;  %12539 = vst [vmem:[#allocation7_spill] sm:$0xff] %v11077_v9  ;;  %v4893_v42 = vmax.f32 %v4821_v15, 0.0  ;;  %v9017_v20 = vadd.f32 %v8667_v49, %v12540_v3  ;;  %v4413_v2 = vpop.f32.mrb[49].mxu1  ;;  %v5273_v22 = vrot.slane %v11074_v14, 4  ;;  %v4890_v57 = vmax.f32 %v4818_v29, 0.0 }
 0x46e   : > { %v4891_v59 = vmax.f32 %v4819_v25, 0.0  ;;  %v9018_v16 = vadd.f32 %v4413_v2, %v12541_v30  ;;  %v8668_v58 = vpop.f32.mrb[50].mxu1  ;;  %v5275_v13 = vrot.slane %v11077_v9, 4  ;;  %v5272_v24 = vsel %vm1436_vm0, %v5270_v62, %v5271_v39  ;;  %v12546_v29 = vld [vmem:[#allocation28_spill] sm:$0xff]  ;;  %v12547_v49 = vld [vmem:[#allocation29_spill] sm:$0xff] }
 0x46f   : > { %v11084_v38 = vpack.c.bf16 %v4893_v42, %v4892_v23  ;;  %v4745_v28 = vmul.f32 %v9017_v20, %v11027_v48  ;;  %v9019_v41 = vadd.f32 %v8668_v58, %v12542_v32  ;;  %v4416_v26 = vpop.f32.mrb[51].mxu1  ;;  %8741 = vmatprep.mubr.bf16.mxu0 %v5272_v24  ;;  %v5274_v35 = vsel %vm1436_vm0, %v5271_v39, %v5273_v22  ;;  %v9545_v39 = vld [vmem:[%s12258_s7 + $0x18] sm:$0xff]  }
 0x470   : > { %v4958_v1 = vpack.c.bf16 %v4891_v59, %v4890_v57  ;;  %v4743_v7 = vmul.f32 %v9018_v16, %v11027_v48  ;;  %v9020_v0 = vadd.f32 %v4416_v26, %v12543_v31  ;;  %8742 = vmatmul.mubr.bf16.vlgmr.msra.gmra.mrb[108].mxu0 %v5274_v35  ;;  %v5276_v52 = vsel %vm1436_vm0, %v5273_v22, %v5275_v13  ;;  %v9546_v16 = vld [vmem:[%s12258_s7 + $0x20] sm:$0xff]  }
 0x471   : > { %v5017_v56 = vrot.slane %v11084_v38, 4  ;;  %v4824_v33 = vadd.f32 %v11033_v4, %v4745_v28  ;;  %v4746_v12 = vmul.f32 %v9019_v41, %v11027_v48  ;;  %8814 = vmatpush3.bf16.msra.mxu0 %v11020_v43  ;;  %8745 = vmatprep.mubr.bf16.mxu0 %v5276_v52  ;;  %v12548_v26 = vld [vmem:[#allocation30_spill] sm:$0xff]  ;;  %v12549_v35 = vld [vmem:[#allocation31_spill] sm:$0xff] }
 0x472   : > { %v5016_v19 = vrot.slane %v4958_v1, 4  ;;  %v4822_v18 = vadd.f32 %v11033_v4, %v4743_v7  ;;  %v4744_v40 = vmul.f32 %v9020_v0, %v11027_v48  ;;  %v5166_v46 = vld [vmem:[#allocation3 + $0x20] sm:$0xff]  ;;  %8815 = vmatprep.subr.bf16.mxu0 %v9543_v34 }
 0x473   : > { %v4825_v10 = vadd.f32 %v11033_v4, %v4746_v12  ;;  %v5277_v44 = vrot.slane %v5166_v46, 4  ;;  %v4896_v47 = vmax.f32 %v4824_v33, 0.0 }
 0x474   : > { %v5018_v60 = vsel %vm1436_vm0, %v5016_v19, %v5017_v56  ;;  %v4823_v11 = vadd.f32 %v11033_v4, %v4744_v40  ;;  %v8671_v27 = vpop.f32.mrb[52].mxu1  ;;  %v4894_v6 = vmax.f32 %v4822_v18, 0.0  ;;  %v12550_v19 = vld [vmem:[#allocation32_spill] sm:$0xff] }
 0x475   : > { %5029 = vst [vmem:[#allocation3 + $0x28] sm:$0xff] %v5018_v60  ;;  %v4897_v17 = vmax.f32 %v4825_v10, 0.0  ;;  %v9021_v43 = vadd.f32 %v8671_v27, %v12544_v53  ;;  %v4429_v61 = vpop.f32.mrb[53].mxu1  ;;  %v5279_v8 = vrot.slane %v5018_v60, 4  ;;  %8816 = vmatpush3.bf16.msra.mxu0 %v9543_v34  ;;  %v5278_v3 = vsel %vm1436_vm0, %v5275_v13, %v5277_v44  ;;  %v9547_v10 = vld [vmem:[%s12258_s7 + $0x28] sm:$0xff]  }
 0x476   : > { %v4895_v45 = vmax.f32 %v4823_v11, 0.0  ;;  %v9022_v63 = vadd.f32 %v4429_v61, %v12545_v55  ;;  %v8672_v37 = vpop.f32.mrb[54].mxu1  ;;  %8817 = vmatprep.subr.bf16.mxu0 %v9544_v21  ;;  %v12551_v11 = vld [vmem:[#allocation33_spill] sm:$0xff] }
 0x477   : > { %v11110_v50 = vpack.c.bf16 %v4897_v17, %v4896_v47  ;;  %v4749_v36 = vmul.f32 %v9021_v43, %v11027_v48  ;;  %v9023_v54 = vadd.f32 %v8672_v37, %v12546_v29  ;;  %v4432_v15 = vpop.f32.mrb[55].mxu1  ;;  %v5280_v51 = vsel %vm1436_vm0, %v5277_v44, %v5279_v8  ;;  %v12552_v29 = vld [vmem:[#allocation34_spill] sm:$0xff] }
 0x478   : > { %v4960_v23 = vpack.c.bf16 %v4895_v45, %v4894_v6  ;;  %v4747_v25 = vmul.f32 %v9022_v63, %v11027_v48  ;;  %v9024_v42 = vadd.f32 %v4432_v15, %v12547_v49  ;;  %8746 = vmatmul.mubr.bf16.gmra.mrb[112].mxu0 %v5278_v3  ;;  %v9548_v45 = vld [vmem:[%s12258_s7 + $0x30] sm:$0xff]  }
 0x479   : > { %v5021_v20 = vrot.slane %v11110_v50, 4  ;;  %v4828_v2 = vadd.f32 %v11033_v4, %v4749_v36  ;;  %v4750_v62 = vmul.f32 %v9023_v54, %v11027_v48  ;;  %8749 = vmatprep.mubr.bf16.mxu0 %v5280_v51  ;;  %8818 = vmatpush3.bf16.msra.mxu0 %v9544_v21 }
 0x47a   : > { %v5019_v22 = vrot.slane %v4960_v23, 4  ;;  %v4826_v57 = vadd.f32 %v11033_v4, %v4747_v25  ;;  %v4748_v59 = vmul.f32 %v9024_v42, %v11027_v48  ;;  %8819 = vmatprep.subr.bf16.mxu0 %v9545_v39  ;;  %v12553_v25 = vld [vmem:[#allocation35_spill] sm:$0xff] }
 0x47b   : > { %v4829_v30 = vadd.f32 %v11033_v4, %v4750_v62  ;;  %v4900_v38 = vmax.f32 %v4828_v2, 0.0 }
 0x47c   : > { %v5020_v58 = vsel %vm1436_vm0, %v5017_v56, %v5019_v22  ;;  %v5022_v13 = vsel %vm1436_vm0, %v5019_v22, %v5021_v20  ;;  %v4827_v28 = vadd.f32 %v11033_v4, %v4748_v59  ;;  %v8675_v32 = vpop.f32.mrb[56].mxu1  ;;  %v4898_v31 = vmax.f32 %v4826_v57, 0.0  ;;  %v9549_v59 = vld [vmem:[%s12258_s7 + $0x38] sm:$0xff]  }
 0x47d   : > { %5030 = vst [vmem:[#allocation3 + $0x30] sm:$0xff] %v5020_v58  ;;  %5031 = vst [vmem:[#allocation3 + $0x38] sm:$0xff] %v5022_v13  ;;  %v4901_v41 = vmax.f32 %v4829_v30, 0.0  ;;  %v9025_v24 = vadd.f32 %v8675_v32, %v12548_v26  ;;  %v4445_v34 = vpop.f32.mrb[57].mxu1  ;;  %v5281_v1 = vrot.slane %v5020_v58, 4  ;;  %v5283_v7 = vrot.slane %v5022_v13, 4  ;;  %8820 = vmatpush3.bf16.msra.mxu0 %v9545_v39 }
 0x47e   : > { %v4899_v0 = vmax.f32 %v4827_v28, 0.0  ;;  %v9026_v33 = vadd.f32 %v4445_v34, %v12549_v35  ;;  %v8676_v12 = vpop.f32.mrb[58].mxu1  ;;  %8821 = vmatprep.subr.bf16.mxu0 %v9546_v16  ;;  %v12555_v58 = vld [vmem:[#allocation37_spill] sm:$0xff] }
 0x47f   : > { %v11135_v56 = vpack.c.bf16 %v4901_v41, %v4900_v38  ;;  %v4753_v52 = vmul.f32 %v9025_v24, %v11027_v48  ;;  %v9027_v18 = vadd.f32 %v8676_v12, %v12550_v19  ;;  %v4448_v40 = vpop.f32.mrb[59].mxu1  ;;  %v5282_v46 = vsel %vm1436_vm0, %v5279_v8, %v5281_v1  ;;  %v12556_v19 = vld [vmem:[#allocation38_spill] sm:$0xff] }
 0x480   : > { %v4962_v21 = vpack.c.bf16 %v4899_v0, %v4898_v31  ;;  %v4751_v60 = vmul.f32 %v9026_v33, %v11027_v48  ;;  %v9028_v27 = vadd.f32 %v4448_v40, %v12551_v11  ;;  %v5284_v44 = vsel %vm1436_vm0, %v5281_v1, %v5283_v7  ;;  %8750 = vmatmul.mubr.bf16.gmra.mrb[116].mxu0 %v5282_v46  ;;  %v9550_v31 = vld [vmem:[%s12258_s7 + $0x80] sm:$0xff]  }
 0x481   : > { %v5037_v47 = vrot.slane %v11135_v56, 4  ;;  %v4832_v17 = vadd.f32 %v11033_v4, %v4753_v52  ;;  %v4754_v53 = vmul.f32 %v9027_v18, %v11027_v48  ;;  %8753 = vmatprep.mubr.bf16.mxu0 %v5284_v44  ;;  %8822 = vmatpush3.bf16.msra.mxu0 %v9546_v16  ;;  %v12557_v11 = vld [vmem:[#allocation39_spill] sm:$0xff] }
 0x482   : > { %v5023_v43 = vrot.slane %v4962_v21, 4  ;;  %v4830_v61 = vadd.f32 %v11033_v4, %v4751_v60  ;;  %v4752_v8 = vmul.f32 %v9028_v27, %v11027_v48  ;;  %8823 = vmatprep.subr.bf16.mxu0 %v9547_v10 }
 0x483   : > { %5049 = vst [vmem:[#allocation3 + $0x48] sm:$0xf0] %v5037_v47  ;;  %v4833_v6 = vadd.f32 %v11033_v4, %v4754_v53  ;;  %v4904_v50 = vmax.f32 %v4832_v17, 0.0 }
 0x484   : > { %v5024_v55 = vsel %vm1436_vm0, %v5021_v20, %v5023_v43  ;;  %v4831_v63 = vadd.f32 %v11033_v4, %v4752_v8  ;;  %v8679_v37 = vpop.f32.mrb[60].mxu1  ;;  %v4902_v39 = vmax.f32 %v4830_v61, 0.0  ;;  %v12554_v20 = vld [vmem:[#allocation36_spill] sm:$0xff] }
 0x485   : > { %5032 = vst [vmem:[#allocation3 + $0x40] sm:$0xff] %v5024_v55  ;;  %v4905_v36 = vmax.f32 %v4833_v6, 0.0  ;;  %v9029_v54 = vadd.f32 %v8679_v37, %v12552_v29  ;;  %v4461_v15 = vpop.f32.mrb[61].mxu1  ;;  %v5285_v51 = vrot.slane %v5024_v55, 4  ;;  %8824 = vmatpush3.bf16.msra.mxu0 %v9547_v10  ;;  %v12558_v43 = vld [vmem:[#allocation40_spill] sm:$0xff] }
 0x486   : > { %v4903_v23 = vmax.f32 %v4831_v63, 0.0  ;;  %v9030_v49 = vadd.f32 %v4461_v15, %v12553_v25  ;;  %v8680_v42 = vpop.f32.mrb[62].mxu1  ;;  %8825 = vmatprep.subr.bf16.mxu0 %v9548_v45  ;;  %v12559_v63 = vld [vmem:[#allocation41_spill] sm:$0xff] }
 0x487   : > { %v4965_v3 = vpack.c.bf16 %v4905_v36, %v4904_v50  ;;  %v4757_v2 = vmul.f32 %v9029_v54, %v11027_v48  ;;  %v9031_v62 = vadd.f32 %v8680_v42, %v12554_v20  ;;  %v4464_v22 = vpop.f32.mrb[63].mxu1  ;;  %v5286_v57 = vsel %vm1436_vm0, %v5283_v7, %v5285_v51 }
 0x488   : > { %v4964_v30 = vpack.c.bf16 %v4903_v23, %v4902_v39  ;;  %v4755_v16 = vmul.f32 %v9030_v49, %v11027_v48  ;;  %v9032_v13 = vadd.f32 %v4464_v22, %v12555_v58  ;;  %8754 = vmatmul.mubr.bf16.gmra.mrb[120].mxu0 %v5286_v57 }
 0x489   : > { %v5040_v38 = vrot.slane %v4965_v3, 4  ;;  %v4836_v28 = vadd.f32 %v11033_v4, %v4757_v2  ;;  %v4758_v32 = vmul.f32 %v9031_v62, %v11027_v48  ;;  %8826 = vmatpush3.bf16.msra.mxu0 %v9548_v45  ;;  %v12560_v2 = vld [vmem:[#allocation42_spill] sm:$0xff] }
 0x48a   : > { %v5038_v41 = vrot.slane %v4964_v30, 4  ;;  %v4834_v26 = vadd.f32 %v11033_v4, %v4755_v16  ;;  %v4756_v24 = vmul.f32 %v9032_v13, %v11027_v48  ;;  %v5171_v34 = vld [vmem:[#allocation3 + $0x48] sm:$0xff]  ;;  %8827 = vmatprep.subr.bf16.mxu0 %v9549_v59  ;;  %v12561_v30 = vld [vmem:[#allocation43_spill] sm:$0xff] }
 0x48b   : > { %v4837_v1 = vadd.f32 %v11033_v4, %v4758_v32  ;;  %v5287_v7 = vrot.slane %v5171_v34, 4  ;;  %v4908_v33 = vmax.f32 %v4836_v28, 0.0 }
 0x48c   : > { %v5039_v0 = vsel %vm1436_vm0, %v5037_v47, %v5038_v41  ;;  %v5041_v35 = vsel %vm1436_vm0, %v5038_v41, %v5040_v38  ;;  %v4835_v12 = vadd.f32 %v11033_v4, %v4756_v24  ;;  %v8683_v56 = vpop.f32.mrb[64].mxu1  ;;  %v4906_v21 = vmax.f32 %v4834_v26, 0.0 }
 0x48d   : > { %5050 = vst [vmem:[#allocation3 + $0x50] sm:$0xff] %v5039_v0  ;;  %5051 = vst [vmem:[#allocation3 + $0x58] sm:$0xff] %v5041_v35  ;;  %v4909_v52 = vmax.f32 %v4837_v1, 0.0  ;;  %v9033_v18 = vadd.f32 %v8683_v56, %v12556_v19  ;;  %v4477_v40 = vpop.f32.mrb[65].mxu1  ;;  %v5288_v46 = vsel %vm1436_vm0, %v5285_v51, %v5287_v7  ;;  %v5289_v10 = vrot.slane %v5039_v0, 4  ;;  %8828 = vmatpush3.bf16.msra.mxu0 %v9549_v59  ;;  %v12563_v1 = vld [vmem:[#allocation45_spill] sm:$0xff] }
 0x48e   : > { %v4907_v60 = vmax.f32 %v4835_v12, 0.0  ;;  %v9034_v27 = vadd.f32 %v4477_v40, %v12557_v11  ;;  %v8684_v44 = vpop.f32.mrb[66].mxu1  ;;  %8757 = vmatprep.mubr.bf16.mxu0 %v5288_v46  ;;  %v5291_v47 = vrot.slane %v5041_v35, 4  ;;  %8901 = vmatprep.subr.bf16.mxu0 %v9550_v31 }
 0x48f   : > { %v4967_v17 = vpack.c.bf16 %v4909_v52, %v4908_v33  ;;  %v4761_v53 = vmul.f32 %v9033_v18, %v11027_v48  ;;  %v9035_v61 = vadd.f32 %v8684_v44, %v12558_v43  ;;  %v4480_v8 = vpop.f32.mrb[67].mxu1  ;;  %v5290_v6 = vsel %vm1436_vm0, %v5287_v7, %v5289_v10 }
 0x490   : > { %v4966_v45 = vpack.c.bf16 %v4907_v60, %v4906_v21  ;;  %v4759_v55 = vmul.f32 %v9034_v27, %v11027_v48  ;;  %v9036_v37 = vadd.f32 %v4480_v8, %v12559_v63  ;;  %v5292_v50 = vsel %vm1436_vm0, %v5289_v10, %v5291_v47  ;;  %8758 = vmatmul.mubr.bf16.gmra.mrb[124].mxu0 %v5290_v6 }
 0x491   : > { %v4840_v36 = vadd.f32 %v11033_v4, %v4761_v53  ;;  %v4762_v29 = vmul.f32 %v9035_v61, %v11027_v48  ;;  %8761 = vmatprep.mubr.bf16.mxu0 %v5292_v50  ;;  %v5059_v33 = vrot.slane %v4967_v17, 4 }
 0x492   : > { %v5042_v54 = vrot.slane %v4966_v45, 4  ;;  %v4838_v15 = vadd.f32 %v11033_v4, %v4759_v55  ;;  %v4760_v51 = vmul.f32 %v9036_v37, %v11027_v48 }
 0x493   : > { %v4841_v39 = vadd.f32 %v11033_v4, %v4762_v29  ;;  %v4912_v42 = vmax.f32 %v4840_v36, 0.0 }
 0x494   : > { %v5043_v23 = vsel %vm1436_vm0, %v5040_v38, %v5042_v54  ;;  %5053 = vst [vmem:[#allocation3 + $0x68] sm:$0xf] %v5042_v54  ;;  %v4839_v25 = vadd.f32 %v11033_v4, %v4760_v51  ;;  %v8687_v49 = vpop.f32.mrb[68].mxu1  ;;  %v4910_v57 = vmax.f32 %v4838_v15, 0.0  ;;  %v12562_v38 = vld [vmem:[#allocation44_spill] sm:$0xff] }
 0x495   : > { %5052 = vst [vmem:[#allocation3 + $0x60] sm:$0xff] %v5043_v23  ;;  %v4913_v3 = vmax.f32 %v4841_v39, 0.0  ;;  %v9037_v20 = vadd.f32 %v8687_v49, %v12560_v2  ;;  %v4493_v62 = vpop.f32.mrb[69].mxu1  ;;  %v5293_v22 = vrot.slane %v5043_v23, 4 }
 0x496   : > { %v4911_v59 = vmax.f32 %v4839_v25, 0.0  ;;  %v9038_v16 = vadd.f32 %v4493_v62, %v12561_v30  ;;  %v8688_v58 = vpop.f32.mrb[70].mxu1 }
 0x497   : > { %v4969_v13 = vpack.c.bf16 %v4913_v3, %v4912_v42  ;;  %v4765_v28 = vmul.f32 %v9037_v20, %v11027_v48  ;;  %v9039_v32 = vadd.f32 %v8688_v58, %v12562_v38  ;;  %v4496_v41 = vpop.f32.mrb[71].mxu1  ;;  %v5294_v26 = vsel %vm1436_vm0, %v5291_v47, %v5293_v22 }
 0x498   : > { %v4968_v24 = vpack.c.bf16 %v4911_v59, %v4910_v57  ;;  %v4763_v34 = vmul.f32 %v9038_v16, %v11027_v48  ;;  %v9040_v7 = vadd.f32 %v4496_v41, %v12563_v1  ;;  %8762 = vmatmul.mubr.bf16.gmra.mrb[128].mxu0 %v5294_v26 }
 0x499   : > { %v5062_v31 = vrot.slane %v4969_v13, 4  ;;  %v4844_v0 = vadd.f32 %v11033_v4, %v4765_v28  ;;  %v4766_v35 = vmul.f32 %v9039_v32, %v11027_v48 }
 0x49a   : > { %v5060_v12 = vrot.slane %v4968_v24, 4  ;;  %v4842_v56 = vadd.f32 %v11033_v4, %v4763_v34  ;;  %v4764_v52 = vmul.f32 %v9040_v7, %v11027_v48 }
 0x49b   : > { %v4845_v19 = vadd.f32 %v11033_v4, %v4766_v35  ;;  %v5175_v18 = vld [vmem:[#allocation3 + $0x68] sm:$0xff]  ;;  %v4916_v10 = vmax.f32 %v4844_v0, 0.0 }
 0x49c   : > { %v5061_v40 = vsel %vm1436_vm0, %v5059_v33, %v5060_v12  ;;  %v11208_v46 = vsel %vm1436_vm0, %v5060_v12, %v5062_v31  ;;  %v4843_v21 = vadd.f32 %v11033_v4, %v4764_v52  ;;  %v8691_v60 = vpop.f32.mrb[0].mxu1  ;;  %v5295_v47 = vrot.slane %v5175_v18, 4 }
 0x49d   : > { %5072 = vst [vmem:[#allocation3 + $0x70] sm:$0xff] %v5061_v40  ;;  %v4917_v11 = vmax.f32 %v4845_v19, 0.0  ;;  %v4769_v27 = vmul.f32 %v8691_v60, %v11027_v48  ;;  %v4509_v44 = vpop.f32.mrb[1].mxu1  ;;  %v5297_v17 = vrot.slane %v5061_v40, 4  ;;  %v4914_v53 = vmax.f32 %v4842_v56, 0.0 }
 0x49e   : > { %v4915_v43 = vmax.f32 %v4843_v21, 0.0  ;;  %v4767_v61 = vmul.f32 %v11027_v48, %v4509_v44  ;;  %v8692_v8 = vpop.f32.mrb[2].mxu1  ;;  %v5299_v6 = vrot.slane %v11208_v46, 4  ;;  %v5296_v50 = vsel %vm1436_vm0, %v5293_v22, %v5295_v47 }
 0x49f   : > { %v4971_v45 = vpack.c.bf16 %v4917_v11, %v4916_v10  ;;  %v4848_v55 = vadd.f32 %v11033_v4, %v4769_v27  ;;  %v4770_v63 = vmul.f32 %v8692_v8, %v11027_v48  ;;  %v4512_v37 = vpop.f32.mrb[3].mxu1  ;;  %8765 = vmatprep.mubr.bf16.mxu0 %v5296_v50  ;;  %v5298_v15 = vsel %vm1436_vm0, %v5295_v47, %v5297_v17 }
 0x4a0   : > { %v4970_v36 = vpack.c.bf16 %v4915_v43, %v4914_v53  ;;  %v4846_v29 = vadd.f32 %v11033_v4, %v4767_v61  ;;  %v4768_v54 = vmul.f32 %v11027_v48, %v4512_v37  ;;  %8766 = vmatmul.mubr.bf16.gmra.mrb[132].mxu0 %v5298_v15  ;;  %v5300_v23 = vsel %vm1436_vm0, %v5297_v17, %v5299_v6 }
 0x4a1   : > { %v5066_v51 = vrot.slane %v4971_v45, 4  ;;  %v4849_v39 = vadd.f32 %v11033_v4, %v4770_v63  ;;  %8769 = vmatprep.mubr.bf16.mxu0 %v5300_v23  ;;  %v4920_v42 = vmax.f32 %v4848_v55, 0.0 }
 0x4a2   : > { %v5064_v25 = vrot.slane %v4970_v36, 4  ;;  %v4847_v49 = vadd.f32 %v11033_v4, %v4768_v54  ;;  %v4918_v62 = vmax.f32 %v4846_v29, 0.0 }
 0x4a3   : > { %v4921_v3 = vmax.f32 %v4849_v39, 0.0 }
 0x4a4   : > { %v11224_v2 = vsel %vm1436_vm0, %v5062_v31, %v5064_v25  ;;  %v11227_v20 = vsel %vm1436_vm0, %v5064_v25, %v5066_v51  ;;  %v4919_v22 = vmax.f32 %v4847_v49, 0.0  ;;  %v8695_v57 = vpop.f32.mrb[4].mxu1 }
 0x4a5   : > { %v4973_v59 = vpack.c.bf16 %v4921_v3, %v4920_v42  ;;  %v4773_v30 = vmul.f32 %v8695_v57, %v11027_v48  ;;  %v4525_v16 = vpop.f32.mrb[5].mxu1  ;;  %v5301_v58 = vrot.slane %v11224_v2, 4  ;;  %v5303_v13 = vrot.slane %v11227_v20, 4 }
 0x4a6   : > { %v4972_v28 = vpack.c.bf16 %v4919_v22, %v4918_v62  ;;  %v4771_v38 = vmul.f32 %v11027_v48, %v4525_v16  ;;  %v8696_v32 = vpop.f32.mrb[6].mxu1 }
 0x4a7   : > { %v5081_v41 = vrot.slane %v4973_v59, 4  ;;  %v4852_v26 = vadd.f32 %v11033_v4, %v4773_v30  ;;  %v4774_v24 = vmul.f32 %v8696_v32, %v11027_v48  ;;  %v4528_v34 = vpop.f32.mrb[7].mxu1  ;;  %v5302_v1 = vsel %vm1436_vm0, %v5299_v6, %v5301_v58 }
 0x4a8   : > { %v5080_v7 = vrot.slane %v4972_v28, 4  ;;  %v4850_v31 = vadd.f32 %v11033_v4, %v4771_v38  ;;  %v4772_v0 = vmul.f32 %v11027_v48, %v4528_v34  ;;  %v5304_v35 = vsel %vm1436_vm0, %v5301_v58, %v5303_v13  ;;  %8770 = vmatmul.mubr.bf16.gmra.mrb[136].mxu0 %v5302_v1 }
 0x4a9   : > { %v4853_v33 = vadd.f32 %v11033_v4, %v4774_v24  ;;  %8773 = vmatprep.mubr.bf16.mxu0 %v5304_v35  ;;  %v4924_v52 = vmax.f32 %v4852_v26, 0.0 }
 0x4aa   : > { %v11241_v12 = vsel %vm1436_vm0, %v5080_v7, %v5081_v41  ;;  %5092 = vst [vmem:[#allocation3 + $0x90] sm:$0xf0] %v5080_v7  ;;  %v4851_v56 = vadd.f32 %v11033_v4, %v4772_v0  ;;  %v4922_v18 = vmax.f32 %v4850_v31, 0.0 }
 0x4ab   : > { %v4925_v19 = vmax.f32 %v4853_v33, 0.0  ;;  %v5307_v37 = vrot.slane %v11241_v12, 4 }
 0x4ac   : > { %v4923_v40 = vmax.f32 %v4851_v56, 0.0  ;;  %v8699_v10 = vpop.f32.mrb[8].mxu1 }
 0x4ad   : > { %v4975_v21 = vpack.c.bf16 %v4925_v19, %v4924_v52  ;;  %v4777_v60 = vmul.f32 %v8699_v10, %v11027_v48  ;;  %v4541_v11 = vpop.f32.mrb[9].mxu1 }
 0x4ae   : > { %v4974_v27 = vpack.c.bf16 %v4923_v40, %v4922_v18  ;;  %v4775_v44 = vmul.f32 %v11027_v48, %v4541_v11  ;;  %v8700_v47 = vpop.f32.mrb[10].mxu1 }
 0x4af   : > { %v5085_v17 = vrot.slane %v4975_v21, 4  ;;  %v4856_v53 = vadd.f32 %v11033_v4, %v4777_v60  ;;  %v4778_v43 = vmul.f32 %v8700_v47, %v11027_v48  ;;  %v4544_v61 = vpop.f32.mrb[11].mxu1 }
 0x4b0   : > { %v5083_v8 = vrot.slane %v4974_v27, 4  ;;  %v4854_v6 = vadd.f32 %v11033_v4, %v4775_v44  ;;  %v4776_v45 = vmul.f32 %v11027_v48, %v4544_v61  ;;  %v5162_v44 = vld [vmem:[#allocation3] sm:$0xf8] }
 0x4b1   : > { %5096 = vst [vmem:[#allocation3 + $0xb0] sm:$0xf] %v5085_v17  ;;  %v4857_v55 = vadd.f32 %v11033_v4, %v4778_v43  ;;  %v11251_v63 = vld [vmem:[#allocation3 + $0x90] sm:$0xff]  ;;  %v4928_v29 = vmax.f32 %v4856_v53, 0.0 }
 0x4b2   : > { %v11255_v50 = vsel %vm1436_vm0, %v5081_v41, %v5083_v8  ;;  %v11258_v36 = vsel %vm1436_vm0, %v5083_v8, %v5085_v17  ;;  %v4855_v54 = vadd.f32 %v11033_v4, %v4776_v45  ;;  %v5305_v51 = vrot.slane %v11251_v63, 4 }
 0x4b3   : > { %v4929_v15 = vmax.f32 %v4857_v55, 0.0  ;;  %v5309_v39 = vrot.slane %v11255_v50, 4  ;;  %v5311_v23 = vrot.slane %v11258_v36, 4  ;;  %v4926_v25 = vmax.f32 %v4854_v6, 0.0 }
 0x4b4   : > { %v4927_v49 = vmax.f32 %v4855_v54, 0.0  ;;  %v8703_v42 = vpop.f32.mrb[12].mxu1  ;;  %v5306_v57 = vsel %vm1436_vm0, %v5303_v13, %v5305_v51  ;;  %v5308_v59 = vsel %vm1436_vm0, %v5305_v51, %v5307_v37 }
 0x4b5   : > { %v4977_v3 = vpack.c.bf16 %v4929_v15, %v4928_v29  ;;  %v4781_v62 = vmul.f32 %v8703_v42, %v11027_v48  ;;  %v4557_v22 = vpop.f32.mrb[13].mxu1  ;;  %8774 = vmatmul.mubr.bf16.gmra.mrb[140].mxu0 %v5306_v57  ;;  %v5310_v28 = vsel %vm1436_vm0, %v5307_v37, %v5309_v39  ;;  %v5312_v38 = vsel %vm1436_vm0, %v5309_v39, %v5311_v23 }
 0x4b6   : > { %v4976_v30 = vpack.c.bf16 %v4927_v49, %v4926_v25  ;;  %v4779_v16 = vmul.f32 %v11027_v48, %v4557_v22  ;;  %v8704_v58 = vpop.f32.mrb[14].mxu1  ;;  %8777 = vmatprep.mubr.bf16.mxu0 %v5308_v59  ;;  %v5741_v37 = vshrl.u32 %v5162_v44, 16  ;;  %v12338_v29 = vshrl.u32 %v11058_v5, 16 }
 0x4b7   : > { %v5103_v32 = vrot.slane %v4977_v3, 4  ;;  %v4860_v41 = vadd.f32 %v11033_v4, %v4781_v62  ;;  %v4782_v26 = vmul.f32 %v8704_v58, %v11027_v48  ;;  %v4560_v24 = vpop.f32.mrb[15].mxu1 }
 0x4b8   : > { %v5102_v13 = vrot.slane %v4976_v30, 4  ;;  %v4858_v34 = vadd.f32 %v11033_v4, %v4779_v16  ;;  %v4780_v1 = vmul.f32 %v11027_v48, %v4560_v24  ;;  %v11282_v21 = vld [vmem:[#allocation3 + $0xb0] sm:$0xff]  ;;  %v5744_v30 = vshll.u32 %v5162_v44, 16 }
 0x4b9   : > { %v4861_v7 = vadd.f32 %v11033_v4, %v4782_v26  ;;  %v4932_v35 = vmax.f32 %v4860_v41, 0.0  ;;  %v5313_v45 = vrot.slane %v11282_v21, 4 }
 0x4ba   : > { %v11278_v31 = vsel %vm1436_vm0, %v5102_v13, %v5103_v32  ;;  %v4859_v0 = vadd.f32 %v11033_v4, %v4780_v1  ;;  %v4930_v56 = vmax.f32 %v4858_v34, 0.0  ;;  %v11312_v34 = vld [vmem:[#allocation3 + $0x120] sm:$0xf] }
 0x4bb   : > { %v4933_v33 = vmax.f32 %v4861_v7, 0.0  ;;  %v5315_v39 = vrot.slane %v11278_v31, 4  ;;  %v5314_v59 = vsel %vm1436_vm0, %v5311_v23, %v5313_v45  ;;  %12564 = vst [vmem:[#allocation46_spill] sm:$0xff] %v11312_v34  ;;  %v12337_v23 = vshll.u32 %v11058_v5, 16 }
 0x4bc   : > { %v4931_v52 = vmax.f32 %v4859_v0, 0.0  ;;  %v8707_v19 = vpop.f32.mrb[16].mxu1 }
 0x4bd   : > { %v4979_v18 = vpack.c.bf16 %v4933_v33, %v4932_v35  ;;  %v4785_v40 = vmul.f32 %v8707_v19, %v11027_v48  ;;  %v4573_v10 = vpop.f32.mrb[17].mxu1  ;;  %8778 = vmatmul.mubr.bf16.gmra.mrb[144].mxu0 %v5310_v28  ;;  %v5316_v13 = vsel %vm1436_vm0, %v5313_v45, %v5315_v39  ;;  %v11318_v33 = vrot.slane %v5741_v37, 3 }
 0x4be   : > { %v4978_v60 = vpack.c.bf16 %v4931_v52, %v4930_v56  ;;  %v4783_v11 = vmul.f32 %v11027_v48, %v4573_v10  ;;  %v8708_v27 = vpop.f32.mrb[18].mxu1  ;;  %8781 = vmatprep.mubr.bf16.mxu0 %v5312_v38  ;;  %v5341_v10 = vrot.slane %v11312_v34, 4  ;;  %v5754_v44 = vrot.slane %v12337_v23, 4 }
 0x4bf   : > { %v5107_v47 = vrot.slane %v4979_v18, 4  ;;  %v4864_v17 = vadd.f32 %v11033_v4, %v4785_v40  ;;  %v4786_v53 = vmul.f32 %v8708_v27, %v11027_v48  ;;  %v4576_v43 = vpop.f32.mrb[19].mxu1  ;;  %v11322_v18 = vrot.slane %v5744_v30, 4 }
 0x4c0   : > { %v5105_v61 = vrot.slane %v4978_v60, 4  ;;  %v4862_v8 = vadd.f32 %v11033_v4, %v4783_v11  ;;  %v4784_v6 = vmul.f32 %v11027_v48, %v4576_v43  ;;  %v5751_v60 = vrot.slane %v12338_v29, 3 }
 0x4c1   : > { %v4865_v55 = vadd.f32 %v11033_v4, %v4786_v53  ;;  %v4936_v25 = vmax.f32 %v4864_v17, 0.0  ;;  %v12336_v17 = vshrl.u32 %v11074_v14, 16  ;;  %v12360_v37 = vshrl.u32 %v11208_v46, 16 }
 0x4c2   : > { %v11293_v54 = vsel %vm1436_vm0, %v5103_v32, %v5105_v61  ;;  %v11296_v15 = vsel %vm1436_vm0, %v5105_v61, %v5107_v47  ;;  %v4863_v51 = vadd.f32 %v11033_v4, %v4784_v6  ;;  %v4934_v62 = vmax.f32 %v4862_v8, 0.0 }
 0x4c3   : > { %v4937_v49 = vmax.f32 %v4865_v55, 0.0  ;;  %v5317_v42 = vrot.slane %v11293_v54, 4  ;;  %v5319_v3 = vrot.slane %v11296_v15, 4  ;;  %v12335_v8 = vshll.u32 %v11074_v14, 16  ;;  %v11654_v14 = vld [vmem:[#allocation3 + $0x38] sm:$0xff] }
 0x4c4   : > { %v4935_v22 = vmax.f32 %v4863_v51, 0.0  ;;  %v8711_v57 = vpop.f32.mrb[20].mxu1  ;;  %12575 = vst [vmem:[#allocation16_spill] sm:$0xff] %v11654_v14 }
 0x4c5   : > { %v11305_v16 = vpack.c.bf16 %v4937_v49, %v4936_v25  ;;  %v4789_v58 = vmul.f32 %v8711_v57, %v11027_v48  ;;  %v4589_v28 = vpop.f32.mrb[21].mxu1  ;;  %v5318_v38 = vsel %vm1436_vm0, %v5315_v39, %v5317_v42  ;;  %v5320_v32 = vsel %vm1436_vm0, %v5317_v42, %v5319_v3  ;;  %8782 = vmatmul.mubr.bf16.gmra.mrb[148].mxu0 %v5314_v59 }
 0x4c6   : > { %v4980_v41 = vpack.c.bf16 %v4935_v22, %v4934_v62  ;;  %v4787_v26 = vmul.f32 %v11027_v48, %v4589_v28  ;;  %v8712_v24 = vpop.f32.mrb[22].mxu1  ;;  %8785 = vmatprep.mubr.bf16.mxu0 %v5316_v13  ;;  %v12358_v49 = vshll.u32 %v11208_v46, 16  ;;  %v11346_v57 = vor.u32 %v5754_v44, %v5751_v60 }
 0x4c7   : > { %v5123_v1 = vrot.slane %v11305_v16, 4  ;;  %v4868_v7 = vadd.f32 %v11033_v4, %v4789_v58  ;;  %v4790_v0 = vmul.f32 %v8712_v24, %v11027_v48  ;;  %v4592_v35 = vpop.f32.mrb[23].mxu1  ;;  %v11350_v59 = vrot.slane %v12336_v17, 3  ;;  %v11356_v16 = vld [vmem:[%s12257_s6] ss:$0 sm:$0xff] }
 0x4c8   : > { %v5109_v56 = vrot.slane %v4980_v41, 4  ;;  %v4866_v52 = vadd.f32 %v11033_v4, %v4787_v26  ;;  %v4788_v19 = vmul.f32 %v11027_v48, %v4592_v35  ;;  %v12374_v60 = vshll.u32 %v11077_v9, 16 }
 0x4c9   : > { %5135 = vst [vmem:[#allocation3 + $0xd8] sm:$0xf0] %v5123_v1  ;;  %v4869_v40 = vadd.f32 %v11033_v4, %v4790_v0  ;;  %v4940_v53 = vmax.f32 %v4868_v7, 0.0  ;;  %v12343_v7 = vshrl.u32 %v11077_v9, 16 }
 0x4ca   : > { %v11329_v11 = vsel %vm1436_vm0, %v5107_v47, %v5109_v56  ;;  %v4867_v27 = vadd.f32 %v11033_v4, %v4788_v19  ;;  %v4938_v6 = vmax.f32 %v4866_v52, 0.0  ;;  %v5747_v47 = vor.u32 %v11322_v18, %v11318_v33 }
 0x4cb   : > { %v4941_v43 = vmax.f32 %v4869_v40, 0.0  ;;  %v5321_v61 = vrot.slane %v11329_v11, 4  ;;  %v5880_v56 = vrot.slane %v12358_v49, 4 }
 0x4cc   : > { %v4939_v45 = vmax.f32 %v4867_v27, 0.0  ;;  %v8715_v55 = vpop.f32.mrb[24].mxu1 }
 0x4cd   : > { %v11340_v4 = vpack.c.bf16 %v4941_v43, %v4940_v53  ;;  %v4793_v51 = vmul.f32 %v8715_v55, %v11027_v48  ;;  %v4605_v39 = vpop.f32.mrb[25].mxu1  ;;  %v5322_v25 = vsel %vm1436_vm0, %v5319_v3, %v5321_v61  ;;  %8786 = vmatmul.mubr.bf16.gmra.mrb[152].mxu0 %v5318_v38  ;;  %v11367_v38 = vrot.slane %v12335_v8, 4 }
 0x4ce   : > { %v4982_v42 = vpack.c.bf16 %v4939_v45, %v4938_v6  ;;  %v4791_v62 = vmul.f32 %v11027_v48, %v4605_v39  ;;  %v8716_v22 = vpop.f32.mrb[26].mxu1  ;;  %v11362_v48 = vld [vmem:[%s12256_s5] ss:$0 sm:$0xff]  ;;  %8789 = vmatprep.mubr.bf16.mxu0 %v5320_v32  ;;  %v5877_v32 = vrot.slane %v12360_v37, 3 }
 0x4cf   : > { %v5126_v30 = vrot.slane %v11340_v4, 4  ;;  %v4872_v3 = vadd.f32 %v11356_v16, %v4793_v51  ;;  %v4794_v58 = vmul.f32 %v11362_v48, %v8716_v22  ;;  %v4608_v28 = vpop.f32.mrb[27].mxu1 }
 0x4d0   : > { %v5124_v41 = vrot.slane %v4982_v42, 4  ;;  %v4870_v26 = vadd.f32 %v11356_v16, %v4791_v62  ;;  %v4792_v24 = vmul.f32 %v11362_v48, %v4608_v28  ;;  %v11371_v13 = vld [vmem:[#allocation3 + $0xd8] sm:$0xff]  ;;  %v11396_v22 = vor.u32 %v5880_v56, %v5877_v32 }
 0x4d1   : > { %v4873_v0 = vadd.f32 %v11356_v16, %v4794_v58  ;;  %v5323_v35 = vrot.slane %v11371_v13, 4  ;;  %v4944_v27 = vmax.f32 %v4872_v3, 0.0  ;;  %v12351_v32 = vshll.u32 %v11224_v2, 16 }
 0x4d2   : > { %v11381_v52 = vsel %vm1436_vm0, %v5123_v1, %v5124_v41  ;;  %v11384_v19 = vsel %vm1436_vm0, %v5124_v41, %v5126_v30  ;;  %v4871_v40 = vadd.f32 %v11356_v16, %v4792_v24  ;;  %v4942_v6 = vmax.f32 %v4870_v26, 0.0 }
 0x4d3   : > { %v4945_v44 = vmax.f32 %v4873_v0, 0.0  ;;  %v5325_v53 = vrot.slane %v11381_v52, 4  ;;  %v5327_v43 = vrot.slane %v11384_v19, 4  ;;  %v5324_v4 = vsel %vm1436_vm0, %v5321_v61, %v5323_v35 }
 0x4d4   : > { %v4943_v45 = vmax.f32 %v4871_v40, 0.0  ;;  %v8719_v55 = vpop.f32.mrb[28].mxu1  ;;  %v12356_v1 = vshrl.u32 %v11224_v2, 16  ;;  %v12367_v37 = vshrl.u32 %v11381_v52, 16 }
 0x4d5   : > { %v11392_v51 = vpack.c.bf16 %v4945_v44, %v4944_v27  ;;  %v4797_v39 = vmul.f32 %v11362_v48, %v8719_v55  ;;  %v4621_v42 = vpop.f32.mrb[29].mxu1  ;;  %v5328_v62 = vsel %vm1436_vm0, %v5325_v53, %v5327_v43  ;;  %8790 = vmatmul.mubr.bf16.gmra.mrb[156].mxu0 %v5322_v25  ;;  %v5326_v41 = vsel %vm1436_vm0, %v5323_v35, %v5325_v53 }
 0x4d6   : > { %v4984_v3 = vpack.c.bf16 %v4943_v45, %v4942_v6  ;;  %v4795_v58 = vmul.f32 %v11362_v48, %v4621_v42  ;;  %v8720_v28 = vpop.f32.mrb[30].mxu1  ;;  %v5886_v61 = vrot.slane %v12356_v1, 3  ;;  %8793 = vmatprep.mubr.bf16.mxu0 %v5324_v4  ;;  %v12340_v35 = vshrl.u32 %v11227_v20, 16 }
 0x4d7   : > { %v5145_v26 = vrot.slane %v11392_v51, 4  ;;  %v4876_v24 = vadd.f32 %v11356_v16, %v4797_v39  ;;  %v4798_v0 = vmul.f32 %v11362_v48, %v8720_v28  ;;  %v4624_v40 = vpop.f32.mrb[31].mxu1  ;;  %v5889_v6 = vrot.slane %v12351_v32, 4 }
 0x4d8   : > { %v5128_v56 = vrot.slane %v4984_v3, 4  ;;  %v4874_v27 = vadd.f32 %v11356_v16, %v4795_v58  ;;  %v4796_v25 = vmul.f32 %v11362_v48, %v4624_v40  ;;  %v12339_v45 = vshll.u32 %v11227_v20, 16 }
 0x4d9   : > { %v4948_v44 = vmax.f32 %v4876_v24, 0.0  ;;  %v4877_v53 = vadd.f32 %v11356_v16, %v4798_v0  ;;  %v5895_v39 = vrot.slane %v12340_v35, 3  ;;  %v5890_v58 = vor.u32 %v5889_v6, %v5886_v61 }
 0x4da   : > { %v11414_v55 = vsel %vm1436_vm0, %v5126_v30, %v5128_v56  ;;  %5139 = vst [vmem:[#allocation3 + $0xf8] sm:$0xf] %v5128_v56  ;;  %v4946_v4 = vmax.f32 %v4874_v27, 0.0  ;;  %v4875_v51 = vadd.f32 %v11356_v16, %v4796_v25  ;;  %v5898_v28 = vrot.slane %v12339_v45, 4 }
 0x4db   : > { %v4949_v42 = vmax.f32 %v4877_v53, 0.0  ;;  %v5329_v3 = vrot.slane %v11414_v55, 4  ;;  %v12344_v40 = vshrl.u32 %v11251_v63, 16  ;;  %v12342_v30 = vshll.u32 %v11251_v63, 16 }
 0x4dc   : > { %v4947_v24 = vmax.f32 %v4875_v51, 0.0  ;;  %v8723_v0 = vpop.f32.mrb[32].mxu1  ;;  %v12341_v56 = vshrl.u32 %v11241_v12, 16  ;;  %v11429_v61 = vsel %vm1676_vm1, %v11396_v22, %v5890_v58  ;;  %v5899_v23 = vor.u32 %v5898_v28, %v5895_v39 }
 0x4dd   : > { %v4987_v27 = vpack.c.bf16 %v4949_v42, %v4948_v44  ;;  %v4801_v25 = vmul.f32 %v11362_v48, %v8723_v0  ;;  %v4637_v8 = vpop.f32.mrb[33].mxu1  ;;  %v5330_v53 = vsel %vm1436_vm0, %v5327_v43, %v5329_v3  ;;  %8794 = vmatmul.mubr.bf16.gmra.mrb[160].mxu0 %v5326_v41  ;;  %v5904_v29 = vrot.slane %v12344_v40, 3 }
 0x4de   : > { %v4986_v6 = vpack.c.bf16 %v4947_v24, %v4946_v4  ;;  %v4799_v51 = vmul.f32 %v11362_v48, %v4637_v8  ;;  %v8724_v17 = vpop.f32.mrb[34].mxu1  ;;  %8797 = vmatprep.mubr.bf16.mxu0 %v5328_v62  ;;  %v5907_v43 = vrot.slane %v12342_v30, 4  ;;  %v11441_v41 = vsel %vm1676_vm1, %v5890_v58, %v5899_v23 }
 0x4df   : > { %v5148_v45 = vrot.slane %v4987_v27, 4  ;;  %v4880_v44 = vadd.f32 %v11356_v16, %v4801_v25  ;;  %v4802_v42 = vmul.f32 %v11362_v48, %v8724_v17  ;;  %v4640_v0 = vpop.f32.mrb[35].mxu1  ;;  %v5913_v17 = vrot.slane %v12341_v56, 3 }
 0x4e0   : > { %v5146_v35 = vrot.slane %v4986_v6, 4  ;;  %v4878_v4 = vadd.f32 %v11356_v16, %v4799_v51  ;;  %v4800_v8 = vmul.f32 %v11362_v48, %v4640_v0  ;;  %v5908_v27 = vor.u32 %v5907_v43, %v5904_v29 }
 0x4e1   : > { %v4952_v39 = vmax.f32 %v4880_v44, 0.0  ;;  %v4881_v28 = vadd.f32 %v11356_v16, %v4802_v42  ;;  %v11444_v24 = vld [vmem:[#allocation3 + $0xf8] sm:$0xff]  ;;  %v12345_v43 = vshrl.u32 %v11255_v50, 16  ;;  %v12348_v56 = vshll.u32 %v11255_v50, 16 }
 0x4e2   : > { %v11449_v62 = vsel %vm1436_vm0, %v5145_v26, %v5146_v35  ;;  %v11452_v25 = vsel %vm1436_vm0, %v5146_v35, %v5148_v45  ;;  %v4950_v6 = vmax.f32 %v4878_v4, 0.0  ;;  %v4879_v48 = vadd.f32 %v11356_v16, %v4800_v8 }
 0x4e3   : > { %v4953_v58 = vmax.f32 %v4881_v28, 0.0  ;;  %v5331_v51 = vrot.slane %v11444_v24, 4  ;;  %v5333_v44 = vrot.slane %v11449_v62, 4  ;;  %v5335_v42 = vrot.slane %v11452_v25, 4 }
 0x4e4   : > { %v4951_v29 = vmax.f32 %v4879_v48, 0.0  ;;  %v11459_v0 = vsel %vm1676_vm1, %v5899_v23, %v5908_v27  ;;  %v12346_v26 = vshll.u32 %v11241_v12, 16  ;;  %v11467_v8 = vrot.slane %v12343_v7, 3 }
 0x4e5   : > { %v4989_v35 = vpack.c.bf16 %v4953_v58, %v4952_v39  ;;  %v5332_v4 = vsel %vm1436_vm0, %v5329_v3, %v5331_v51  ;;  %v5336_v16 = vsel %vm1436_vm0, %v5333_v44, %v5335_v42  ;;  %8798 = vmatmul.mubr.bf16.gmra.mrb[164].mxu0 %v5330_v53  ;;  %v5922_v23 = vrot.slane %v12345_v43, 3 }
 0x4e6   : > { %v4988_v28 = vpack.c.bf16 %v4951_v29, %v4950_v6  ;;  %v5916_v48 = vrot.slane %v12346_v26, 4  ;;  %8801 = vmatprep.mubr.bf16.mxu0 %v5332_v4  ;;  %v12347_v3 = vshrl.u32 %v11258_v36, 16  ;;  %v12349_v39 = vshll.u32 %v11258_v36, 16 }
 0x4e7   : > { %v5152_v30 = vrot.slane %v4989_v35, 4  ;;  %v12350_v58 = vshrl.u32 %v11282_v21, 16  ;;  %v5925_v53 = vrot.slane %v12348_v56, 4  ;;  %v12353_v6 = vshll.u32 %v11282_v21, 16 }
 0x4e8   : > { %v5150_v7 = vrot.slane %v4988_v28, 4  ;;  %v5917_v40 = vor.u32 %v5916_v48, %v5913_v17  ;;  %v5931_v29 = vrot.slane %v12347_v3, 3  ;;  %v5934_v35 = vrot.slane %v12349_v39, 4 }
 0x4e9   : > { %v5940_v4 = vrot.slane %v12350_v58, 3  ;;  %v12352_v43 = vshrl.u32 %v11278_v31, 16  ;;  %v5926_v48 = vor.u32 %v5925_v53, %v5922_v23  ;;  %v5943_v58 = vrot.slane %v12353_v6, 4 }
 0x4ea   : > { %v11488_v26 = vsel %vm1436_vm0, %v5148_v45, %v5150_v7  ;;  %v11491_v17 = vsel %vm1436_vm0, %v5150_v7, %v5152_v30  ;;  %v11494_v28 = vsel %vm1676_vm1, %v5908_v27, %v5917_v40  ;;  %v5935_v39 = vor.u32 %v5934_v35, %v5931_v29 }
 0x4eb   : > { %v5337_v3 = vrot.slane %v11488_v26, 4  ;;  %v12366_v56 = vrot.slane %v11491_v17, 4  ;;  %v11501_v32 = vsel %vm1676_vm1, %v5917_v40, %v5926_v48  ;;  %v5949_v45 = vrot.slane %v12352_v43, 3 }
 0x4ec   : > { %v12355_v7 = vshll.u32 %v11278_v31, 16  ;;  %v12354_v30 = vshrl.u32 %v11293_v54, 16  ;;  %v5334_v27 = vsel %vm1436_vm0, %v5331_v51, %v5333_v44  ;;  %v11513_v29 = vsel %vm1676_vm1, %v5926_v48, %v5935_v39 }
 0x4ed   : > { %v5338_v23 = vsel %vm1436_vm0, %v5335_v42, %v5337_v3  ;;  %v5340_v53 = vsel %vm1436_vm0, %v5337_v3, %v12366_v56  ;;  %8802 = vmatmul.mubr.bf16.gmra.mrb[168].mxu0 %v5334_v27  ;;  %v5944_v40 = vor.u32 %v5943_v58, %v5940_v4  ;;  %v12357_v6 = vshll.u32 %v11293_v54, 16 }
 0x4ee   : > { %v5952_v35 = vrot.slane %v12355_v7, 4  ;;  %v5958_v43 = vrot.slane %v12354_v30, 3  ;;  %8805 = vmatprep.mubr.bf16.mxu0 %v5336_v16  ;;  %v12359_v51 = vshrl.u32 %v11296_v15, 16  ;;  %v12361_v44 = vshll.u32 %v11296_v15, 16 }
 0x4ef   : > { %v12362_v42 = vshrl.u32 %v11329_v11, 16  ;;  %v12363_v3 = vshll.u32 %v11329_v11, 16  ;;  %v11525_v48 = vsel %vm1676_vm1, %v5935_v39, %v5944_v40  ;;  %v5961_v4 = vrot.slane %v12357_v6, 4 }
 0x4f0   : > { %v5953_v58 = vor.u32 %v5952_v35, %v5949_v45  ;;  %v12365_v27 = vshrl.u32 %v11371_v13, 16  ;;  %v5967_v16 = vrot.slane %v12359_v51, 3  ;;  %v5970_v30 = vrot.slane %v12361_v44, 4 }
 0x4f1   : > { %v5976_v7 = vrot.slane %v12362_v42, 3  ;;  %v5979_v1 = vrot.slane %v12363_v3, 4  ;;  %v5962_v45 = vor.u32 %v5961_v4, %v5958_v43  ;;  %v12364_v6 = vshll.u32 %v11371_v13, 16 }
 0x4f2   : > { %v11539_v39 = vsel %vm1676_vm1, %v5944_v40, %v5953_v58  ;;  %v5985_v35 = vrot.slane %v12365_v27, 3  ;;  %v5971_v49 = vor.u32 %v5970_v30, %v5967_v16  ;;  %v12368_v44 = vshll.u32 %v11381_v52, 16 }
 0x4f3   : > { %v5980_v51 = vor.u32 %v5979_v1, %v5976_v7  ;;  %v11547_v42 = vsel %vm1676_vm1, %v5953_v58, %v5962_v45  ;;  %v5988_v3 = vrot.slane %v12364_v6, 4  ;;  %v12371_v40 = vshrl.u32 %v11384_v19, 16 }
 0x4f4   : > { %v12369_v43 = vshll.u32 %v11384_v19, 16  ;;  %v11554_v4 = vsel %vm1676_vm1, %v5962_v45, %v5971_v49  ;;  %v5994_v1 = vrot.slane %v12367_v37, 3  ;;  %v5997_v7 = vrot.slane %v12368_v44, 4 }
 0x4f5   : > { %v11557_v30 = vsel %vm1676_vm1, %v5971_v49, %v5980_v51  ;;  %8806 = vmatmul.mubr.bf16.gmra.mrb[172].mxu0 %v5338_v23  ;;  %v5989_v58 = vor.u32 %v5988_v3, %v5985_v35  ;;  %v6003_v16 = vrot.slane %v12371_v40, 3  ;;  %v12370_v45 = vshrl.u32 %v11414_v55, 16 }
 0x4f6   : > { %v6006_v6 = vrot.slane %v12369_v43, 4  ;;  %8809 = vmatprep.mubr.bf16.mxu0 %v5340_v53  ;;  %v5998_v27 = vor.u32 %v5997_v7, %v5994_v1  ;;  %v12378_v49 = vshll.u32 %v11414_v55, 16  ;;  %v12372_v56 = vshrl.u32 %v11444_v24, 16 }
 0x4f7   : > { %v12373_v37 = vshll.u32 %v11444_v24, 16  ;;  %v11572_v44 = vsel %vm1676_vm1, %v5980_v51, %v5989_v58  ;;  %v6012_v3 = vrot.slane %v12370_v45, 3  ;;  %v12375_v35 = vshrl.u32 %v11449_v62, 16 }
 0x4f8   : > { %v6007_v23 = vor.u32 %v6006_v6, %v6003_v16  ;;  %v11578_v43 = vsel %vm1676_vm1, %v5989_v58, %v5998_v27  ;;  %v6015_v53 = vrot.slane %v12378_v49, 4  ;;  %v6021_v1 = vrot.slane %v12372_v56, 3 }
 0x4f9   : > { %12565 = vst [vmem:[#allocation5_spill] sm:$0xff] %v11578_v43  ;;  %v6024_v7 = vrot.slane %v12373_v37, 4  ;;  %v5772_v6 = vrot.slane %v12374_v60, 4  ;;  %v6030_v16 = vrot.slane %v12375_v35, 3  ;;  %v12376_v58 = vshll.u32 %v11449_v62, 16 }
 0x4fa   : > { %v11589_v51 = vsel %vm1676_vm1, %v5998_v27, %v6007_v23  ;;  %v6016_v45 = vor.u32 %v6015_v53, %v6012_v3  ;;  %v5756_v56 = vsel %vm1676_vm1, %v5747_v47, %v11346_v57  ;;  %v5764_v37 = vor.u32 %v11367_v38, %v11350_v59  ;;  %v11608_v3 = vld [vmem:[#allocation3 + $0x20] sm:$0xff] }
 0x4fb   : > { %12566 = vst [vmem:[#allocation9_spill] sm:$0xff] %v11589_v51  ;;  %v6025_v40 = vor.u32 %v6024_v7, %v6021_v1  ;;  %v6033_v27 = vrot.slane %v12376_v58, 4  ;;  %v12567_v60 = vrot.slane %v11491_v17, 4  ;;  %12568 = vst [vmem:[#allocation10_spill] sm:$0xff] %v11608_v3  ;;  %v12386_v53 = vshrl.u32 %v11608_v3, 16  ;;  %v11625_v7 = vld [vmem:[#allocation3 + $0x28] sm:$0xff] }
 0x4fc   : > { %v11612_v33 = vsel %vm1676_vm1, %v6007_v23, %v6016_v45  ;;  %v11618_v47 = vor.u32 %v5772_v6, %v11467_v8  ;;  %v12377_v38 = vshrl.u32 %v11452_v25, 16  ;;  %v12379_v1 = vshll.u32 %v11452_v25, 16  ;;  %12571 = vst [vmem:[#allocation13_spill] sm:$0xff] %v11625_v7 }
 0x4fd   : > { %v5342_v35 = vsel %vm1436_vm0, %v12567_v60, %v5341_v10  ;;  %12569 = vst [vmem:[#allocation11_spill] sm:$0xff] %v11612_v33  ;;  %v11615_v18 = vsel %vm1676_vm1, %v6016_v45, %v6025_v40  ;;  %v6034_v59 = vor.u32 %v6033_v27, %v6030_v16  ;;  %v12387_v10 = vshll.u32 %v11608_v3, 16 }
 0x4fe   : > { %12570 = vst [vmem:[#allocation12_spill] sm:$0xff] %v11615_v18  ;;  %8810 = vmatmul.mubr.bf16.gmra.mrb[176].mxu0 %v5342_v35  ;;  %v12380_v60 = vshrl.u32 %v11488_v26, 16  ;;  %v12381_v23 = vshll.u32 %v11488_v26, 16  ;;  %v6039_v8 = vrot.slane %v12377_v38, 3  ;;  %v6042_v6 = vrot.slane %v12379_v1, 4 }
 0x4ff   : > { %8829 = vmatprep.mubr.bf16.mxu0 %v5756_v56  ;;  %v11629_v35 = vsel %vm1676_vm1, %v6025_v40, %v6034_v59  ;;  %v5765_v58 = vsel %vm1676_vm1, %v11346_v57, %v5764_v37  ;;  %v5774_v40 = vsel %vm1676_vm1, %v5764_v37, %v11618_v47  ;;  %v5778_v38 = vrot.slane %v12386_v53, 3  ;;  %v11648_v56 = vld [vmem:[#allocation3 + $0x30] sm:$0xff]  ;;  %v11673_v53 = vld [vmem:[#allocation3 + $0x48] sm:$0xff] }
 0x500   : > { %12572 = vst [vmem:[#allocation14_spill] sm:$0xff] %v11629_v35  ;;  %v6048_v16 = vrot.slane %v12380_v60, 3  ;;  %v6051_v27 = vrot.slane %v12381_v23, 4  ;;  %v6043_v49 = vor.u32 %v6042_v6, %v6039_v8  ;;  %v5781_v1 = vrot.slane %v12387_v10, 4  ;;  %12573 = vst [vmem:[#allocation15_spill] sm:$0xff] %v11648_v56  ;;  %v9551_v8 = vld [vmem:[%s12258_s7 + $0x88] sm:$0xff]  }
 0x501   : > { %v12574_v9 = vshrl.u32 %v11625_v7, 16  ;;  %v12577_v10 = vshll.u32 %v11625_v7, 16  ;;  %v12581_v60 = vshrl.u32 %v11654_v14, 16  ;;  %v12588_v18 = vshll.u32 %v11673_v53, 16 }
 0x502   : > { %v6052_v23 = vor.u32 %v6051_v27, %v6048_v16  ;;  %v11662_v6 = vsel %vm1676_vm1, %v6034_v59, %v6043_v49  ;;  %v11666_v16 = vld [vmem:[#allocation3 + $0x40] sm:$0xff]  ;;  %v12582_v59 = vshll.u32 %v11654_v14, 16  ;;  %v5782_v34 = vor.u32 %v5781_v1, %v5778_v38  ;;  %v9553_v38 = vld [vmem:[%s12258_s7 + $0x98] sm:$0xff]  }
 0x503   : > { %v5787_v57 = vrot.slane %v12574_v9, 3  ;;  %12576 = vst [vmem:[#allocation17_spill] sm:$0xff] %v11662_v6  ;;  %v5790_v45 = vrot.slane %v12577_v10, 4  ;;  %v9614_v9 = vld [vmem:[%s12258_s7 + $0x80] sm:$0xff]   ;;  %v5805_v5 = vrot.slane %v12581_v60, 3  ;;  %v9552_v10 = vld [vmem:[%s12258_s7 + $0x90] sm:$0xff]  }
 0x504   : > { %v11671_v37 = vsel %vm1676_vm1, %v6043_v49, %v6052_v23  ;;  %v12579_v49 = vshrl.u32 %v11648_v56, 16  ;;  %v5808_v3 = vrot.slane %v12582_v59, 4  ;;  %v12586_v60 = vshll.u32 %v11666_v16, 16 }
 0x505   : > { %12578 = vst [vmem:[#allocation18_spill] sm:$0xff] %v11671_v37  ;;  %v12584_v37 = vshll.u32 %v11491_v17, 16  ;;  %v5791_v14 = vor.u32 %v5790_v45, %v5787_v57  ;;  %v12587_v59 = vshrl.u32 %v11673_v53, 16  ;;  %v5826_v33 = vrot.slane %v12588_v18, 4 }
 0x506   : > { %8830 = vmatmul.mubr.bf16.vlgmr.msra.gmra.mrb[108].mxu0 %v5765_v58  ;;  %v5796_v27 = vrot.slane %v12579_v49, 3  ;;  %v12580_v58 = vshll.u32 %v11648_v56, 16  ;;  %v5817_v6 = vrot.slane %v12586_v60, 4  ;;  %v5809_v43 = vor.u32 %v5808_v3, %v5805_v5 }
 0x507   : > { %8902 = vmatpush3.bf16.msra.mxu0 %v9614_v9  ;;  %8833 = vmatprep.mubr.bf16.mxu0 %v5774_v40  ;;  %v12583_v9 = vshrl.u32 %v11491_v17, 16  ;;  %v6060_v49 = vrot.slane %v12584_v37, 4  ;;  %v5823_v35 = vrot.slane %v12587_v59, 3  ;;  %v5783_v45 = vsel %vm1676_vm1, %v11618_v47, %v5782_v34  ;;  %v11716_v37 = vld [vmem:[#allocation3 + $0x50] sm:$0xff] }
 0x508   : > { %v5799_v7 = vrot.slane %v12580_v58, 4  ;;  %8903 = vmatprep.subr.bf16.mxu0 %v9551_v8  ;;  %v12585_v58 = vshrl.u32 %v11666_v16, 16  ;;  %v12403_v18 = vshrl.u32 %v11716_v37, 16  ;;  %v5792_v5 = vsel %vm1676_vm1, %v5782_v34, %v5791_v14  ;;  %v9554_v34 = vld [vmem:[%s12258_s7 + $0xa0] sm:$0xff]  }
 0x509   : > { %v6057_v40 = vrot.slane %v12583_v9, 3  ;;  %v11720_v3 = vor.u32 %v5826_v33, %v5823_v35  ;;  %v12590_v33 = vshrl.u32 %v11208_v46, 16  ;;  %v12593_v60 = vshll.u32 %v11224_v2, 16 }
 0x50a   : > { %v5814_v56 = vrot.slane %v12585_v58, 3  ;;  %v5800_v9 = vor.u32 %v5799_v7, %v5796_v27  ;;  %v12400_v7 = vshll.u32 %v11716_v37, 16 }
 0x50b   : > { %v11705_v51 = vor.u32 %v6060_v49, %v6057_v40  ;;  %8904 = vmatpush3.bf16.msra.mxu0 %v9551_v8  ;;  %v6551_v35 = vrot.slane %v12590_v33, 4  ;;  %v12592_v49 = vshrl.u32 %v11224_v2, 16  ;;  %v6556_v59 = vrot.slane %v12593_v60, 5 }
 0x50c   : > { %8905 = vmatprep.subr.bf16.mxu0 %v9552_v10  ;;  %v5818_v57 = vor.u32 %v5817_v6, %v5814_v56  ;;  %v5801_v8 = vsel %vm1676_vm1, %v5791_v14, %v5800_v9  ;;  %v5810_v47 = vsel %vm1676_vm1, %v5800_v9, %v5809_v43  ;;  %v12591_v6 = vshll.u32 %v11208_v46, 16 }
 0x50d   : > { %v11712_v1 = vsel %vm1676_vm1, %v6052_v23, %v11705_v51  ;;  %v11724_v23 = vld [vmem:[#allocation3 + $0x58] sm:$0xff]  ;;  %v6555_v58 = vrot.slane %v12592_v49, 4  ;;  %v11753_v46 = vrot.slane %v12400_v7, 4 }
 0x50e   : > { %8834 = vmatmul.mubr.bf16.gmra.mrb[112].mxu0 %v5783_v45  ;;  %12589 = vst [vmem:[#allocation19_spill] sm:$0xff] %v11724_v23  ;;  %v12401_v27 = vshrl.u32 %v11724_v23, 16  ;;  %v12402_v56 = vshll.u32 %v11724_v23, 16  ;;  %v6552_v14 = vrot.slane %v12591_v6, 5  ;;  %v11737_v40 = vsel %vm1676_vm1, %v5809_v43, %v5818_v57 }
 0x50f   : > { %8837 = vmatprep.mubr.bf16.mxu0 %v5792_v5  ;;  %8906 = vmatpush3.bf16.msra.mxu0 %v9552_v10  ;;  %v11741_v10 = vrot.slane %v12403_v18, 3  ;;  %v11749_v9 = vsel %vm1676_vm1, %v5818_v57, %v11720_v3  ;;  %v12594_v43 = vshrl.u32 %v11227_v20, 16  ;;  %v12595_v5 = vshll.u32 %v11227_v20, 16  ;;  %v9555_v20 = vld [vmem:[%s12258_s7 + $0xa8] sm:$0xff]  }
 0x510   : > { %8907 = vmatprep.subr.bf16.mxu0 %v9553_v38  ;;  %v11761_v6 = vrot.slane %v12401_v27, 3  ;;  %v11763_v2 = vor.u32 %v6552_v14, %v6551_v35  ;;  %v6557_v49 = vor.u32 %v6556_v59, %v6555_v58  ;;  %v12597_v57 = vshrl.u32 %v11251_v63, 16 }
 0x511   : > { %v6559_v45 = vrot.slane %v12594_v43, 4  ;;  %v6560_v33 = vrot.slane %v12595_v5, 5  ;;  %v11769_v7 = vrot.slane %v12402_v56, 4  ;;  %v12598_v5 = vshll.u32 %v11251_v63, 16 }
 0x512   : > { %12596 = vst [vmem:[#allocation20_spill] sm:$0xff] %v11763_v2  ;;  %v6563_v60 = vrot.slane %v12597_v57, 4  ;;  %v11780_v14 = vsel %vm3518_vm3, %v11763_v2, %v6557_v49  ;;  %v12601_v58 = vshll.u32 %v11241_v12, 16  ;;  %v12602_v57 = vshrl.u32 %v11255_v50, 16 }
 0x513   : > { %8908 = vmatpush3.bf16.msra.mxu0 %v9553_v38  ;;  %v6561_v43 = vor.u32 %v6560_v33, %v6559_v45  ;;  %v6564_v27 = vrot.slane %v12598_v5, 5  ;;  %v12599_v38 = vshrl.u32 %v11241_v12, 16  ;;  %12600 = vst [vmem:[#allocation21_spill] sm:$0xff] %v11780_v14  ;;  %v12603_v18 = vshll.u32 %v11255_v50, 16 }
 0x514   : > { %8909 = vmatprep.subr.bf16.mxu0 %v9554_v34  ;;  %v6568_v59 = vrot.slane %v12601_v58, 5  ;;  %v6571_v56 = vrot.slane %v12602_v57, 4  ;;  %v12604_v33 = vshrl.u32 %v11258_v36, 16  ;;  %v12606_v57 = vshrl.u32 %v11282_v21, 16 }
 0x515   : > { %v6567_v35 = vrot.slane %v12599_v38, 4  ;;  %v6572_v23 = vrot.slane %v12603_v18, 5  ;;  %v11789_v63 = vsel %vm3518_vm3, %v6557_v49, %v6561_v43  ;;  %v6565_v45 = vor.u32 %v6564_v27, %v6563_v60 }
 0x516   : > { %8838 = vmatmul.mubr.bf16.gmra.mrb[116].mxu0 %v5801_v8  ;;  %v6575_v5 = vrot.slane %v12604_v33, 4  ;;  %v12605_v38 = vshll.u32 %v11258_v36, 16  ;;  %v6579_v2 = vrot.slane %v12606_v57, 4  ;;  %v12607_v50 = vshll.u32 %v11282_v21, 16  ;;  %v9556_v8 = vld [vmem:[%s12258_s7 + $0xb0] sm:$0xff]  }
 0x517   : > { %8841 = vmatprep.mubr.bf16.mxu0 %v5810_v47  ;;  %8910 = vmatpush3.bf16.msra.mxu0 %v9554_v34  ;;  %v6569_v12 = vor.u32 %v6568_v59, %v6567_v35  ;;  %v6573_v58 = vor.u32 %v6572_v23, %v6571_v56  ;;  %v11803_v27 = vsel %vm3518_vm3, %v6561_v43, %v6565_v45  ;;  %v12608_v47 = vshrl.u32 %v11278_v31, 16 }
 0x518   : > { %v6576_v14 = vrot.slane %v12605_v38, 5  ;;  %v6580_v18 = vrot.slane %v12607_v50, 5  ;;  %8911 = vmatprep.subr.bf16.mxu0 %v9555_v20  ;;  %v12609_v23 = vshll.u32 %v11278_v31, 16  ;;  %v12610_v35 = vshrl.u32 %v11293_v54, 16 }
 0x519   : > { %v6583_v34 = vrot.slane %v12608_v47, 4  ;;  %v11810_v49 = vsel %vm3518_vm3, %v6565_v45, %v6569_v12  ;;  %v11813_v21 = vsel %vm3518_vm3, %v6569_v12, %v6573_v58  ;;  %v12611_v33 = vshll.u32 %v11293_v54, 16  ;;  %v9557_v54 = vld [vmem:[%s12258_s7 + $0xb8] sm:$0xff]  }
 0x51a   : > { %v6577_v36 = vor.u32 %v6576_v14, %v6575_v5  ;;  %v6584_v56 = vrot.slane %v12609_v23, 5  ;;  %v6581_v60 = vor.u32 %v6580_v18, %v6579_v2  ;;  %v6587_v59 = vrot.slane %v12610_v35, 4 }
 0x51b   : > { %v6588_v5 = vrot.slane %v12611_v33, 5  ;;  %v12612_v31 = vshrl.u32 %v11296_v15, 16  ;;  %8912 = vmatpush3.bf16.msra.mxu0 %v9555_v20  ;;  %v12613_v12 = vshll.u32 %v11296_v15, 16  ;;  %v12614_v57 = vshrl.u32 %v11329_v11, 16 }
 0x51c   : > { %v11818_v43 = vsel %vm3518_vm3, %v6573_v58, %v6577_v36  ;;  %v6585_v14 = vor.u32 %v6584_v56, %v6583_v34  ;;  %v11825_v45 = vsel %vm3518_vm3, %v6577_v36, %v6581_v60  ;;  %v12615_v58 = vshll.u32 %v11329_v11, 16  ;;  %8913 = vmatprep.subr.bf16.mxu0 %v9556_v8  ;;  %v11843_v56 = vld [vmem:[#allocation3 + $0x60] sm:$0xff] }
 0x51d   : > { %v6591_v38 = vrot.slane %v12612_v31, 4  ;;  %v6592_v2 = vrot.slane %v12613_v12, 5  ;;  %v6595_v50 = vrot.slane %v12614_v57, 4  ;;  %v6589_v20 = vor.u32 %v6588_v5, %v6587_v59 }
 0x51e   : > { %v6596_v18 = vrot.slane %v12615_v58, 5  ;;  %v11837_v47 = vsel %vm3518_vm3, %v6581_v60, %v6585_v14  ;;  %v12616_v36 = vshrl.u32 %v11371_v13, 16  ;;  %v12617_v15 = vshll.u32 %v11371_v13, 16  ;;  %8842 = vmatmul.mubr.bf16.gmra.mrb[120].mxu0 %v11737_v40 }
 0x51f   : > { %v5848_v11 = vshrl.u32 %v11843_v56, 16  ;;  %v5851_v35 = vshll.u32 %v11843_v56, 16  ;;  %v6593_v33 = vor.u32 %v6592_v2, %v6591_v38  ;;  %v11849_v60 = vsel %vm3518_vm3, %v6585_v14, %v6589_v20  ;;  %8845 = vmatprep.mubr.bf16.mxu0 %v11749_v9  ;;  %8914 = vmatpush3.bf16.msra.mxu0 %v9556_v8 }
 0x520   : > { %v6599_v34 = vrot.slane %v12616_v36, 4  ;;  %v6600_v23 = vrot.slane %v12617_v15, 5  ;;  %v6597_v31 = vor.u32 %v6596_v18, %v6595_v50  ;;  %v12618_v5 = vshrl.u32 %v11381_v52, 16  ;;  %v11866_v18 = vld [vmem:[#allocation3 + $0x68] sm:$0xff]  ;;  %8915 = vmatprep.subr.bf16.mxu0 %v9557_v54 }
 0x521   : > { %v12619_v13 = vshll.u32 %v11381_v52, 16  ;;  %v11857_v58 = vsel %vm3518_vm3, %v6589_v20, %v6593_v33  ;;  %v12620_v40 = vshrl.u32 %v11384_v19, 16  ;;  %v12621_v2 = vshll.u32 %v11384_v19, 16 }
 0x522   : > { %v6601_v59 = vor.u32 %v6600_v23, %v6599_v34  ;;  %v6603_v12 = vrot.slane %v12618_v5, 4  ;;  %v11860_v38 = vsel %vm3518_vm3, %v6593_v33, %v6597_v31  ;;  %v5857_v52 = vshrl.u32 %v11866_v18, 16 }
 0x523   : > { %v6604_v57 = vrot.slane %v12619_v13, 5  ;;  %v6607_v14 = vrot.slane %v12620_v40, 4  ;;  %v6608_v50 = vrot.slane %v12621_v2, 5  ;;  %v12409_v36 = vshll.u32 %v11866_v18, 16  ;;  %8916 = vmatpush3.bf16.msra.mxu0 %v9557_v54 }
 0x524   : > { %v11871_v9 = vsel %vm3518_vm3, %v6597_v31, %v6601_v59  ;;  %v5836_v20 = vor.u32 %v11753_v46, %v11741_v10  ;;  %v5845_v15 = vor.u32 %v11769_v7, %v11761_v6  ;;  %v5850_v33 = vrot.slane %v5848_v11, 3 }
 0x525   : > { %v6605_v8 = vor.u32 %v6604_v57, %v6603_v12  ;;  %v6609_v34 = vor.u32 %v6608_v50, %v6607_v14  ;;  %v5853_v31 = vrot.slane %v5851_v35, 4  ;;  %v5859_v10 = vrot.slane %v5857_v52, 3  ;;  %v11898_v14 = vld [vmem:[#allocation3 + $0x70] sm:$0xff] }
 0x526   : > { %v5862_v46 = vrot.slane %v12409_v36, 4  ;;  %v5837_v7 = vsel %vm1676_vm1, %v11720_v3, %v5836_v20  ;;  %v5846_v6 = vsel %vm1676_vm1, %v5836_v20, %v5845_v15  ;;  %v12622_v54 = vshrl.u32 %v11414_v55, 16 }
 0x527   : > { %v11878_v19 = vsel %vm3518_vm3, %v6601_v59, %v6605_v8  ;;  %v11881_v23 = vsel %vm3518_vm3, %v6605_v8, %v6609_v34  ;;  %8846 = vmatmul.mubr.bf16.gmra.mrb[124].mxu0 %v5837_v7  ;;  %v12623_v5 = vshll.u32 %v11414_v55, 16  ;;  %v5854_v13 = vor.u32 %v5853_v31, %v5850_v33 }
 0x528   : > { %v6611_v59 = vrot.slane %v12622_v54, 4  ;;  %8849 = vmatprep.mubr.bf16.mxu0 %v5846_v6  ;;  %v5863_v57 = vor.u32 %v5862_v46, %v5859_v10  ;;  %v12408_v2 = vshrl.u32 %v11898_v14, 16  ;;  %v12407_v50 = vshll.u32 %v11898_v14, 16 }
 0x529   : > { %v6612_v12 = vrot.slane %v12623_v5, 5  ;;  %v5855_v8 = vsel %vm1676_vm1, %v5845_v15, %v5854_v13  ;;  %v12624_v31 = vshrl.u32 %v11444_v24, 16  ;;  %v12625_v46 = vshll.u32 %v11444_v24, 16 }
 0x52a   : > { %v5864_v20 = vsel %vm1676_vm1, %v5854_v13, %v5863_v57  ;;  %v5868_v55 = vrot.slane %v12408_v2, 3  ;;  %v5871_v33 = vrot.slane %v12407_v50, 4  ;;  %v12627_v15 = vshll.u32 %v11449_v62, 16 }
 0x52b   : > { %v6613_v40 = vor.u32 %v6612_v12, %v6611_v59  ;;  %v6615_v10 = vrot.slane %v12624_v31, 4  ;;  %v6616_v7 = vrot.slane %v12625_v46, 5  ;;  %v12628_v59 = vshrl.u32 %v11452_v25, 16 }
 0x52c   : > { %v6620_v54 = vrot.slane %v12627_v15, 5  ;;  %v12629_v12 = vshll.u32 %v11452_v25, 16  ;;  %v5872_v36 = vor.u32 %v5871_v33, %v5868_v55  ;;  %v12631_v55 = vshll.u32 %v11488_v26, 16 }
 0x52d   : > { %v11903_v3 = vsel %vm3518_vm3, %v6609_v34, %v6613_v40  ;;  %v12626_v34 = vshrl.u32 %v11449_v62, 16  ;;  %v6623_v5 = vrot.slane %v12628_v59, 4  ;;  %v6617_v50 = vor.u32 %v6616_v7, %v6615_v10  ;;  %v12642_v59 = vld [vmem:[#allocation6_spill] sm:$0xff] }
 0x52e   : > { %v6624_v13 = vrot.slane %v12629_v12, 5  ;;  %v5873_v46 = vsel %vm1676_vm1, %v5863_v57, %v5872_v36  ;;  %v5882_v25 = vsel %vm1676_vm1, %v5872_v36, %v11396_v22  ;;  %v6628_v33 = vrot.slane %v12631_v55, 5  ;;  %v12641_v36 = vld [vmem:[#allocation18_spill] sm:$0xff]  ;;  %v12645_v55 = vld [vmem:[#allocation8_spill] sm:$0xff] }
 0x52f   : > { %8850 = vmatmul.mubr.bf16.gmra.mrb[128].mxu0 %v5855_v8  ;;  %v6619_v6 = vrot.slane %v12626_v34, 4  ;;  %v11924_v24 = vsel %vm3518_vm3, %v6613_v40, %v6617_v50  ;;  %v12632_v40 = vshrl.u32 %v11491_v17, 16  ;;  %v12674_v56 = vshll.u32 %v11898_v14, 16 }
 0x530   : > { %8853 = vmatprep.mubr.bf16.mxu0 %v5864_v20  ;;  %v6625_v31 = vor.u32 %v6624_v13, %v6623_v5  ;;  %v12630_v20 = vshrl.u32 %v11488_v26, 16  ;;  %v12638_v26 = vld [vmem:[#allocation14_spill] sm:$0xff]  ;;  %v12643_v5 = vshrl.u32 %v12642_v59, 16  ;;  %v12644_v13 = vshll.u32 %v12642_v59, 16 }
 0x531   : > { %v6621_v2 = vor.u32 %v6620_v54, %v6619_v6  ;;  %v6631_v7 = vrot.slane %v12632_v40, 4 }
 0x532   : > { %v6627_v10 = vrot.slane %v12630_v20, 4  ;;  %v6495_v12 = vrot.slane %v12643_v5, 4 }
 0x533   : > { %v11927_v8 = vsel %vm3518_vm3, %v6617_v50, %v6621_v2  ;;  %v11930_v62 = vsel %vm3518_vm3, %v6621_v2, %v6625_v31  ;;  %v12633_v50 = vshll.u32 %v11491_v17, 16  ;;  %v12639_v17 = vld [vmem:[#allocation17_spill] sm:$0xff] }
 0x534   : > { %v6629_v2 = vor.u32 %v6628_v33, %v6627_v10  ;;  %v12646_v33 = vshrl.u32 %v12645_v55, 16 }
 0x535   : > { %v6632_v34 = vrot.slane %v12633_v50, 5 }
 0x536   : > { %v11946_v57 = vsel %vm3518_vm3, %v6625_v31, %v6629_v2  ;;  %v6496_v31 = vrot.slane %v12644_v13, 5  ;;  %v6499_v40 = vrot.slane %v12646_v33, 4 }
 0x537   : > { %8854 = vmatmul.mubr.bf16.gmra.mrb[132].mxu0 %v5873_v46  ;;  %v11943_v6 = vor.u32 %v6632_v34, %v6631_v7  ;;  %v12647_v7 = vshll.u32 %v12645_v55, 16  ;;  %v12648_v34 = vld [vmem:[#allocation7_spill] sm:$0xff] }
 0x538   : > { %8857 = vmatprep.mubr.bf16.mxu0 %v5882_v25  ;;  %v6497_v20 = vor.u32 %v6496_v31, %v6495_v12  ;;  %v12657_v12 = vld [vmem:[#allocation15_spill] sm:$0xff] }
 0x539   : > { %v11950_v22 = vsel %vm3518_vm3, %v6629_v2, %v11943_v6  ;;  %v6500_v50 = vrot.slane %v12647_v7, 5  ;;  %v12649_v2 = vshrl.u32 %v12648_v34, 16  ;;  %v12658_v13 = vshrl.u32 %v12657_v12, 16 }
 0x53b   : > { %v6515_v31 = vrot.slane %v12658_v13, 4 }
 0x53f   : > { %8858 = vmatmul.mubr.bf16.gmra.mrb[136].mxu0 %v11429_v61  ;;  %v12634_v61 = vld [vmem:[#allocation5_spill] sm:$0xff] }
 0x540   : > { %8861 = vmatprep.mubr.bf16.mxu0 %v11441_v41  ;;  %v12635_v41 = vld [vmem:[#allocation9_spill] sm:$0xff] }
 0x547   : > { %8862 = vmatmul.mubr.bf16.gmra.mrb[140].mxu0 %v11459_v0  ;;  %v12636_v0 = vld [vmem:[#allocation11_spill] sm:$0xff] }
 0x548   : > { %8865 = vmatprep.mubr.bf16.mxu0 %v11494_v28  ;;  %v12640_v28 = vld [vmem:[#allocation46_spill] sm:$0xff] }
 0x54f   : > { %8866 = vmatmul.mubr.bf16.gmra.mrb[144].mxu0 %v11501_v32  ;;  %v12637_v32 = vld [vmem:[#allocation12_spill] sm:$0xff] }
 0x550   : > { %8869 = vmatprep.mubr.bf16.mxu0 %v11513_v29  ;;  %v6064_v29 = vshrl.u32 %v12640_v28, 16 }
 0x557   : > { %8870 = vmatmul.mubr.bf16.gmra.mrb[148].mxu0 %v11525_v48  ;;  %v9620_v48 = vld [vmem:[#allocation3] sm:$0xf0] }
 0x558   : > { %8873 = vmatprep.mubr.bf16.mxu0 %v11539_v39  ;;  %v6488_v39 = vshrl.u32 %v9620_v48, 16 }
 0x55a   : > { %v6490_v15 = vrot.slane %v6488_v39, 4 }
 0x55f   : > { %8874 = vmatmul.mubr.bf16.gmra.mrb[152].mxu0 %v11547_v42  ;;  %v6067_v42 = vshll.u32 %v12640_v28, 16 }
 0x560   : > { %8877 = vmatprep.mubr.bf16.mxu0 %v11554_v4  ;;  %v6491_v4 = vshll.u32 %v9620_v48, 16 }
 0x562   : > { %v6493_v54 = vrot.slane %v6491_v4, 5  ;;  %v12654_v4 = vld [vmem:[#allocation13_spill] sm:$0xff] }
 0x564   : > { %v6494_v25 = vor.u32 %v6493_v54, %v6490_v15 }
 0x567   : > { %8878 = vmatmul.mubr.bf16.gmra.mrb[156].mxu0 %v11557_v30  ;;  %v6069_v30 = vrot.slane %v6067_v42, 4 }
 0x568   : > { %8881 = vmatprep.mubr.bf16.mxu0 %v11572_v44  ;;  %v6066_v44 = vrot.slane %v6064_v29, 3 }
 0x56a   : > { %v6070_v46 = vor.u32 %v6069_v30, %v6066_v44  ;;  %v12655_v44 = vshrl.u32 %v12654_v4, 16 }
 0x56c   : > { %v6071_v10 = vsel %vm1676_vm1, %v11705_v51, %v6070_v46  ;;  %v6511_v30 = vrot.slane %v12655_v44, 4  ;;  %v12659_v46 = vshll.u32 %v12657_v12, 16 }
 0x56f   : > { %8882 = vmatmul.mubr.bf16.gmra.mrb[160].mxu0 %v12634_v61  ;;  %v6503_v61 = vrot.slane %v12649_v2, 4  ;;  %v12663_v2 = vshrl.u32 %v11666_v16, 16 }
 0x570   : > { %8885 = vmatprep.mubr.bf16.mxu0 %v12635_v41  ;;  %v12650_v41 = vshll.u32 %v12648_v34, 16 }
 0x577   : > { %8886 = vmatmul.mubr.bf16.gmra.mrb[164].mxu0 %v12636_v0  ;;  %v6504_v0 = vrot.slane %v12650_v41, 5  ;;  %v12664_v41 = vshll.u32 %v11666_v16, 16  ;;  %v12668_v16 = vshll.u32 %v11716_v37, 16 }
 0x578   : > { %8889 = vmatprep.mubr.bf16.mxu0 %v12637_v32  ;;  %v6501_v32 = vor.u32 %v6500_v50, %v6499_v40 }
 0x579   : > { %v6532_v44 = vrot.slane %v12668_v16, 5 }
 0x57a   : > { %v6502_v51 = vsel %vm3518_vm3, %v6497_v20, %v6501_v32 }
 0x57f   : > { %8890 = vmatmul.mubr.bf16.gmra.mrb[168].mxu0 %v12638_v26  ;;  %v6505_v26 = vor.u32 %v6504_v0, %v6503_v61  ;;  %v6523_v61 = vrot.slane %v12663_v2, 4  ;;  %v6524_v0 = vrot.slane %v12664_v41, 5  ;;  %v12676_v2 = vld [vmem:[#allocation21_spill] sm:$0xff] }
 0x580   : > { %8893 = vmatprep.mubr.bf16.mxu0 %v12639_v17  ;;  %v12651_v17 = vld [vmem:[#allocation10_spill] sm:$0xff] }
 0x581   : > { %v12652_v28 = vshrl.u32 %v12651_v17, 16  ;;  %v12653_v42 = vshll.u32 %v12651_v17, 16  ;;  %v6506_v39 = vsel %vm3518_vm3, %v6501_v32, %v6505_v26  ;;  %v12666_v17 = vshll.u32 %v11673_v53, 16 }
 0x583   : > { %v6507_v29 = vrot.slane %v12652_v28, 4  ;;  %v6508_v48 = vrot.slane %v12653_v42, 5  ;;  %v6528_v28 = vrot.slane %v12666_v17, 5 }
 0x585   : > { %v6509_v54 = vor.u32 %v6508_v48, %v6507_v29  ;;  %v6525_v29 = vor.u32 %v6524_v0, %v6523_v61 }
 0x587   : > { %8894 = vmatmul.mubr.bf16.gmra.mrb[172].mxu0 %v12641_v36  ;;  %v12656_v36 = vshll.u32 %v12654_v4, 16  ;;  %v6510_v5 = vsel %vm3518_vm3, %v6505_v26, %v6509_v54  ;;  %v12665_v26 = vshrl.u32 %v11673_v53, 16 }
 0x588   : > { %8897 = vmatprep.mubr.bf16.mxu0 %v11712_v1  ;;  %v6498_v1 = vsel %vm3518_vm3, %v6494_v25, %v6497_v20  ;;  %v6516_v25 = vrot.slane %v12659_v46, 5 }
 0x589   : > { %v6512_v15 = vrot.slane %v12656_v36, 5  ;;  %v12669_v36 = vld [vmem:[#allocation19_spill] sm:$0xff] }
 0x58a   : > { %v6517_v50 = vor.u32 %v6516_v25, %v6515_v31  ;;  %v12671_v53 = vshll.u32 %v12669_v36, 16  ;;  %v6539_v31 = vrot.slane %v5848_v11, 4  ;;  %v6543_v25 = vrot.slane %v5857_v52, 4 }
 0x58b   : > { %v6513_v59 = vor.u32 %v6512_v15, %v6511_v30  ;;  %v12670_v15 = vshrl.u32 %v12669_v36, 16 }
 0x58d   : > { %v6514_v20 = vsel %vm3518_vm3, %v6509_v54, %v6513_v59  ;;  %v6518_v34 = vsel %vm3518_vm3, %v6513_v59, %v6517_v50  ;;  %v6535_v54 = vrot.slane %v12670_v15, 4  ;;  %v6536_v59 = vrot.slane %v12671_v53, 5 }
 0x58f   : > { %8898 = vmatmul.mubr.bf16.gmra.mrb[176].mxu0 %v6071_v10  ;;  %v12660_v10 = vld [vmem:[#allocation16_spill] sm:$0xff]  ;;  %v6537_v12 = vor.u32 %v6536_v59, %v6535_v54 }
 0x590   : > { %8917 = vmatprep.mubr.bf16.mxu0 %v6498_v1  ;;  %v12661_v55 = vshrl.u32 %v12660_v10, 16  ;;  %v12662_v40 = vshll.u32 %v12660_v10, 16 }
 0x592   : > { %v6519_v33 = vrot.slane %v12661_v55, 4  ;;  %v6520_v7 = vrot.slane %v12662_v40, 5 }
 0x594   : > { %v6521_v1 = vor.u32 %v6520_v7, %v6519_v33  ;;  %v12673_v7 = vshrl.u32 %v11898_v14, 16 }
 0x596   : > { %v6522_v32 = vsel %vm3518_vm3, %v6517_v50, %v6521_v1  ;;  %v6526_v48 = vsel %vm3518_vm3, %v6521_v1, %v6525_v29  ;;  %v6547_v11 = vrot.slane %v12673_v7, 4 }
 0x597   : > { %8918 = vmatmul.mubr.bf16.vlgmr.msra.gmra.mrb[108].mxu0 %v6502_v51  ;;  %v6527_v51 = vrot.slane %v12665_v26, 4 }
 0x598   : > { %8921 = vmatprep.mubr.bf16.mxu0 %v6506_v39  ;;  %v12667_v39 = vshrl.u32 %v11716_v37, 16  ;;  %v6540_v37 = vrot.slane %v5851_v35, 5  ;;  %v6548_v35 = vrot.slane %v12674_v56, 5 }
 0x599   : > { %v6529_v42 = vor.u32 %v6528_v28, %v6527_v51 }
 0x59a   : > { %v6531_v4 = vrot.slane %v12667_v39, 4  ;;  %v6541_v55 = vor.u32 %v6540_v37, %v6539_v31  ;;  %v6549_v1 = vor.u32 %v6548_v35, %v6547_v11 }
 0x59b   : > { %v6530_v30 = vsel %vm3518_vm3, %v6525_v29, %v6529_v42 }
 0x59c   : > { %v6542_v40 = vsel %vm3518_vm3, %v6537_v12, %v6541_v55 }
 0x59f   : > { %8922 = vmatmul.mubr.bf16.gmra.mrb[112].mxu0 %v6510_v5  ;;  %v6533_v5 = vor.u32 %v6532_v44, %v6531_v4 }
 0x5a0   : > { %8925 = vmatprep.mubr.bf16.mxu0 %v6514_v20  ;;  %v12672_v20 = vshll.u32 %v11866_v18, 16  ;;  %v12675_v18 = vld [vmem:[#allocation20_spill] sm:$0xff] }
 0x5a1   : > { %v6534_v13 = vsel %vm3518_vm3, %v6529_v42, %v6533_v5  ;;  %v6538_v46 = vsel %vm3518_vm3, %v6533_v5, %v6537_v12 }
 0x5a2   : > { %v6544_v10 = vrot.slane %v12672_v20, 5 }
 0x5a4   : > { %v6545_v33 = vor.u32 %v6544_v10, %v6543_v25 }
 0x5a6   : > { %v6546_v50 = vsel %vm3518_vm3, %v6541_v55, %v6545_v33  ;;  %v6550_v52 = vsel %vm3518_vm3, %v6545_v33, %v6549_v1 }
 0x5a7   : > { %8926 = vmatmul.mubr.bf16.gmra.mrb[116].mxu0 %v6518_v34  ;;  %v6554_v34 = vsel %vm3518_vm3, %v6549_v1, %v12675_v18 }
 0x5a8   : > { %8929 = vmatprep.mubr.bf16.mxu0 %v6522_v32 }
 0x5af   : > { %8930 = vmatmul.mubr.bf16.gmra.mrb[120].mxu0 %v6526_v48 }
 0x5b0   : > { %8933 = vmatprep.mubr.bf16.mxu0 %v6530_v30 }
 0x5b7   : > { %8934 = vmatmul.mubr.bf16.gmra.mrb[124].mxu0 %v6534_v13 }
 0x5b8   : > { %8937 = vmatprep.mubr.bf16.mxu0 %v6538_v46 }
 0x5bf   : > { %8938 = vmatmul.mubr.bf16.gmra.mrb[128].mxu0 %v6542_v40 }
 0x5c0   : > { %8941 = vmatprep.mubr.bf16.mxu0 %v6546_v50 }
 0x5c7   : > { %8942 = vmatmul.mubr.bf16.gmra.mrb[132].mxu0 %v6550_v52 }
 0x5c8   : > { %8945 = vmatprep.mubr.bf16.mxu0 %v6554_v34 }
 0x5cf   : > { %8946 = vmatmul.mubr.bf16.gmra.mrb[136].mxu0 %v12676_v2 }
 0x5d0   : > { %8949 = vmatprep.mubr.bf16.mxu0 %v11789_v63  ;;  %v6469_v63 = vld [vmem:[#allocation3 + $0x120] sm:$0x1f] }
 0x5d7   : > { %8950 = vmatmul.mubr.bf16.gmra.mrb[140].mxu0 %v11803_v27  ;;  %v6636_v27 = vshrl.u32 %v6469_v63, 16 }
 0x5d8   : > { %8953 = vmatprep.mubr.bf16.mxu0 %v11810_v49  ;;  %v6639_v49 = vshll.u32 %v6469_v63, 16 }
 0x5df   : > { %8954 = vmatmul.mubr.bf16.gmra.mrb[144].mxu0 %v11813_v21  ;;  %v6638_v21 = vrot.slane %v6636_v27, 4 }
 0x5e0   : > { %8957 = vmatprep.mubr.bf16.mxu0 %v11818_v43  ;;  %v6641_v43 = vrot.slane %v6639_v49, 5 }
 0x5e7   : > { %8958 = vmatmul.mubr.bf16.gmra.mrb[148].mxu0 %v11825_v45  ;;  %v6642_v45 = vor.u32 %v6641_v43, %v6638_v21 }
 0x5e8   : > { %8961 = vmatprep.mubr.bf16.mxu0 %v11837_v47 }
 0x5e9   : > { %v6643_v47 = vsel %vm3518_vm3, %v11943_v6, %v6642_v45 }
 0x5ef   : > { %8962 = vmatmul.mubr.bf16.gmra.mrb[152].mxu0 %v11849_v60  ;;  %v12073_v60 = vld [vmem:[%s12259_s8] ss:$0 sm:$0xff] }
 0x5f0   : > { %8965 = vmatprep.mubr.bf16.mxu0 %v11857_v58 }
 0x5f7   : > { %8966 = vmatmul.mubr.bf16.gmra.mrb[156].mxu0 %v11860_v38  ;;  %v12078_v38 = vld [vmem:[%s12260_s9] ss:$0 sm:$0xff] }
 0x5f8   : > { %8969 = vmatprep.mubr.bf16.mxu0 %v11871_v9 }
 0x5ff   : > { %8970 = vmatmul.mubr.bf16.gmra.mrb[160].mxu0 %v11878_v19 }
 0x600   : > { %8973 = vmatprep.mubr.bf16.mxu0 %v11881_v23 }
 0x607   : > { %8974 = vmatmul.mubr.bf16.gmra.mrb[164].mxu0 %v11903_v3 }
 0x608   : > { %8977 = vmatprep.mubr.bf16.mxu0 %v11924_v24 }
 0x60f   : > { %8978 = vmatmul.mubr.bf16.gmra.mrb[168].mxu0 %v11927_v8 }
 0x610   : > { %8981 = vmatprep.mubr.bf16.mxu0 %v11930_v62 }
 0x617   : > { %8982 = vmatmul.mubr.bf16.gmra.mrb[172].mxu0 %v11946_v57 }
 0x618   : > { %8985 = vmatprep.mubr.bf16.mxu0 %v11950_v22 }
 0x61f   : > { %8986 = vmatmul.mubr.bf16.gmra.mrb[176].mxu0 %v6643_v47 }
 0x66a   : > { %v8919_v58 = vpop.f32.mrb[108].mxu0 }
 0x66b   : > { %v6762_v9 = vpop.f32.mrb[109].mxu0  ;;  %v7114_v19 = vmul.f32 %v8919_v58, %v12073_v60 }
 0x66c   : > { %v7112_v23 = vmul.f32 %v12073_v60, %v6762_v9  ;;  %v8920_v14 = vpop.f32.mrb[110].mxu0 }
 0x66d   : > { %v7115_v3 = vmul.f32 %v8920_v14, %v12073_v60  ;;  %v6765_v24 = vpop.f32.mrb[111].mxu0  ;;  %v7185_v6 = vadd.f32 %v12078_v38, %v7114_v19 }
 0x66e   : > { %v7183_v8 = vadd.f32 %v12078_v38, %v7112_v23  ;;  %v7113_v62 = vmul.f32 %v12073_v60, %v6765_v24 }
 0x66f   : > { %v7186_v22 = vadd.f32 %v12078_v38, %v7115_v3  ;;  %v7249_v26 = vmax.f32 %v7185_v6, 0.0 }
 0x670   : > { %v7184_v57 = vadd.f32 %v12078_v38, %v7113_v62  ;;  %v7247_v61 = vmax.f32 %v7183_v8, 0.0 }
 0x671   : > { %v7250_v42 = vmax.f32 %v7186_v22, 0.0 }
 0x672   : > { %v7248_v41 = vmax.f32 %v7184_v57, 0.0  ;;  %v8923_v0 = vpop.f32.mrb[112].mxu0 }
 0x673   : > { %v6778_v32 = vpop.f32.mrb[113].mxu0  ;;  %v7118_v17 = vmul.f32 %v8923_v0, %v12073_v60 }
 0x674   : > { %v7311_v51 = vadd.f32 %v7248_v41, %v7247_v61  ;;  %v7116_v28 = vmul.f32 %v12073_v60, %v6778_v32  ;;  %v8924_v29 = vpop.f32.mrb[114].mxu0 }
 0x675   : > { %v6781_v48 = vpop.f32.mrb[115].mxu0  ;;  %v7119_v16 = vmul.f32 %v8924_v29, %v12073_v60  ;;  %v7189_v30 = vadd.f32 %v12078_v38, %v7118_v17 }
 0x676   : > { %v7312_v39 = vadd.f32 %v7311_v51, %v7249_v26  ;;  %v7187_v4 = vadd.f32 %v12078_v38, %v7116_v28  ;;  %v7117_v44 = vmul.f32 %v12073_v60, %v6781_v48 }
 0x677   : > { %v7190_v59 = vadd.f32 %v12078_v38, %v7119_v16  ;;  %v7253_v37 = vmax.f32 %v7189_v30, 0.0 }
 0x678   : > { %v7251_v36 = vmax.f32 %v7187_v4, 0.0  ;;  %v7313_v15 = vadd.f32 %v7312_v39, %v7250_v42  ;;  %v7188_v54 = vadd.f32 %v12078_v38, %v7117_v44  ;;  %v7325_v39 = vld [vmem:[%s12261_s10] sm:$0x1] }
 0x679   : > { %v7254_v55 = vmax.f32 %v7190_v59, 0.0 }
 0x67a   : > { %v7314_v53 = vadd.f32 %v7313_v15, %v7251_v36  ;;  %v7252_v5 = vmax.f32 %v7188_v54, 0.0  ;;  %v8927_v12 = vpop.f32.mrb[116].mxu0 }
 0x67b   : > { %v7121_v13 = vmul.f32 %v8927_v12, %v12073_v60  ;;  %v6794_v31 = vpop.f32.mrb[117].mxu0 }
 0x67c   : > { %v7315_v46 = vadd.f32 %v7314_v53, %v7252_v5  ;;  %v8928_v25 = vpop.f32.mrb[118].mxu0 }
 0x67d   : > { %v7122_v20 = vmul.f32 %v8928_v25, %v12073_v60  ;;  %v6796_v10 = vpop.f32.mrb[119].mxu0  ;;  %v7192_v40 = vadd.f32 %v12078_v38, %v7121_v13 }
 0x67e   : > { %v7316_v33 = vadd.f32 %v7315_v46, %v7253_v37  ;;  %v7120_v7 = vmul.f32 %v12073_v60, %v6796_v10 }
 0x67f   : > { %v7193_v11 = vadd.f32 %v12078_v38, %v7122_v20  ;;  %v7256_v50 = vmax.f32 %v7192_v40, 0.0 }
 0x680   : > { %v7317_v56 = vadd.f32 %v7316_v33, %v7254_v55  ;;  %v7191_v35 = vadd.f32 %v12078_v38, %v7120_v7 }
 0x681   : > { %v7257_v34 = vmax.f32 %v7193_v11, 0.0 }
 0x682   : > { %v7255_v1 = vmax.f32 %v7191_v35, 0.0  ;;  %v8931_v52 = vpop.f32.mrb[120].mxu0  ;;  %v7318_v18 = vrot.slane %v7317_v56, 4 }
 0x683   : > { %v6809_v2 = vpop.f32.mrb[121].mxu0  ;;  %v7125_v27 = vmul.f32 %v8931_v52, %v12073_v60 }
 0x684   : > { %v7339_v63 = vadd.f32 %v7256_v50, %v7255_v1  ;;  %v7123_v49 = vmul.f32 %v12073_v60, %v6809_v2  ;;  %v8932_v21 = vpop.f32.mrb[122].mxu0  ;;  %v7319_v43 = vadd.f32 %v7318_v18, %v7317_v56 }
 0x685   : > { %v7126_v45 = vmul.f32 %v8932_v21, %v12073_v60  ;;  %v6812_v47 = vpop.f32.mrb[123].mxu0  ;;  %v7196_v14 = vadd.f32 %v12078_v38, %v7125_v27 }
 0x686   : > { %v7194_v58 = vadd.f32 %v12078_v38, %v7123_v49  ;;  %v7340_v9 = vadd.f32 %v7339_v63, %v7257_v34  ;;  %v7124_v19 = vmul.f32 %v12073_v60, %v6812_v47  ;;  %v7320_v23 = vrot.slane %v7319_v43, 2 }
 0x687   : > { %v7197_v6 = vadd.f32 %v12078_v38, %v7126_v45  ;;  %v7260_v32 = vmax.f32 %v7196_v14, 0.0 }
 0x688   : > { %v7258_v3 = vmax.f32 %v7194_v58, 0.0  ;;  %v7195_v24 = vadd.f32 %v12078_v38, %v7124_v19  ;;  %v7321_v8 = vadd.f32 %v7320_v23, %v7319_v43 }
 0x689   : > { %v7261_v4 = vmax.f32 %v7197_v6, 0.0 }
 0x68a   : > { %v7341_v62 = vadd.f32 %v7340_v9, %v7258_v3  ;;  %v7259_v57 = vmax.f32 %v7195_v24, 0.0  ;;  %v8935_v22 = vpop.f32.mrb[124].mxu0  ;;  %v7322_v61 = vrot.slane %v7321_v8, 1 }
 0x68b   : > { %v7128_v41 = vmul.f32 %v8935_v22, %v12073_v60  ;;  %v6825_v0 = vpop.f32.mrb[125].mxu0 }
 0x68c   : > { %v7342_v26 = vadd.f32 %v7341_v62, %v7259_v57  ;;  %v7127_v51 = vmul.f32 %v12073_v60, %v6825_v0  ;;  %v8936_v17 = vpop.f32.mrb[126].mxu0  ;;  %v7323_v28 = vadd.f32 %v7322_v61, %v7321_v8  ;;  %v7353_v62 = vld [vmem:[%s12261_s10] sm:$0x1] }
 0x68d   : > { %v7199_v29 = vadd.f32 %v12078_v38, %v7128_v41  ;;  %v7129_v42 = vmul.f32 %v8936_v17, %v12073_v60  ;;  %v6828_v48 = vpop.f32.mrb[127].mxu0 }
 0x68e   : > { %v7343_v16 = vadd.f32 %v7342_v26, %v7260_v32  ;;  %v7198_v44 = vadd.f32 %v12078_v38, %v7127_v51  ;;  %v7324_v30 = vmul.f32 0.015625, %v7323_v28  ;;  %v9630_v51 = vmov 0  }
 0x68f   : > { %v7200_v36 = vadd.f32 %v12078_v38, %v7129_v42  ;;  %v7263_v59 = vmax.f32 %v7199_v29, 0.0  ;;  %9448 = vset.pattern.permute.xlu0 %v9630_v51  ;;  %9449 = vset.pattern.permute.xlu1 %v9630_v51 }
 0x690   : > { %v7262_v15 = vmax.f32 %v7198_v44, 0.0  ;;  %v7344_v54 = vadd.f32 %v7343_v16, %v7261_v4  ;;  %v7326_v53 = vmul.f32 %v7325_v39, %v7324_v30 }
 0x691   : > { %v7264_v5 = vmax.f32 %v7200_v36, 0.0 }
 0x692   : > { %v7345_v12 = vadd.f32 %v7344_v54, %v7262_v15  ;;  %v8939_v13 = vpop.f32.mrb[128].mxu0  ;;  %v7328_v31 = vsel %vm7327_vm5, %v7326_v53, 0.0 }
 0x693   : > { %v7366_v37 = vadd.f32 %v7264_v5, %v7263_v59  ;;  %7329 = vadd.xlane.f32.xlu0 %v7328_v31  ;;  %v6840_v46 = vpop.f32.mrb[129].mxu0  ;;  %v7132_v20 = vmul.f32 %v8939_v13, %v12073_v60 }
 0x694   : > { %v7346_v25 = vrot.slane %v7345_v12, 4  ;;  %v7130_v10 = vmul.f32 %v12073_v60, %v6840_v46  ;;  %v8940_v55 = vpop.f32.mrb[130].mxu0 }
 0x695   : > { %v7133_v33 = vmul.f32 %v8940_v55, %v12073_v60  ;;  %v6843_v40 = vpop.f32.mrb[131].mxu0  ;;  %v7203_v35 = vadd.f32 %v12078_v38, %v7132_v20 }
 0x696   : > { %v7347_v7 = vadd.f32 %v7346_v25, %v7345_v12  ;;  %v7201_v11 = vadd.f32 %v12078_v38, %v7130_v10  ;;  %v7131_v56 = vmul.f32 %v12073_v60, %v6843_v40 }
 0x697   : > { %v7204_v18 = vadd.f32 %v12078_v38, %v7133_v33  ;;  %v7267_v21 = vmax.f32 %v7203_v35, 0.0 }
 0x698   : > { %v7265_v50 = vmax.f32 %v7201_v11, 0.0  ;;  %v7202_v1 = vadd.f32 %v12078_v38, %v7131_v56  ;;  %v7348_v52 = vrot.slane %v7347_v7, 2 }
 0x699   : > { %v7268_v9 = vmax.f32 %v7204_v18, 0.0 }
 0x69a   : > { %v7367_v34 = vadd.f32 %v7366_v37, %v7265_v50  ;;  %v7266_v2 = vmax.f32 %v7202_v1, 0.0  ;;  %v8943_v63 = vpop.f32.mrb[132].mxu0  ;;  %v7349_v27 = vadd.f32 %v7348_v52, %v7347_v7 }
 0x69b   : > { %v6856_v49 = vpop.f32.mrb[133].mxu0 }
 0x69c   : > { %v7368_v43 = vadd.f32 %v7367_v34, %v7266_v2  ;;  %v7134_v45 = vmul.f32 %v12073_v60, %v6856_v49  ;;  %v8944_v47 = vpop.f32.mrb[134].mxu0  ;;  %v7350_v58 = vrot.slane %v7349_v27, 1 }
 0x69d   : > { %v6859_v19 = vpop.f32.mrb[135].mxu0  ;;  %v7136_v8 = vmul.f32 %v8944_v47, %v12073_v60 }
 0x69e   : > { %v7369_v23 = vadd.f32 %v7368_v43, %v7267_v21  ;;  %v7205_v14 = vadd.f32 %v12078_v38, %v7134_v45  ;;  %v7135_v3 = vmul.f32 %v12073_v60, %v6859_v19  ;;  %v7351_v24 = vadd.f32 %v7350_v58, %v7349_v27  ;;  %v7380_v21 = vld [vmem:[%s12261_s10] sm:$0x1] }
 0x69f   : > { %v7207_v17 = vadd.f32 %v12078_v38, %v7136_v8 }
 0x6a0   : > { %v7269_v6 = vmax.f32 %v7205_v14, 0.0  ;;  %v7370_v57 = vadd.f32 %v7369_v23, %v7268_v9  ;;  %v7206_v22 = vadd.f32 %v12078_v38, %v7135_v3  ;;  %v7352_v61 = vmul.f32 0.015625, %v7351_v24 }
 0x6a1   : > { %v7271_v54 = vmax.f32 %v7207_v17, 0.0 }
 0x6a2   : > { %v7371_v41 = vadd.f32 %v7370_v57, %v7269_v6  ;;  %v7270_v0 = vmax.f32 %v7206_v22, 0.0  ;;  %v8947_v32 = vpop.f32.mrb[136].mxu0  ;;  %v7354_v26 = vmul.f32 %v7353_v62, %v7352_v61 }
 0x6a3   : > { %v6871_v28 = vpop.f32.mrb[137].mxu0  ;;  %v7139_v42 = vmul.f32 %v8947_v32, %v12073_v60 }
 0x6a4   : > { %v7372_v29 = vadd.f32 %v7371_v41, %v7270_v0  ;;  %v7137_v48 = vmul.f32 %v12073_v60, %v6871_v28  ;;  %v8948_v39 = vpop.f32.mrb[138].mxu0  ;;  %v7355_v4 = vsel %vm7327_vm5, %v7354_v26, 0.0 }
 0x6a5   : > { %v7140_v16 = vmul.f32 %v8948_v39, %v12073_v60  ;;  %7356 = vadd.xlane.f32.xlu1 %v7355_v4  ;;  %v6874_v44 = vpop.f32.mrb[139].mxu0  ;;  %v7210_v59 = vadd.f32 %v12078_v38, %v7139_v42 }
 0x6a6   : > { %v7373_v30 = vrot.slane %v7372_v29, 4  ;;  %v7208_v36 = vadd.f32 %v12078_v38, %v7137_v48  ;;  %v7138_v15 = vmul.f32 %v12073_v60, %v6874_v44 }
 0x6a7   : > { %v7211_v13 = vadd.f32 %v12078_v38, %v7140_v16  ;;  %v7274_v55 = vmax.f32 %v7210_v59, 0.0 }
 0x6a8   : > { %v7374_v53 = vadd.f32 %v7373_v30, %v7372_v29  ;;  %v7272_v5 = vmax.f32 %v7208_v36, 0.0  ;;  %v7209_v12 = vadd.f32 %v12078_v38, %v7138_v15 }
 0x6a9   : > { %v7275_v56 = vmax.f32 %v7211_v13, 0.0 }
 0x6aa   : > { %v7393_v31 = vadd.f32 %v7272_v5, %v7271_v54  ;;  %v7273_v37 = vmax.f32 %v7209_v12, 0.0  ;;  %v8951_v46 = vpop.f32.mrb[140].mxu0  ;;  %v7375_v25 = vrot.slane %v7374_v53, 2 }
 0x6ab   : > { %v7143_v20 = vmul.f32 %v8951_v46, %v12073_v60  ;;  %v6887_v10 = vpop.f32.mrb[141].mxu0 }
 0x6ac   : > { %v7394_v33 = vadd.f32 %v7393_v31, %v7273_v37  ;;  %v7141_v40 = vmul.f32 %v12073_v60, %v6887_v10  ;;  %v8952_v7 = vpop.f32.mrb[142].mxu0  ;;  %v7376_v11 = vadd.f32 %v7375_v25, %v7374_v53 }
 0x6ad   : > { %v6890_v35 = vpop.f32.mrb[143].mxu0  ;;  %v7214_v34 = vadd.f32 %v12078_v38, %v7143_v20 }
 0x6ae   : > { %v7395_v50 = vadd.f32 %v7394_v33, %v7274_v55  ;;  %v7212_v1 = vadd.f32 %v12078_v38, %v7141_v40  ;;  %v7142_v52 = vmul.f32 %v12073_v60, %v6890_v35  ;;  %v7377_v18 = vrot.slane %v7376_v11, 1  ;;  %v7407_v35 = vld [vmem:[%s12261_s10] sm:$0x1] }
 0x6af   : > { %v7278_v9 = vmax.f32 %v7214_v34, 0.0 }
 0x6b0   : > { %v7276_v2 = vmax.f32 %v7212_v1, 0.0  ;;  %v7396_v63 = vadd.f32 %v7395_v50, %v7275_v56  ;;  %v7213_v27 = vadd.f32 %v12078_v38, %v7142_v52  ;;  %v7378_v49 = vadd.f32 %v7377_v18, %v7376_v11 }
 0x6b2   : > { %v7397_v43 = vadd.f32 %v7396_v63, %v7276_v2  ;;  %v7277_v45 = vmax.f32 %v7213_v27, 0.0  ;;  %v8955_v47 = vpop.f32.mrb[144].mxu0  ;;  %v7379_v58 = vmul.f32 0.015625, %v7378_v49 }
 0x6b3   : > { %v6902_v19 = vpop.f32.mrb[145].mxu0  ;;  %v7146_v14 = vmul.f32 %v8955_v47, %v12073_v60 }
 0x6b4   : > { %v7398_v23 = vadd.f32 %v7397_v43, %v7277_v45  ;;  %v7144_v3 = vmul.f32 %v12073_v60, %v6902_v19  ;;  %v8956_v24 = vpop.f32.mrb[146].mxu0  ;;  %v7381_v8 = vmul.f32 %v7380_v21, %v7379_v58 }
 0x6b5   : > { %v7147_v62 = vmul.f32 %v8956_v24, %v12073_v60  ;;  %v6905_v6 = vpop.f32.mrb[147].mxu0  ;;  %v7217_v32 = vadd.f32 %v12078_v38, %v7146_v14 }
 0x6b6   : > { %v7399_v57 = vadd.f32 %v7398_v23, %v7278_v9  ;;  %v7215_v22 = vadd.f32 %v12078_v38, %v7144_v3  ;;  %v7145_v61 = vmul.f32 %v12073_v60, %v6905_v6  ;;  %v7382_v41 = vsel %vm7327_vm5, %v7381_v8, 0.0 }
 0x6b7   : > { %7383 = vadd.xlane.f32.xlu1 %v7382_v41  ;;  %v7218_v51 = vadd.f32 %v12078_v38, %v7147_v62  ;;  %v7281_v4 = vmax.f32 %v7217_v32, 0.0 }
 0x6b8   : > { %v7400_v0 = vrot.slane %v7399_v57, 4  ;;  %v7216_v26 = vadd.f32 %v12078_v38, %v7145_v61  ;;  %v7279_v17 = vmax.f32 %v7215_v22, 0.0 }
 0x6b9   : > { %v7282_v15 = vmax.f32 %v7218_v51, 0.0 }
 0x6ba   : > { %v7280_v28 = vmax.f32 %v7216_v26, 0.0  ;;  %v8959_v29 = vpop.f32.mrb[148].mxu0  ;;  %v7401_v42 = vadd.f32 %v7400_v0, %v7399_v57 }
 0x6bb   : > { %v7150_v48 = vmul.f32 %v8959_v29, %v12073_v60  ;;  %v6918_v39 = vpop.f32.mrb[149].mxu0 }
 0x6bc   : > { %v7420_v16 = vadd.f32 %v7280_v28, %v7279_v17  ;;  %v7148_v44 = vmul.f32 %v12073_v60, %v6918_v39  ;;  %v8960_v30 = vpop.f32.mrb[150].mxu0  ;;  %v7402_v36 = vrot.slane %v7401_v42, 2 }
 0x6bd   : > { %v7151_v54 = vmul.f32 %v8960_v30, %v12073_v60  ;;  %v6921_v53 = vpop.f32.mrb[151].mxu0  ;;  %v7221_v31 = vadd.f32 %v12078_v38, %v7150_v48 }
 0x6be   : > { %v7421_v59 = vadd.f32 %v7420_v16, %v7281_v4  ;;  %v7219_v5 = vadd.f32 %v12078_v38, %v7148_v44  ;;  %v7149_v12 = vmul.f32 %v12073_v60, %v6921_v53  ;;  %v7403_v13 = vadd.f32 %v7402_v36, %v7401_v42 }
 0x6bf   : > { %v7222_v10 = vadd.f32 %v12078_v38, %v7151_v54  ;;  %v7285_v50 = vmax.f32 %v7221_v31, 0.0 }
 0x6c0   : > { %v7283_v37 = vmax.f32 %v7219_v5, 0.0  ;;  %v7422_v46 = vadd.f32 %v7421_v59, %v7282_v15  ;;  %v7220_v25 = vadd.f32 %v12078_v38, %v7149_v12  ;;  %v7404_v20 = vrot.slane %v7403_v13, 1 }
 0x6c1   : > { %v7286_v34 = vmax.f32 %v7222_v10, 0.0 }
 0x6c2   : > { %v7423_v55 = vadd.f32 %v7422_v46, %v7283_v37  ;;  %v7284_v33 = vmax.f32 %v7220_v25, 0.0  ;;  %v8963_v40 = vpop.f32.mrb[152].mxu0  ;;  %v7405_v7 = vadd.f32 %v7404_v20, %v7403_v13  ;;  %v7434_v46 = vld [vmem:[%s12261_s10] sm:$0x1] }
 0x6c3   : > { %v7153_v11 = vmul.f32 %v8963_v40, %v12073_v60  ;;  %v6934_v56 = vpop.f32.mrb[153].mxu0 }
 0x6c4   : > { %v7424_v1 = vadd.f32 %v7423_v55, %v7284_v33  ;;  %v8964_v52 = vpop.f32.mrb[154].mxu0  ;;  %v7406_v18 = vmul.f32 0.015625, %v7405_v7 }
 0x6c5   : > { %v7154_v2 = vmul.f32 %v8964_v52, %v12073_v60  ;;  %v6936_v63 = vpop.f32.mrb[155].mxu0  ;;  %v7224_v49 = vadd.f32 %v12078_v38, %v7153_v11 }
 0x6c6   : > { %v7425_v27 = vadd.f32 %v7424_v1, %v7285_v50  ;;  %v7152_v21 = vmul.f32 %v12073_v60, %v6936_v63  ;;  %v7408_v43 = vmul.f32 %v7407_v35, %v7406_v18 }
 0x6c7   : > { %v7225_v45 = vadd.f32 %v12078_v38, %v7154_v2  ;;  %v7288_v19 = vmax.f32 %v7224_v49, 0.0 }
 0x6c8   : > { %v7426_v47 = vadd.f32 %v7425_v27, %v7286_v34  ;;  %v7223_v58 = vadd.f32 %v12078_v38, %v7152_v21  ;;  %v7409_v9 = vsel %vm7327_vm5, %v7408_v43, 0.0 }
 0x6c9   : > { %7410 = vadd.xlane.f32.xlu0 %v7409_v9  ;;  %v7289_v24 = vmax.f32 %v7225_v45, 0.0 }
 0x6ca   : > { %v7287_v23 = vmax.f32 %v7223_v58, 0.0  ;;  %v8967_v14 = vpop.f32.mrb[156].mxu0  ;;  %v7427_v3 = vrot.slane %v7426_v47, 4 }
 0x6cb   : > { %v6949_v8 = vpop.f32.mrb[157].mxu0  ;;  %v7157_v6 = vmul.f32 %v8967_v14, %v12073_v60 }
 0x6cc   : > { %v7447_v62 = vadd.f32 %v7288_v19, %v7287_v23  ;;  %v7155_v57 = vmul.f32 %v12073_v60, %v6949_v8  ;;  %v8968_v22 = vpop.f32.mrb[158].mxu0  ;;  %v7428_v61 = vadd.f32 %v7427_v3, %v7426_v47 }
 0x6cd   : > { %v7158_v41 = vmul.f32 %v8968_v22, %v12073_v60  ;;  %v6952_v0 = vpop.f32.mrb[159].mxu0  ;;  %v7228_v28 = vadd.f32 %v12078_v38, %v7157_v6 }
 0x6ce   : > { %v7226_v32 = vadd.f32 %v12078_v38, %v7155_v57  ;;  %v7448_v26 = vadd.f32 %v7447_v62, %v7289_v24  ;;  %v7156_v51 = vmul.f32 %v12073_v60, %v6952_v0  ;;  %v7429_v17 = vrot.slane %v7428_v61, 2 }
 0x6cf   : > { %v7229_v4 = vadd.f32 %v12078_v38, %v7158_v41  ;;  %v7292_v54 = vmax.f32 %v7228_v28, 0.0 }
 0x6d0   : > { %v7290_v29 = vmax.f32 %v7226_v32, 0.0  ;;  %v7227_v42 = vadd.f32 %v12078_v38, %v7156_v51  ;;  %v7430_v48 = vadd.f32 %v7429_v17, %v7428_v61 }
 0x6d1   : > { %v7293_v25 = vmax.f32 %v7229_v4, 0.0 }
 0x6d2   : > { %v7449_v39 = vadd.f32 %v7448_v26, %v7290_v29  ;;  %v7291_v16 = vmax.f32 %v7227_v42, 0.0  ;;  %v8971_v44 = vpop.f32.mrb[160].mxu0  ;;  %v7431_v30 = vrot.slane %v7430_v48, 1 }
 0x6d3   : > { %v7160_v36 = vmul.f32 %v8971_v44, %v12073_v60  ;;  %v6965_v15 = vpop.f32.mrb[161].mxu0 }
 0x6d4   : > { %v7450_v53 = vadd.f32 %v7449_v39, %v7291_v16  ;;  %v7159_v59 = vmul.f32 %v12073_v60, %v6965_v15  ;;  %v8972_v5 = vpop.f32.mrb[162].mxu0  ;;  %v7432_v12 = vadd.f32 %v7431_v30, %v7430_v48  ;;  %v7461_v39 = vld [vmem:[%s12261_s10] sm:$0x1] }
 0x6d5   : > { %v7231_v13 = vadd.f32 %v12078_v38, %v7160_v36  ;;  %v7161_v31 = vmul.f32 %v8972_v5, %v12073_v60  ;;  %v6968_v37 = vpop.f32.mrb[163].mxu0 }
 0x6d6   : > { %v7451_v20 = vadd.f32 %v7450_v53, %v7292_v54  ;;  %v7230_v10 = vadd.f32 %v12078_v38, %v7159_v59  ;;  %v7433_v55 = vmul.f32 0.015625, %v7432_v12 }
 0x6d7   : > { %v7232_v33 = vadd.f32 %v12078_v38, %v7161_v31  ;;  %v7295_v56 = vmax.f32 %v7231_v13, 0.0 }
 0x6d8   : > { %v7294_v40 = vmax.f32 %v7230_v10, 0.0  ;;  %v7452_v7 = vadd.f32 %v7451_v20, %v7293_v25  ;;  %v7435_v11 = vmul.f32 %v7434_v46, %v7433_v55 }
 0x6d9   : > { %v7296_v35 = vmax.f32 %v7232_v33, 0.0 }
 0x6da   : > { %v7453_v50 = vadd.f32 %v7452_v7, %v7294_v40  ;;  %v8975_v1 = vpop.f32.mrb[164].mxu0  ;;  %v7436_v52 = vsel %vm7327_vm5, %v7435_v11, 0.0 }
 0x6db   : > { %v7474_v18 = vadd.f32 %v7296_v35, %v7295_v56  ;;  %7437 = vadd.xlane.f32.xlu1 %v7436_v52  ;;  %v6980_v34 = vpop.f32.mrb[165].mxu0  ;;  %v7164_v63 = vmul.f32 %v8975_v1, %v12073_v60 }
 0x6dc   : > { %v7454_v2 = vrot.slane %v7453_v50, 4  ;;  %v7162_v27 = vmul.f32 %v12073_v60, %v6980_v34  ;;  %v8976_v49 = vpop.f32.mrb[166].mxu0 }
 0x6dd   : > { %v7165_v21 = vmul.f32 %v8976_v49, %v12073_v60  ;;  %v6983_v43 = vpop.f32.mrb[167].mxu0  ;;  %v7235_v9 = vadd.f32 %v12078_v38, %v7164_v63 }
 0x6de   : > { %v7455_v45 = vadd.f32 %v7454_v2, %v7453_v50  ;;  %v7233_v47 = vadd.f32 %v12078_v38, %v7162_v27  ;;  %v7163_v58 = vmul.f32 %v12073_v60, %v6983_v43 }
 0x6df   : > { %v7236_v3 = vadd.f32 %v12078_v38, %v7165_v21  ;;  %v7299_v22 = vmax.f32 %v7235_v9, 0.0 }
 0x6e0   : > { %v7297_v19 = vmax.f32 %v7233_v47, 0.0  ;;  %v7234_v23 = vadd.f32 %v12078_v38, %v7163_v58  ;;  %v7456_v14 = vrot.slane %v7455_v45, 2 }
 0x6e1   : > { %v7300_v26 = vmax.f32 %v7236_v3, 0.0 }
 0x6e2   : > { %v7475_v24 = vadd.f32 %v7474_v18, %v7297_v19  ;;  %v7298_v8 = vmax.f32 %v7234_v23, 0.0  ;;  %v8979_v62 = vpop.f32.mrb[168].mxu0  ;;  %v7457_v6 = vadd.f32 %v7456_v14, %v7455_v45 }
 0x6e3   : > { %v6996_v57 = vpop.f32.mrb[169].mxu0 }
 0x6e4   : > { %v7476_v61 = vadd.f32 %v7475_v24, %v7298_v8  ;;  %v7166_v41 = vmul.f32 %v12073_v60, %v6996_v57  ;;  %v8980_v0 = vpop.f32.mrb[170].mxu0  ;;  %v7458_v32 = vrot.slane %v7457_v6, 1  ;;  %v7488_v57 = vld [vmem:[%s12261_s10] sm:$0x1] }
 0x6e5   : > { %v6999_v51 = vpop.f32.mrb[171].mxu0  ;;  %v7168_v48 = vmul.f32 %v8980_v0, %v12073_v60 }
 0x6e6   : > { %v7477_v17 = vadd.f32 %v7476_v61, %v7299_v22  ;;  %v7237_v28 = vadd.f32 %v12078_v38, %v7166_v41  ;;  %v7167_v29 = vmul.f32 %v12073_v60, %v6999_v51  ;;  %v7459_v42 = vadd.f32 %v7458_v32, %v7457_v6 }
 0x6e7   : > { %v7239_v59 = vadd.f32 %v12078_v38, %v7168_v48 }
 0x6e8   : > { %v7301_v4 = vmax.f32 %v7237_v28, 0.0  ;;  %v7478_v16 = vadd.f32 %v7477_v17, %v7300_v26  ;;  %v7238_v44 = vadd.f32 %v12078_v38, %v7167_v29  ;;  %v7460_v30 = vmul.f32 0.015625, %v7459_v42 }
 0x6e9   : > { %v7303_v40 = vmax.f32 %v7239_v59, 0.0 }
 0x6ea   : > { %v7479_v36 = vadd.f32 %v7478_v16, %v7301_v4  ;;  %v7302_v15 = vmax.f32 %v7238_v44, 0.0  ;;  %v8983_v54 = vpop.f32.mrb[172].mxu0  ;;  %v7462_v53 = vmul.f32 %v7461_v39, %v7460_v30  ;;  %v7515_v39 = vld [vmem:[%s12261_s10] sm:$0x1]  ;;  %v7331_v30 = vld [vmem:[#allocation4] sm:$0x1] }
 0x6eb   : > { %v7011_v5 = vpop.f32.mrb[173].mxu0  ;;  %v7171_v13 = vmul.f32 %v8983_v54, %v12073_v60  ;;  %v7358_v54 = vld [vmem:[#allocation4] sm:$0x1] }
 0x6ec   : > { %v7480_v12 = vadd.f32 %v7479_v36, %v7302_v15  ;;  %v7169_v31 = vmul.f32 %v12073_v60, %v7011_v5  ;;  %v8984_v37 = vpop.f32.mrb[174].mxu0  ;;  %v7463_v46 = vsel %vm7327_vm5, %v7462_v53, 0.0  ;;  %v7385_v5 = vld [vmem:[#allocation4] sm:$0x1] }
 0x6ed   : > { %v7172_v25 = vmul.f32 %v8984_v37, %v12073_v60  ;;  %7464 = vadd.xlane.f32.xlu0 %v7463_v46  ;;  %v7014_v20 = vpop.f32.mrb[175].mxu0  ;;  %v7242_v11 = vadd.f32 %v12078_v38, %v7171_v13 }
 0x6ee   : > { %v7481_v10 = vrot.slane %v7480_v12, 4  ;;  %v7240_v55 = vadd.f32 %v12078_v38, %v7169_v31  ;;  %v7170_v33 = vmul.f32 %v12073_v60, %v7014_v20  ;;  %v7412_v31 = vld [vmem:[#allocation4] sm:$0x1] }
 0x6ef   : > { %v7243_v50 = vadd.f32 %v12078_v38, %v7172_v25  ;;  %v7306_v27 = vmax.f32 %v7242_v11, 0.0  ;;  %v7439_v25 = vld [vmem:[#allocation4] sm:$0x1] }
 0x6f0   : > { %v7482_v7 = vadd.f32 %v7481_v10, %v7480_v12  ;;  %v7304_v56 = vmax.f32 %v7240_v55, 0.0  ;;  %v7241_v35 = vadd.f32 %v12078_v38, %v7170_v33  ;;  %v7466_v55 = vld [vmem:[#allocation4] sm:$0x1] }
 0x6f1   : > { %v7307_v47 = vmax.f32 %v7243_v50, 0.0 }
 0x6f2   : > { %v7501_v1 = vadd.f32 %v7304_v56, %v7303_v40  ;;  %v7305_v52 = vmax.f32 %v7241_v35, 0.0  ;;  %v8987_v18 = vpop.f32.mrb[176].mxu0  ;;  %v7483_v34 = vrot.slane %v7482_v7, 2  ;;  %v7520_v35 = vld [vmem:[#allocation4] sm:$0x1] }
 0x6f3   : > { %v7175_v2 = vmul.f32 %v8987_v18, %v12073_v60  ;;  %v7027_v63 = vpop.f32.mrb[177].mxu0 }
 0x6f4   : > { %v7502_v49 = vadd.f32 %v7501_v1, %v7305_v52  ;;  %v7173_v21 = vmul.f32 %v12073_v60, %v7027_v63  ;;  %v8988_v43 = vpop.f32.mrb[178].mxu0  ;;  %v7484_v45 = vadd.f32 %v7483_v34, %v7482_v7  ;;  %v7493_v7 = vld [vmem:[#allocation4] sm:$0x1] }
 0x6f5   : > { %v7030_v58 = vpop.f32.mrb[179].mxu0  ;;  %v7246_v3 = vadd.f32 %v12078_v38, %v7175_v2 }
 0x6f6   : > { %v7503_v9 = vadd.f32 %v7502_v49, %v7306_v27  ;;  %v7244_v19 = vadd.f32 %v12078_v38, %v7173_v21  ;;  %v7174_v23 = vmul.f32 %v12073_v60, %v7030_v58  ;;  %v7485_v14 = vrot.slane %v7484_v45, 1 }
 0x6f7   : > { %v7310_v0 = vmax.f32 %v7246_v3, 0.0 }
 0x6f8   : > { %v7308_v24 = vmax.f32 %v7244_v19, 0.0  ;;  %v7504_v8 = vadd.f32 %v7503_v9, %v7307_v47  ;;  %v7245_v62 = vadd.f32 %v12078_v38, %v7174_v23  ;;  %v7486_v6 = vadd.f32 %v7485_v14, %v7484_v45 }
 0x6fa   : > { %v7505_v22 = vadd.f32 %v7504_v8, %v7308_v24  ;;  %v7309_v61 = vmax.f32 %v7245_v62, 0.0  ;;  %v7487_v41 = vmul.f32 0.015625, %v7486_v6 }
 0x6fc   : > { %v7506_v32 = vadd.f32 %v7505_v22, %v7309_v61  ;;  %v7489_v26 = vmul.f32 %v7488_v57, %v7487_v41 }
 0x6fe   : > { %v7507_v51 = vadd.f32 %v7506_v32, %v7310_v0  ;;  %v7490_v60 = vsel %vm7327_vm5, %v7489_v26, 0.0 }
 0x6ff   : > { %7491 = vadd.xlane.f32.xlu0 %v7490_v60 }
 0x700   : > { %v7508_v17 = vrot.slane %v7507_v51, 4 }
 0x702   : > { %v7509_v28 = vadd.f32 %v7508_v17, %v7507_v51 }
 0x704   : > { %v7510_v29 = vrot.slane %v7509_v28, 2 }
 0x706   : > { %v7511_v42 = vadd.f32 %v7510_v29, %v7509_v28 }
 0x708   : > { %v7512_v38 = vrot.slane %v7511_v42, 1 }
 0x70a   : > { %v7513_v48 = vadd.f32 %v7512_v38, %v7511_v42 }
 0x70c   : > { %v7514_v4 = vmul.f32 0.015625, %v7513_v48 }
 0x70e   : > { %v7516_v16 = vmul.f32 %v7515_v39, %v7514_v4 }
 0x710   : > { %v7517_v44 = vsel %vm7327_vm5, %v7516_v16, 0.0 }
 0x711   : > { %7518 = vadd.xlane.f32.xlu0 %v7517_v44 }
 0x720   : > { %v7330_v36 = vpop.xlane.xlu0 %7329 }
 0x721   : > { %v7332_v15 = vadd.f32 %v7331_v30, %v7330_v36 }
 0x727   : > { %7335 = vperm.xlu0 %9448, %v7332_v15  }
 0x732   : > { %v7357_v53 = vpop.xlane.xlu1 %7356 }
 0x733   : > { %v7359_v59 = vadd.f32 %v7358_v54, %v7357_v53 }
 0x735   : > { %7362 = vperm.xlu1 %9449, %v7359_v59  }
 0x744   : > { %v7384_v12 = vpop.xlane.xlu1 %7383 }
 0x745   : > { %v7386_v13 = vadd.f32 %v7385_v5, %v7384_v12 }
 0x747   : > { %7389 = vperm.xlu0 %9448, %v7386_v13  }
 0x756   : > { %v7411_v37 = vpop.xlane.xlu0 %7410 }
 0x757   : > { %v7413_v46 = vadd.f32 %v7412_v31, %v7411_v37 }
 0x759   : > { %7416 = vperm.xlu1 %9449, %v7413_v46  }
 0x768   : > { %v7438_v20 = vpop.xlane.xlu1 %7437 }
 0x769   : > { %v7440_v10 = vadd.f32 %v7439_v25, %v7438_v20 }
 0x76b   : > { %7443 = vperm.xlu0 %9448, %v7440_v10  }
 0x77a   : > { %v7465_v33 = vpop.xlane.xlu0 %7464 }
 0x77b   : > { %v7467_v40 = vadd.f32 %v7466_v55, %v7465_v33 }
 0x77d   : > { %7470 = vperm.xlu1 %9449, %v7467_v40  }
 0x78c   : > { %v7492_v11 = vpop.xlane.xlu0 %7491 }
 0x78d   : > { %v7494_v56 = vadd.f32 %v7493_v7, %v7492_v11 }
 0x78f   : > { %7497 = vperm.xlu0 %9448, %v7494_v56  }
 0x79e   : > { %v7519_v50 = vpop.xlane.xlu0 %7518 }
 0x79f   : > { %v7521_v1 = vadd.f32 %v7520_v35, %v7519_v50 }
 0x7a1   : > { %7524 = vperm.xlu0 %9448, %v7521_v1  }
 0x7a6   : > { %v7336_v52 = vpop.permute.xlu0 %7335 }
 0x7a7   : > { %7338 = vst [vmem:[%s9710_s29] sm:$0x1] %v7336_v52 }
 0x7b4   : > { %v7363_v18 = vpop.permute.xlu1 %7362 }
 0x7b5   : > { %7365 = vst [vmem:[%s9710_s29 + $0x1] sm:$0x1] %v7363_v18 }
 0x7c6   : > { %v7390_v34 = vpop.permute.xlu0 %7389 }
 0x7c7   : > { %7392 = vst [vmem:[%s9710_s29 + $0x2] sm:$0x1] %v7390_v34 }
 0x7d8   : > { %v7417_v2 = vpop.permute.xlu1 %7416 }
 0x7d9   : > { %7419 = vst [vmem:[%s9710_s29 + $0x3] sm:$0x1] %v7417_v2 }
 0x7ea   : > { %v7444_v63 = vpop.permute.xlu0 %7443 }
 0x7eb   : > { %7446 = vst [vmem:[%s9710_s29 + $0x4] sm:$0x1] %v7444_v63 }
 0x7fc   : > { %v7471_v27 = vpop.permute.xlu1 %7470 }
 0x7fd   : > { %7473 = vst [vmem:[%s9710_s29 + $0x5] sm:$0x1] %v7471_v27 }
 0x80e   : > { %v7498_v49 = vpop.permute.xlu0 %7497 }
 0x80f   : > { %7500 = vst [vmem:[%s9710_s29 + $0x6] sm:$0x1] %v7498_v49 }
 0x820   : > { %v7525_v21 = vpop.permute.xlu0 %7524 }
 0x821   : > { %7527 = vst [vmem:[%s9710_s29 + $0x7] sm:$0x1] %v7525_v21 }
 0x822 PF: > { %s24_s23 = sadd.s32 1, %s9627_s23  }
 0x823   : > { %p21_p5 = scmp.ge.s32.totalorder %s24_s23, 4  }
 0x825   :  { %23 = sbr.rel (!%p21_p5) target bundleno = 3 (0x3), region = 108 }

</bundles_post_ra>
